<compile_context>
chip_gen: v5e
topology: v5e:2x2
jax: 0.10.0
libtpu: 0.0.40
codegen_flags: <defaults>
</compile_context>

<pallas_src>
import numpy as np
import jax
import jax.numpy as jnp
from jax import lax
from jax.experimental import pallas as pl
from jax.experimental.pallas import tpu as pltpu


# ------------------------------- the kernel -------------------------------

def deception_kernel(x_ref,
                     e_wih0, e_whh0, e_b0, e_wf1, e_b1,
                     w21, b21, w22, b22,
                     we1, be1, we2, be2, wd1, bd1, wd2, bd2,
                     wl, bl,
                     d_wih0, d_whh0, d_b0, d_wf1, d_b1,
                     wfc,
                     loss_ref, ploss_ref, rloss_ref):
    T, B, F = x_ref.shape
    H = e_b0.shape[1] // 4
    L = b22.shape[1]
    B2 = 2 * B
    f32 = jnp.float32

    # Loop-invariant weights, loaded once.
    e_wih0v, e_whh0v, e_wf1v = e_wih0[...], e_whh0[...], e_wf1[...]
    d_wih0v, d_whh0v, d_wf1v = d_wih0[...], d_whh0[...], d_wf1[...]
    wfcv = wfc[...]

    # Pre-broadcast biases once (JAX does not CSE broadcast_in_dim).
    e_b0b = jnp.broadcast_to(e_b0[...], (B, 4 * H))
    e_b1b = jnp.broadcast_to(e_b1[...], (B, 4 * H))
    d_b0b = jnp.broadcast_to(d_b0[...], (B2, 4 * H))
    d_b1b = jnp.broadcast_to(d_b1[...], (B2, 4 * H))

    def gates_to_hc(gates, c):
        # Two full-vreg EUP passes, then cheap lane slices for i/f/g/o.
        sg = 1.0 / (1.0 + jnp.exp(-gates))
        tg = jnp.tanh(gates)
        i = sg[:, 0:H]
        f = sg[:, H:2 * H]
        g = tg[:, 2 * H:3 * H]
        o = sg[:, 3 * H:4 * H]
        c_new = f * c + i * g
        h_new = o * jnp.tanh(c_new)
        return h_new, c_new

    # ---- 2-layer LSTM encoder (T fully unrolled) ----
    zero = jnp.zeros((B, H), f32)
    h0, c0, h1, c1 = zero, zero, zero, zero
    for t in range(T):
        x_t = x_ref[t]                                          # (B, F)
        # Input projection has no recurrence -> off the carried chain.
        xin0 = jnp.dot(x_t, e_wih0v, preferred_element_type=f32) + e_b0b
        g0 = xin0 + jnp.dot(h0, e_whh0v, preferred_element_type=f32)
        h0, c0 = gates_to_hc(g0, c0)
        # Layer 1: fused [w_ih1; w_hh1] matmul on concat([h0, h1]).
        hin1 = jnp.concatenate([h0, h1], axis=1)                # (B, 2H)
        g1 = jnp.dot(hin1, e_wf1v, preferred_element_type=f32) + e_b1b
        h1, c1 = gates_to_hc(g1, c1)
    enc_h = h1

    # ---- theta = fc22(relu(fc21(enc_h))) ----
    hid = jnp.maximum(jnp.dot(enc_h, w21[...],
                              preferred_element_type=f32) + b21[...], 0.0)
    theta = jnp.dot(hid, w22[...], preferred_element_type=f32) + b22[...]

    # ---- DeceptionNet(theta): (L->8 relu 8->H relu) then (H->8 relu 8->L) ----
    t1 = jnp.maximum(jnp.dot(theta, we1[...],
                             preferred_element_type=f32) + be1[...], 0.0)
    t2 = jnp.maximum(jnp.dot(t1, we2[...],
                             preferred_element_type=f32) + be2[...], 0.0)
    t3 = jnp.maximum(jnp.dot(t2, wd1[...],
                             preferred_element_type=f32) + bd1[...], 0.0)
    ptheta = jnp.dot(t3, wd2[...], preferred_element_type=f32) + bd2[...]

    # ---- decoder: both streams batched as (2B, .), fc_l2l hoisted ----
    th2 = jnp.concatenate([theta, ptheta], axis=0)              # (2B, L)
    Z = jnp.dot(th2, wl[...], preferred_element_type=f32) + bl[...]   # (2B, T*L)

    zero2 = jnp.zeros((B2, H), f32)
    h0, c0, h1, c1 = zero2, zero2, zero2, zero2
    acc = jnp.zeros((B, F), f32)                                # squared-diff accumulator
    for t in range(T):
        z_t = Z[:, t * L:(t + 1) * L]                           # (2B, L), static slice
        zin0 = jnp.dot(z_t, d_wih0v, preferred_element_type=f32) + d_b0b
        g0 = zin0 + jnp.dot(h0, d_whh0v, preferred_element_type=f32)
        h0, c0 = gates_to_hc(g0, c0)
        hin1 = jnp.concatenate([h0, h1], axis=1)                # (2B, 2H)
        g1 = jnp.dot(hin1, d_wf1v, preferred_element_type=f32) + d_b1b
        h1, c1 = gates_to_hc(g1, c1)
        # fc bias cancels in the recons difference: (a@W+b)-(c@W+b) = (a-c)@W
        hd = h1[:B, :] - h1[B:, :]                              # (B, H)
        d = jnp.dot(hd, wfcv, preferred_element_type=f32)       # (B, F)
        acc = acc + d * d

    # Cross-lane reductions once, after the loop.
    sq_sum = jnp.sum(acc, axis=1, keepdims=True).sum(axis=0, keepdims=True)
    recons_loss = sq_sum / float(B * T * F)

    dpt = ptheta - theta
    perturb_loss = (jnp.sum(dpt * dpt, axis=1, keepdims=True)
                    .sum(axis=0, keepdims=True) / float(B * L))
    loss = perturb_loss + 1.0 / (recons_loss + 1e-20)

    loss_ref[...] = loss
    ploss_ref[...] = perturb_loss
    rloss_ref[...] = recons_loss


# ------------------------------- JAX wrapper -------------------------------

def deception_forward(x, p):
    """x: (B, T, F) float32, batch_first like PyTorch. Returns 3 scalars."""
    B, T, F = x.shape

    x_tbf = jnp.transpose(x, (1, 0, 2))                         # time-major (T, B, F)
    # Fused layer-1 gate weights: [w_ih1; w_hh1] -> (2H, 4H)
    e_wf1 = jnp.concatenate([p["e_wih1"], p["e_whh1"]], axis=0)
    d_wf1 = jnp.concatenate([p["d_wih1"], p["d_whh1"]], axis=0)
    bl = p["bl"].reshape(1, -1)                                 # (1, T*L)

    inputs = [
        x_tbf,
        p["e_wih0"], p["e_whh0"], p["e_b0"], e_wf1, p["e_b1"],
        p["w21"], p["b21"], p["w22"], p["b22"],
        p["we1"], p["be1"], p["we2"], p["be2"],
        p["wd1"], p["bd1"], p["wd2"], p["bd2"],
        p["wl"], bl,
        p["d_wih0"], p["d_whh0"], p["d_b0"], d_wf1, p["d_b1"],
        p["wfc"],                                               # bfc cancels in the loss
    ]

    vmem_spec = pl.BlockSpec(memory_space=pltpu.MemorySpace.VMEM)
    out_shape = (jax.ShapeDtypeStruct((1, 1), jnp.float32),) * 3

    loss, ploss, rloss = pl.pallas_call(
        deception_kernel,
        out_shape=out_shape,
        in_specs=[vmem_spec] * len(inputs),
        out_specs=(vmem_spec,) * 3,
    )(*inputs)
    return loss[0, 0], ploss[0, 0], rloss[0, 0]


# --------------------------- pure-JAX reference ---------------------------

def _sigmoid(x):
    return 1.0 / (1.0 + jnp.exp(-x))


def _cell_ref(x_t, h, c, w_ih, w_hh, b, hidden):
    gates = x_t @ w_ih + h @ w_hh + b
    i = _sigmoid(gates[:, 0:hidden])
    f = _sigmoid(gates[:, hidden:2 * hidden])
    g = jnp.tanh(gates[:, 2 * hidden:3 * hidden])
    o = _sigmoid(gates[:, 3 * hidden:4 * hidden])
    c = f * c + i * g
    h = o * jnp.tanh(c)
    return h, c


def _run_lstm_ref(x, layers):
    B, T, _ = x.shape
    outs = x
    last_h = None
    for (w_ih, w_hh, b) in layers:
        H = b.shape[1] // 4
        h = jnp.zeros((B, H), jnp.float32)
        c = jnp.zeros((B, H), jnp.float32)
        seq = []
        for t in range(T):
            h, c = _cell_ref(outs[:, t, :], h, c, w_ih, w_hh, b, H)
            seq.append(h)
        outs = jnp.stack(seq, axis=1)
        last_h = h
    return outs, last_h


def reference_forward(x, p):
    B, T, F = x.shape
    L = p["b22"].shape[1]

    _, enc_h = _run_lstm_ref(
        x, [(p["e_wih0"], p["e_whh0"], p["e_b0"]),
            (p["e_wih1"], p["e_whh1"], p["e_b1"])])
    theta = jnp.maximum(enc_h @ p["w21"] + p["b21"], 0.0) @ p["w22"] + p["b22"]

    t1 = jnp.maximum(theta @ p["we1"] + p["be1"], 0.0)
    t2 = jnp.maximum(t1 @ p["we2"] + p["be2"], 0.0)
    t3 = jnp.maximum(t2 @ p["wd1"] + p["bd1"], 0.0)
    ptheta = t3 @ p["wd2"] + p["bd2"]

    dec_layers = [(p["d_wih0"], p["d_whh0"], p["d_b0"]),
                  (p["d_wih1"], p["d_whh1"], p["d_b1"])]

    def decode(th):
        z = (th @ p["wl"] + p["bl"]).reshape(B, T, L)
        outs, _ = _run_lstm_ref(z, dec_layers)
        return jnp.dot(outs, p["wfc"]) + p["bfc"]

    recons = decode(theta)
    ptb_recons = decode(ptheta)

    recons_loss = jnp.mean((recons - ptb_recons) ** 2)
    perturb_loss = jnp.mean((ptheta - theta) ** 2)
    loss = perturb_loss + 1.0 / (recons_loss + 1e-20)
    return loss, perturb_loss, recons_loss


# ---------------------------------- main ----------------------------------

if __name__ == "__main__":
    # Small shapes consistent with the module's args dict.
    B, T, F, H, L = 4, 8, 8, 8, 4   # batch, seq_len, input_size, hidden, latent

    keys = iter(jax.random.split(jax.random.PRNGKey(0), 64))

    def u(shape, fan_in):
        bound = 1.0 / np.sqrt(fan_in)
        return jax.random.uniform(next(keys), shape, jnp.float32, -bound, bound)

    p = {}
    # encoder LSTM (2 layers), weights stored pre-transposed as (in, 4H)
    p["e_wih0"] = u((F, 4 * H), H); p["e_whh0"] = u((H, 4 * H), H); p["e_b0"] = u((1, 4 * H), H)
    p["e_wih1"] = u((H, 4 * H), H); p["e_whh1"] = u((H, 4 * H), H); p["e_b1"] = u((1, 4 * H), H)
    # fc21: H->H, fc22: H->L
    p["w21"] = u((H, H), H); p["b21"] = u((1, H), H)
    p["w22"] = u((H, L), H); p["b22"] = u((1, L), H)
    # DeceptionNet: encoder L->8->H, decoder H->8->L
    p["we1"] = u((L, 8), L); p["be1"] = u((1, 8), L)
    p["we2"] = u((8, H), 8); p["be2"] = u((1, H), 8)
    p["wd1"] = u((H, 8), H); p["bd1"] = u((1, 8), H)
    p["wd2"] = u((8, L), 8); p["bd2"] = u((1, L), 8)
    # fc_l2l: L -> L*T
    p["wl"] = u((L, L * T), L); p["bl"] = u((L * T,), L)
    # decoder LSTM (2 layers, input L, hidden H) + output fc H->F
    p["d_wih0"] = u((L, 4 * H), H); p["d_whh0"] = u((H, 4 * H), H); p["d_b0"] = u((1, 4 * H), H)
    p["d_wih1"] = u((H, 4 * H), H); p["d_whh1"] = u((H, 4 * H), H); p["d_b1"] = u((1, 4 * H), H)
    p["wfc"] = u((H, F), H); p["bfc"] = u((1, F), H)

    x = jax.random.normal(next(keys), (B, T, F), jnp.float32)

    loss, ploss, rloss = jax.block_until_ready(
        jax.jit(deception_forward)(x, p))

    ref_loss, ref_ploss, ref_rloss = reference_forward(x, p)

    np.testing.assert_allclose(np.array(ploss), np.array(ref_ploss), rtol=2e-3, atol=1e-5)
    np.testing.assert_allclose(np.array(rloss), np.array(ref_rloss), rtol=2e-3, atol=1e-5)
    np.testing.assert_allclose(np.array(loss), np.array(ref_loss), rtol=5e-3, atol=1e-4)

    # TODO(synk): the module's default train_phase==0 branch is undefined in the
    # PyTorch reference (UnboundLocalError); this kernel implements phase 2.
    print("KERNEL_OK")
</pallas_src>

<mosaic_0001>
module attributes {stable_mosaic.version = 11 : i64} {
  func.func @deception_kernel(%arg0: memref<8x4x8xf32, #tpu.memory_space<vmem>>, %arg1: memref<8x32xf32, #tpu.memory_space<vmem>>, %arg2: memref<8x32xf32, #tpu.memory_space<vmem>>, %arg3: memref<1x32xf32, #tpu.memory_space<vmem>>, %arg4: memref<16x32xf32, #tpu.memory_space<vmem>>, %arg5: memref<1x32xf32, #tpu.memory_space<vmem>>, %arg6: memref<8x8xf32, #tpu.memory_space<vmem>>, %arg7: memref<1x8xf32, #tpu.memory_space<vmem>>, %arg8: memref<8x4xf32, #tpu.memory_space<vmem>>, %arg9: memref<1x4xf32, #tpu.memory_space<vmem>>, %arg10: memref<4x8xf32, #tpu.memory_space<vmem>>, %arg11: memref<1x8xf32, #tpu.memory_space<vmem>>, %arg12: memref<8x8xf32, #tpu.memory_space<vmem>>, %arg13: memref<1x8xf32, #tpu.memory_space<vmem>>, %arg14: memref<8x8xf32, #tpu.memory_space<vmem>>, %arg15: memref<1x8xf32, #tpu.memory_space<vmem>>, %arg16: memref<8x4xf32, #tpu.memory_space<vmem>>, %arg17: memref<1x4xf32, #tpu.memory_space<vmem>>, %arg18: memref<4x32xf32, #tpu.memory_space<vmem>>, %arg19: memref<1x32xf32, #tpu.memory_space<vmem>>, %arg20: memref<4x32xf32, #tpu.memory_space<vmem>>, %arg21: memref<8x32xf32, #tpu.memory_space<vmem>>, %arg22: memref<1x32xf32, #tpu.memory_space<vmem>>, %arg23: memref<16x32xf32, #tpu.memory_space<vmem>>, %arg24: memref<1x32xf32, #tpu.memory_space<vmem>>, %arg25: memref<8x8xf32, #tpu.memory_space<vmem>>, %arg26: memref<1x1xf32, #tpu.memory_space<vmem>>, %arg27: memref<1x1xf32, #tpu.memory_space<vmem>>, %arg28: memref<1x1xf32, #tpu.memory_space<vmem>>) attributes {dimension_semantics = [], scalar_prefetch = 0 : i64, scratch_operands = 0 : i64, tpu.core_type = #tpu.core_type<tc>} {
    %c0 = arith.constant 0 : index
    %c0_0 = arith.constant 0 : index
    %0 = vector.load %arg1[%c0, %c0_0] : memref<8x32xf32, #tpu.memory_space<vmem>>, vector<8x32xf32>
    %c0_1 = arith.constant 0 : index
    %c0_2 = arith.constant 0 : index
    %1 = vector.load %arg2[%c0_1, %c0_2] : memref<8x32xf32, #tpu.memory_space<vmem>>, vector<8x32xf32>
    %c0_3 = arith.constant 0 : index
    %c0_4 = arith.constant 0 : index
    %2 = vector.load %arg4[%c0_3, %c0_4] : memref<16x32xf32, #tpu.memory_space<vmem>>, vector<16x32xf32>
    %c0_5 = arith.constant 0 : index
    %c0_6 = arith.constant 0 : index
    %3 = vector.load %arg20[%c0_5, %c0_6] : memref<4x32xf32, #tpu.memory_space<vmem>>, vector<4x32xf32>
    %c0_7 = arith.constant 0 : index
    %c0_8 = arith.constant 0 : index
    %4 = vector.load %arg21[%c0_7, %c0_8] : memref<8x32xf32, #tpu.memory_space<vmem>>, vector<8x32xf32>
    %c0_9 = arith.constant 0 : index
    %c0_10 = arith.constant 0 : index
    %5 = vector.load %arg23[%c0_9, %c0_10] : memref<16x32xf32, #tpu.memory_space<vmem>>, vector<16x32xf32>
    %c0_11 = arith.constant 0 : index
    %c0_12 = arith.constant 0 : index
    %6 = vector.load %arg25[%c0_11, %c0_12] : memref<8x8xf32, #tpu.memory_space<vmem>>, vector<8x8xf32>
    %c0_13 = arith.constant 0 : index
    %c0_14 = arith.constant 0 : index
    %7 = vector.load %arg3[%c0_13, %c0_14] : memref<1x32xf32, #tpu.memory_space<vmem>>, vector<1x32xf32>
    %8 = vector.shape_cast %7 : vector<1x32xf32> to vector<1x32xf32>
    %9 = vector.broadcast %8 : vector<1x32xf32> to vector<4x32xf32>
    %c0_15 = arith.constant 0 : index
    %c0_16 = arith.constant 0 : index
    %10 = vector.load %arg5[%c0_15, %c0_16] : memref<1x32xf32, #tpu.memory_space<vmem>>, vector<1x32xf32>
    %11 = vector.shape_cast %10 : vector<1x32xf32> to vector<1x32xf32>
    %12 = vector.broadcast %11 : vector<1x32xf32> to vector<4x32xf32>
    %c0_17 = arith.constant 0 : index
    %c0_18 = arith.constant 0 : index
    %13 = vector.load %arg22[%c0_17, %c0_18] : memref<1x32xf32, #tpu.memory_space<vmem>>, vector<1x32xf32>
    %14 = vector.shape_cast %13 : vector<1x32xf32> to vector<1x32xf32>
    %15 = vector.broadcast %14 : vector<1x32xf32> to vector<8x32xf32>
    %c0_19 = arith.constant 0 : index
    %c0_20 = arith.constant 0 : index
    %16 = vector.load %arg24[%c0_19, %c0_20] : memref<1x32xf32, #tpu.memory_space<vmem>>, vector<1x32xf32>
    %17 = vector.shape_cast %16 : vector<1x32xf32> to vector<1x32xf32>
    %18 = vector.broadcast %17 : vector<1x32xf32> to vector<8x32xf32>
    %cst = arith.constant 0.000000e+00 : f32
    %19 = vector.broadcast %cst : f32 to vector<4x8xf32>
    %c0_21 = arith.constant 0 : index
    %c0_22 = arith.constant 0 : index
    %c0_23 = arith.constant 0 : index
    %20 = vector.load %arg0[%c0_21, %c0_22, %c0_23] : memref<8x4x8xf32, #tpu.memory_space<vmem>>, vector<1x4x8xf32>
    %21 = vector.shape_cast %20 : vector<1x4x8xf32> to vector<4x8xf32>
    %cst_24 = arith.constant dense<0.000000e+00> : vector<4x32xf32>
    %22 = tpu.matmul %21, %0, %cst_24 {dimension_numbers = #tpu.dot_dimension_numbers<[1], [0], [0], [1], [0, 0, 1, 1], [], []>} : vector<4x8xf32>, vector<8x32xf32>, vector<4x32xf32> -> vector<4x32xf32>
    %23 = arith.addf %22, %9 : vector<4x32xf32>
    %cst_25 = arith.constant dense<0.000000e+00> : vector<4x32xf32>
    %24 = tpu.matmul %19, %1, %cst_25 {dimension_numbers = #tpu.dot_dimension_numbers<[1], [0], [0], [1], [0, 0, 1, 1], [], []>} : vector<4x8xf32>, vector<8x32xf32>, vector<4x32xf32> -> vector<4x32xf32>
    %25 = arith.addf %23, %24 : vector<4x32xf32>
    %cst_26 = arith.constant 0.000000e+00 : f32
    %26 = vector.broadcast %cst_26 : f32 to vector<4x32xf32>
    %27 = arith.subf %26, %25 : vector<4x32xf32>
    %28 = math.exp %27 : vector<4x32xf32>
    %cst_27 = arith.constant 1.000000e+00 : f32
    %29 = vector.broadcast %cst_27 : f32 to vector<4x32xf32>
    %30 = arith.addf %29, %28 : vector<4x32xf32>
    %cst_28 = arith.constant 1.000000e+00 : f32
    %31 = vector.broadcast %cst_28 : f32 to vector<4x32xf32>
    %32 = arith.divf %31, %30 : vector<4x32xf32>
    %33 = math.tanh %25 : vector<4x32xf32>
    %34 = vector.extract_strided_slice %32 {offsets = [0, 0], sizes = [4, 8], strides = [1, 1]} : vector<4x32xf32> to vector<4x8xf32>
    %35 = vector.extract_strided_slice %32 {offsets = [0, 8], sizes = [4, 8], strides = [1, 1]} : vector<4x32xf32> to vector<4x8xf32>
    %36 = vector.extract_strided_slice %33 {offsets = [0, 16], sizes = [4, 8], strides = [1, 1]} : vector<4x32xf32> to vector<4x8xf32>
    %37 = vector.extract_strided_slice %32 {offsets = [0, 24], sizes = [4, 8], strides = [1, 1]} : vector<4x32xf32> to vector<4x8xf32>
    %38 = arith.mulf %35, %19 : vector<4x8xf32>
    %39 = arith.mulf %34, %36 : vector<4x8xf32>
    %40 = arith.addf %38, %39 : vector<4x8xf32>
    %41 = math.tanh %40 : vector<4x8xf32>
    %42 = arith.mulf %37, %41 : vector<4x8xf32>
    %43 = tpu.concatenate %42, %19 in 1 : vector<4x8xf32>, vector<4x8xf32> -> vector<4x16xf32>
    %cst_29 = arith.constant dense<0.000000e+00> : vector<4x32xf32>
    %44 = tpu.matmul %43, %2, %cst_29 {dimension_numbers = #tpu.dot_dimension_numbers<[1], [0], [0], [1], [0, 0, 1, 1], [], []>} : vector<4x16xf32>, vector<16x32xf32>, vector<4x32xf32> -> vector<4x32xf32>
    %45 = arith.addf %44, %12 : vector<4x32xf32>
    %cst_30 = arith.constant 0.000000e+00 : f32
    %46 = vector.broadcast %cst_30 : f32 to vector<4x32xf32>
    %47 = arith.subf %46, %45 : vector<4x32xf32>
    %48 = math.exp %47 : vector<4x32xf32>
    %cst_31 = arith.constant 1.000000e+00 : f32
    %49 = vector.broadcast %cst_31 : f32 to vector<4x32xf32>
    %50 = arith.addf %49, %48 : vector<4x32xf32>
    %cst_32 = arith.constant 1.000000e+00 : f32
    %51 = vector.broadcast %cst_32 : f32 to vector<4x32xf32>
    %52 = arith.divf %51, %50 : vector<4x32xf32>
    %53 = math.tanh %45 : vector<4x32xf32>
    %54 = vector.extract_strided_slice %52 {offsets = [0, 0], sizes = [4, 8], strides = [1, 1]} : vector<4x32xf32> to vector<4x8xf32>
    %55 = vector.extract_strided_slice %52 {offsets = [0, 8], sizes = [4, 8], strides = [1, 1]} : vector<4x32xf32> to vector<4x8xf32>
    %56 = vector.extract_strided_slice %53 {offsets = [0, 16], sizes = [4, 8], strides = [1, 1]} : vector<4x32xf32> to vector<4x8xf32>
    %57 = vector.extract_strided_slice %52 {offsets = [0, 24], sizes = [4, 8], strides = [1, 1]} : vector<4x32xf32> to vector<4x8xf32>
    %58 = arith.mulf %55, %19 : vector<4x8xf32>
    %59 = arith.mulf %54, %56 : vector<4x8xf32>
    %60 = arith.addf %58, %59 : vector<4x8xf32>
    %61 = math.tanh %60 : vector<4x8xf32>
    %62 = arith.mulf %57, %61 : vector<4x8xf32>
    %c1 = arith.constant 1 : index
    %c0_33 = arith.constant 0 : index
    %c0_34 = arith.constant 0 : index
    %63 = vector.load %arg0[%c1, %c0_33, %c0_34] : memref<8x4x8xf32, #tpu.memory_space<vmem>>, vector<1x4x8xf32>
    %64 = vector.shape_cast %63 : vector<1x4x8xf32> to vector<4x8xf32>
    %cst_35 = arith.constant dense<0.000000e+00> : vector<4x32xf32>
    %65 = tpu.matmul %64, %0, %cst_35 {dimension_numbers = #tpu.dot_dimension_numbers<[1], [0], [0], [1], [0, 0, 1, 1], [], []>} : vector<4x8xf32>, vector<8x32xf32>, vector<4x32xf32> -> vector<4x32xf32>
    %66 = arith.addf %65, %9 : vector<4x32xf32>
    %cst_36 = arith.constant dense<0.000000e+00> : vector<4x32xf32>
    %67 = tpu.matmul %42, %1, %cst_36 {dimension_numbers = #tpu.dot_dimension_numbers<[1], [0], [0], [1], [0, 0, 1, 1], [], []>} : vector<4x8xf32>, vector<8x32xf32>, vector<4x32xf32> -> vector<4x32xf32>
    %68 = arith.addf %66, %67 : vector<4x32xf32>
    %cst_37 = arith.constant 0.000000e+00 : f32
    %69 = vector.broadcast %cst_37 : f32 to vector<4x32xf32>
    %70 = arith.subf %69, %68 : vector<4x32xf32>
    %71 = math.exp %70 : vector<4x32xf32>
    %cst_38 = arith.constant 1.000000e+00 : f32
    %72 = vector.broadcast %cst_38 : f32 to vector<4x32xf32>
    %73 = arith.addf %72, %71 : vector<4x32xf32>
    %cst_39 = arith.constant 1.000000e+00 : f32
    %74 = vector.broadcast %cst_39 : f32 to vector<4x32xf32>
    %75 = arith.divf %74, %73 : vector<4x32xf32>
    %76 = math.tanh %68 : vector<4x32xf32>
    %77 = vector.extract_strided_slice %75 {offsets = [0, 0], sizes = [4, 8], strides = [1, 1]} : vector<4x32xf32> to vector<4x8xf32>
    %78 = vector.extract_strided_slice %75 {offsets = [0, 8], sizes = [4, 8], strides = [1, 1]} : vector<4x32xf32> to vector<4x8xf32>
    %79 = vector.extract_strided_slice %76 {offsets = [0, 16], sizes = [4, 8], strides = [1, 1]} : vector<4x32xf32> to vector<4x8xf32>
    %80 = vector.extract_strided_slice %75 {offsets = [0, 24], sizes = [4, 8], strides = [1, 1]} : vector<4x32xf32> to vector<4x8xf32>
    %81 = arith.mulf %78, %40 : vector<4x8xf32>
    %82 = arith.mulf %77, %79 : vector<4x8xf32>
    %83 = arith.addf %81, %82 : vector<4x8xf32>
    %84 = math.tanh %83 : vector<4x8xf32>
    %85 = arith.mulf %80, %84 : vector<4x8xf32>
    %86 = tpu.concatenate %85, %62 in 1 : vector<4x8xf32>, vector<4x8xf32> -> vector<4x16xf32>
    %cst_40 = arith.constant dense<0.000000e+00> : vector<4x32xf32>
    %87 = tpu.matmul %86, %2, %cst_40 {dimension_numbers = #tpu.dot_dimension_numbers<[1], [0], [0], [1], [0, 0, 1, 1], [], []>} : vector<4x16xf32>, vector<16x32xf32>, vector<4x32xf32> -> vector<4x32xf32>
    %88 = arith.addf %87, %12 : vector<4x32xf32>
    %cst_41 = arith.constant 0.000000e+00 : f32
    %89 = vector.broadcast %cst_41 : f32 to vector<4x32xf32>
    %90 = arith.subf %89, %88 : vector<4x32xf32>
    %91 = math.exp %90 : vector<4x32xf32>
    %cst_42 = arith.constant 1.000000e+00 : f32
    %92 = vector.broadcast %cst_42 : f32 to vector<4x32xf32>
    %93 = arith.addf %92, %91 : vector<4x32xf32>
    %cst_43 = arith.constant 1.000000e+00 : f32
    %94 = vector.broadcast %cst_43 : f32 to vector<4x32xf32>
    %95 = arith.divf %94, %93 : vector<4x32xf32>
    %96 = math.tanh %88 : vector<4x32xf32>
    %97 = vector.extract_strided_slice %95 {offsets = [0, 0], sizes = [4, 8], strides = [1, 1]} : vector<4x32xf32> to vector<4x8xf32>
    %98 = vector.extract_strided_slice %95 {offsets = [0, 8], sizes = [4, 8], strides = [1, 1]} : vector<4x32xf32> to vector<4x8xf32>
    %99 = vector.extract_strided_slice %96 {offsets = [0, 16], sizes = [4, 8], strides = [1, 1]} : vector<4x32xf32> to vector<4x8xf32>
    %100 = vector.extract_strided_slice %95 {offsets = [0, 24], sizes = [4, 8], strides = [1, 1]} : vector<4x32xf32> to vector<4x8xf32>
    %101 = arith.mulf %98, %60 : vector<4x8xf32>
    %102 = arith.mulf %97, %99 : vector<4x8xf32>
    %103 = arith.addf %101, %102 : vector<4x8xf32>
    %104 = math.tanh %103 : vector<4x8xf32>
    %105 = arith.mulf %100, %104 : vector<4x8xf32>
    %c2 = arith.constant 2 : index
    %c0_44 = arith.constant 0 : index
    %c0_45 = arith.constant 0 : index
    %106 = vector.load %arg0[%c2, %c0_44, %c0_45] : memref<8x4x8xf32, #tpu.memory_space<vmem>>, vector<1x4x8xf32>
    %107 = vector.shape_cast %106 : vector<1x4x8xf32> to vector<4x8xf32>
    %cst_46 = arith.constant dense<0.000000e+00> : vector<4x32xf32>
    %108 = tpu.matmul %107, %0, %cst_46 {dimension_numbers = #tpu.dot_dimension_numbers<[1], [0], [0], [1], [0, 0, 1, 1], [], []>} : vector<4x8xf32>, vector<8x32xf32>, vector<4x32xf32> -> vector<4x32xf32>
    %109 = arith.addf %108, %9 : vector<4x32xf32>
    %cst_47 = arith.constant dense<0.000000e+00> : vector<4x32xf32>
    %110 = tpu.matmul %85, %1, %cst_47 {dimension_numbers = #tpu.dot_dimension_numbers<[1], [0], [0], [1], [0, 0, 1, 1], [], []>} : vector<4x8xf32>, vector<8x32xf32>, vector<4x32xf32> -> vector<4x32xf32>
    %111 = arith.addf %109, %110 : vector<4x32xf32>
    %cst_48 = arith.constant 0.000000e+00 : f32
    %112 = vector.broadcast %cst_48 : f32 to vector<4x32xf32>
    %113 = arith.subf %112, %111 : vector<4x32xf32>
    %114 = math.exp %113 : vector<4x32xf32>
    %cst_49 = arith.constant 1.000000e+00 : f32
    %115 = vector.broadcast %cst_49 : f32 to vector<4x32xf32>
    %116 = arith.addf %115, %114 : vector<4x32xf32>
    %cst_50 = arith.constant 1.000000e+00 : f32
    %117 = vector.broadcast %cst_50 : f32 to vector<4x32xf32>
    %118 = arith.divf %117, %116 : vector<4x32xf32>
    %119 = math.tanh %111 : vector<4x32xf32>
    %120 = vector.extract_strided_slice %118 {offsets = [0, 0], sizes = [4, 8], strides = [1, 1]} : vector<4x32xf32> to vector<4x8xf32>
    %121 = vector.extract_strided_slice %118 {offsets = [0, 8], sizes = [4, 8], strides = [1, 1]} : vector<4x32xf32> to vector<4x8xf32>
    %122 = vector.extract_strided_slice %119 {offsets = [0, 16], sizes = [4, 8], strides = [1, 1]} : vector<4x32xf32> to vector<4x8xf32>
    %123 = vector.extract_strided_slice %118 {offsets = [0, 24], sizes = [4, 8], strides = [1, 1]} : vector<4x32xf32> to vector<4x8xf32>
    %124 = arith.mulf %121, %83 : vector<4x8xf32>
    %125 = arith.mulf %120, %122 : vector<4x8xf32>
    %126 = arith.addf %124, %125 : vector<4x8xf32>
    %127 = math.tanh %126 : vector<4x8xf32>
    %128 = arith.mulf %123, %127 : vector<4x8xf32>
    %129 = tpu.concatenate %128, %105 in 1 : vector<4x8xf32>, vector<4x8xf32> -> vector<4x16xf32>
    %cst_51 = arith.constant dense<0.000000e+00> : vector<4x32xf32>
    %130 = tpu.matmul %129, %2, %cst_51 {dimension_numbers = #tpu.dot_dimension_numbers<[1], [0], [0], [1], [0, 0, 1, 1], [], []>} : vector<4x16xf32>, vector<16x32xf32>, vector<4x32xf32> -> vector<4x32xf32>
    %131 = arith.addf %130, %12 : vector<4x32xf32>
    %cst_52 = arith.constant 0.000000e+00 : f32
    %132 = vector.broadcast %cst_52 : f32 to vector<4x32xf32>
    %133 = arith.subf %132, %131 : vector<4x32xf32>
    %134 = math.exp %133 : vector<4x32xf32>
    %cst_53 = arith.constant 1.000000e+00 : f32
    %135 = vector.broadcast %cst_53 : f32 to vector<4x32xf32>
    %136 = arith.addf %135, %134 : vector<4x32xf32>
    %cst_54 = arith.constant 1.000000e+00 : f32
    %137 = vector.broadcast %cst_54 : f32 to vector<4x32xf32>
    %138 = arith.divf %137, %136 : vector<4x32xf32>
    %139 = math.tanh %131 : vector<4x32xf32>
    %140 = vector.extract_strided_slice %138 {offsets = [0, 0], sizes = [4, 8], strides = [1, 1]} : vector<4x32xf32> to vector<4x8xf32>
    %141 = vector.extract_strided_slice %138 {offsets = [0, 8], sizes = [4, 8], strides = [1, 1]} : vector<4x32xf32> to vector<4x8xf32>
    %142 = vector.extract_strided_slice %139 {offsets = [0, 16], sizes = [4, 8], strides = [1, 1]} : vector<4x32xf32> to vector<4x8xf32>
    %143 = vector.extract_strided_slice %138 {offsets = [0, 24], sizes = [4, 8], strides = [1, 1]} : vector<4x32xf32> to vector<4x8xf32>
    %144 = arith.mulf %141, %103 : vector<4x8xf32>
    %145 = arith.mulf %140, %142 : vector<4x8xf32>
    %146 = arith.addf %144, %145 : vector<4x8xf32>
    %147 = math.tanh %146 : vector<4x8xf32>
    %148 = arith.mulf %143, %147 : vector<4x8xf32>
    %c3 = arith.constant 3 : index
    %c0_55 = arith.constant 0 : index
    %c0_56 = arith.constant 0 : index
    %149 = vector.load %arg0[%c3, %c0_55, %c0_56] : memref<8x4x8xf32, #tpu.memory_space<vmem>>, vector<1x4x8xf32>
    %150 = vector.shape_cast %149 : vector<1x4x8xf32> to vector<4x8xf32>
    %cst_57 = arith.constant dense<0.000000e+00> : vector<4x32xf32>
    %151 = tpu.matmul %150, %0, %cst_57 {dimension_numbers = #tpu.dot_dimension_numbers<[1], [0], [0], [1], [0, 0, 1, 1], [], []>} : vector<4x8xf32>, vector<8x32xf32>, vector<4x32xf32> -> vector<4x32xf32>
    %152 = arith.addf %151, %9 : vector<4x32xf32>
    %cst_58 = arith.constant dense<0.000000e+00> : vector<4x32xf32>
    %153 = tpu.matmul %128, %1, %cst_58 {dimension_numbers = #tpu.dot_dimension_numbers<[1], [0], [0], [1], [0, 0, 1, 1], [], []>} : vector<4x8xf32>, vector<8x32xf32>, vector<4x32xf32> -> vector<4x32xf32>
    %154 = arith.addf %152, %153 : vector<4x32xf32>
    %cst_59 = arith.constant 0.000000e+00 : f32
    %155 = vector.broadcast %cst_59 : f32 to vector<4x32xf32>
    %156 = arith.subf %155, %154 : vector<4x32xf32>
    %157 = math.exp %156 : vector<4x32xf32>
    %cst_60 = arith.constant 1.000000e+00 : f32
    %158 = vector.broadcast %cst_60 : f32 to vector<4x32xf32>
    %159 = arith.addf %158, %157 : vector<4x32xf32>
    %cst_61 = arith.constant 1.000000e+00 : f32
    %160 = vector.broadcast %cst_61 : f32 to vector<4x32xf32>
    %161 = arith.divf %160, %159 : vector<4x32xf32>
    %162 = math.tanh %154 : vector<4x32xf32>
    %163 = vector.extract_strided_slice %161 {offsets = [0, 0], sizes = [4, 8], strides = [1, 1]} : vector<4x32xf32> to vector<4x8xf32>
    %164 = vector.extract_strided_slice %161 {offsets = [0, 8], sizes = [4, 8], strides = [1, 1]} : vector<4x32xf32> to vector<4x8xf32>
    %165 = vector.extract_strided_slice %162 {offsets = [0, 16], sizes = [4, 8], strides = [1, 1]} : vector<4x32xf32> to vector<4x8xf32>
    %166 = vector.extract_strided_slice %161 {offsets = [0, 24], sizes = [4, 8], strides = [1, 1]} : vector<4x32xf32> to vector<4x8xf32>
    %167 = arith.mulf %164, %126 : vector<4x8xf32>
    %168 = arith.mulf %163, %165 : vector<4x8xf32>
    %169 = arith.addf %167, %168 : vector<4x8xf32>
    %170 = math.tanh %169 : vector<4x8xf32>
    %171 = arith.mulf %166, %170 : vector<4x8xf32>
    %172 = tpu.concatenate %171, %148 in 1 : vector<4x8xf32>, vector<4x8xf32> -> vector<4x16xf32>
    %cst_62 = arith.constant dense<0.000000e+00> : vector<4x32xf32>
    %173 = tpu.matmul %172, %2, %cst_62 {dimension_numbers = #tpu.dot_dimension_numbers<[1], [0], [0], [1], [0, 0, 1, 1], [], []>} : vector<4x16xf32>, vector<16x32xf32>, vector<4x32xf32> -> vector<4x32xf32>
    %174 = arith.addf %173, %12 : vector<4x32xf32>
    %cst_63 = arith.constant 0.000000e+00 : f32
    %175 = vector.broadcast %cst_63 : f32 to vector<4x32xf32>
    %176 = arith.subf %175, %174 : vector<4x32xf32>
    %177 = math.exp %176 : vector<4x32xf32>
    %cst_64 = arith.constant 1.000000e+00 : f32
    %178 = vector.broadcast %cst_64 : f32 to vector<4x32xf32>
    %179 = arith.addf %178, %177 : vector<4x32xf32>
    %cst_65 = arith.constant 1.000000e+00 : f32
    %180 = vector.broadcast %cst_65 : f32 to vector<4x32xf32>
    %181 = arith.divf %180, %179 : vector<4x32xf32>
    %182 = math.tanh %174 : vector<4x32xf32>
    %183 = vector.extract_strided_slice %181 {offsets = [0, 0], sizes = [4, 8], strides = [1, 1]} : vector<4x32xf32> to vector<4x8xf32>
    %184 = vector.extract_strided_slice %181 {offsets = [0, 8], sizes = [4, 8], strides = [1, 1]} : vector<4x32xf32> to vector<4x8xf32>
    %185 = vector.extract_strided_slice %182 {offsets = [0, 16], sizes = [4, 8], strides = [1, 1]} : vector<4x32xf32> to vector<4x8xf32>
    %186 = vector.extract_strided_slice %181 {offsets = [0, 24], sizes = [4, 8], strides = [1, 1]} : vector<4x32xf32> to vector<4x8xf32>
    %187 = arith.mulf %184, %146 : vector<4x8xf32>
    %188 = arith.mulf %183, %185 : vector<4x8xf32>
    %189 = arith.addf %187, %188 : vector<4x8xf32>
    %190 = math.tanh %189 : vector<4x8xf32>
    %191 = arith.mulf %186, %190 : vector<4x8xf32>
    %c4 = arith.constant 4 : index
    %c0_66 = arith.constant 0 : index
    %c0_67 = arith.constant 0 : index
    %192 = vector.load %arg0[%c4, %c0_66, %c0_67] : memref<8x4x8xf32, #tpu.memory_space<vmem>>, vector<1x4x8xf32>
    %193 = vector.shape_cast %192 : vector<1x4x8xf32> to vector<4x8xf32>
    %cst_68 = arith.constant dense<0.000000e+00> : vector<4x32xf32>
    %194 = tpu.matmul %193, %0, %cst_68 {dimension_numbers = #tpu.dot_dimension_numbers<[1], [0], [0], [1], [0, 0, 1, 1], [], []>} : vector<4x8xf32>, vector<8x32xf32>, vector<4x32xf32> -> vector<4x32xf32>
    %195 = arith.addf %194, %9 : vector<4x32xf32>
    %cst_69 = arith.constant dense<0.000000e+00> : vector<4x32xf32>
    %196 = tpu.matmul %171, %1, %cst_69 {dimension_numbers = #tpu.dot_dimension_numbers<[1], [0], [0], [1], [0, 0, 1, 1], [], []>} : vector<4x8xf32>, vector<8x32xf32>, vector<4x32xf32> -> vector<4x32xf32>
    %197 = arith.addf %195, %196 : vector<4x32xf32>
    %cst_70 = arith.constant 0.000000e+00 : f32
    %198 = vector.broadcast %cst_70 : f32 to vector<4x32xf32>
    %199 = arith.subf %198, %197 : vector<4x32xf32>
    %200 = math.exp %199 : vector<4x32xf32>
    %cst_71 = arith.constant 1.000000e+00 : f32
    %201 = vector.broadcast %cst_71 : f32 to vector<4x32xf32>
    %202 = arith.addf %201, %200 : vector<4x32xf32>
    %cst_72 = arith.constant 1.000000e+00 : f32
    %203 = vector.broadcast %cst_72 : f32 to vector<4x32xf32>
    %204 = arith.divf %203, %202 : vector<4x32xf32>
    %205 = math.tanh %197 : vector<4x32xf32>
    %206 = vector.extract_strided_slice %204 {offsets = [0, 0], sizes = [4, 8], strides = [1, 1]} : vector<4x32xf32> to vector<4x8xf32>
    %207 = vector.extract_strided_slice %204 {offsets = [0, 8], sizes = [4, 8], strides = [1, 1]} : vector<4x32xf32> to vector<4x8xf32>
    %208 = vector.extract_strided_slice %205 {offsets = [0, 16], sizes = [4, 8], strides = [1, 1]} : vector<4x32xf32> to vector<4x8xf32>
    %209 = vector.extract_strided_slice %204 {offsets = [0, 24], sizes = [4, 8], strides = [1, 1]} : vector<4x32xf32> to vector<4x8xf32>
    %210 = arith.mulf %207, %169 : vector<4x8xf32>
    %211 = arith.mulf %206, %208 : vector<4x8xf32>
    %212 = arith.addf %210, %211 : vector<4x8xf32>
    %213 = math.tanh %212 : vector<4x8xf32>
    %214 = arith.mulf %209, %213 : vector<4x8xf32>
    %215 = tpu.concatenate %214, %191 in 1 : vector<4x8xf32>, vector<4x8xf32> -> vector<4x16xf32>
    %cst_73 = arith.constant dense<0.000000e+00> : vector<4x32xf32>
    %216 = tpu.matmul %215, %2, %cst_73 {dimension_numbers = #tpu.dot_dimension_numbers<[1], [0], [0], [1], [0, 0, 1, 1], [], []>} : vector<4x16xf32>, vector<16x32xf32>, vector<4x32xf32> -> vector<4x32xf32>
    %217 = arith.addf %216, %12 : vector<4x32xf32>
    %cst_74 = arith.constant 0.000000e+00 : f32
    %218 = vector.broadcast %cst_74 : f32 to vector<4x32xf32>
    %219 = arith.subf %218, %217 : vector<4x32xf32>
    %220 = math.exp %219 : vector<4x32xf32>
    %cst_75 = arith.constant 1.000000e+00 : f32
    %221 = vector.broadcast %cst_75 : f32 to vector<4x32xf32>
    %222 = arith.addf %221, %220 : vector<4x32xf32>
    %cst_76 = arith.constant 1.000000e+00 : f32
    %223 = vector.broadcast %cst_76 : f32 to vector<4x32xf32>
    %224 = arith.divf %223, %222 : vector<4x32xf32>
    %225 = math.tanh %217 : vector<4x32xf32>
    %226 = vector.extract_strided_slice %224 {offsets = [0, 0], sizes = [4, 8], strides = [1, 1]} : vector<4x32xf32> to vector<4x8xf32>
    %227 = vector.extract_strided_slice %224 {offsets = [0, 8], sizes = [4, 8], strides = [1, 1]} : vector<4x32xf32> to vector<4x8xf32>
    %228 = vector.extract_strided_slice %225 {offsets = [0, 16], sizes = [4, 8], strides = [1, 1]} : vector<4x32xf32> to vector<4x8xf32>
    %229 = vector.extract_strided_slice %224 {offsets = [0, 24], sizes = [4, 8], strides = [1, 1]} : vector<4x32xf32> to vector<4x8xf32>
    %230 = arith.mulf %227, %189 : vector<4x8xf32>
    %231 = arith.mulf %226, %228 : vector<4x8xf32>
    %232 = arith.addf %230, %231 : vector<4x8xf32>
    %233 = math.tanh %232 : vector<4x8xf32>
    %234 = arith.mulf %229, %233 : vector<4x8xf32>
    %c5 = arith.constant 5 : index
    %c0_77 = arith.constant 0 : index
    %c0_78 = arith.constant 0 : index
    %235 = vector.load %arg0[%c5, %c0_77, %c0_78] : memref<8x4x8xf32, #tpu.memory_space<vmem>>, vector<1x4x8xf32>
    %236 = vector.shape_cast %235 : vector<1x4x8xf32> to vector<4x8xf32>
    %cst_79 = arith.constant dense<0.000000e+00> : vector<4x32xf32>
    %237 = tpu.matmul %236, %0, %cst_79 {dimension_numbers = #tpu.dot_dimension_numbers<[1], [0], [0], [1], [0, 0, 1, 1], [], []>} : vector<4x8xf32>, vector<8x32xf32>, vector<4x32xf32> -> vector<4x32xf32>
    %238 = arith.addf %237, %9 : vector<4x32xf32>
    %cst_80 = arith.constant dense<0.000000e+00> : vector<4x32xf32>
    %239 = tpu.matmul %214, %1, %cst_80 {dimension_numbers = #tpu.dot_dimension_numbers<[1], [0], [0], [1], [0, 0, 1, 1], [], []>} : vector<4x8xf32>, vector<8x32xf32>, vector<4x32xf32> -> vector<4x32xf32>
    %240 = arith.addf %238, %239 : vector<4x32xf32>
    %cst_81 = arith.constant 0.000000e+00 : f32
    %241 = vector.broadcast %cst_81 : f32 to vector<4x32xf32>
    %242 = arith.subf %241, %240 : vector<4x32xf32>
    %243 = math.exp %242 : vector<4x32xf32>
    %cst_82 = arith.constant 1.000000e+00 : f32
    %244 = vector.broadcast %cst_82 : f32 to vector<4x32xf32>
    %245 = arith.addf %244, %243 : vector<4x32xf32>
    %cst_83 = arith.constant 1.000000e+00 : f32
    %246 = vector.broadcast %cst_83 : f32 to vector<4x32xf32>
    %247 = arith.divf %246, %245 : vector<4x32xf32>
    %248 = math.tanh %240 : vector<4x32xf32>
    %249 = vector.extract_strided_slice %247 {offsets = [0, 0], sizes = [4, 8], strides = [1, 1]} : vector<4x32xf32> to vector<4x8xf32>
    %250 = vector.extract_strided_slice %247 {offsets = [0, 8], sizes = [4, 8], strides = [1, 1]} : vector<4x32xf32> to vector<4x8xf32>
    %251 = vector.extract_strided_slice %248 {offsets = [0, 16], sizes = [4, 8], strides = [1, 1]} : vector<4x32xf32> to vector<4x8xf32>
    %252 = vector.extract_strided_slice %247 {offsets = [0, 24], sizes = [4, 8], strides = [1, 1]} : vector<4x32xf32> to vector<4x8xf32>
    %253 = arith.mulf %250, %212 : vector<4x8xf32>
    %254 = arith.mulf %249, %251 : vector<4x8xf32>
    %255 = arith.addf %253, %254 : vector<4x8xf32>
    %256 = math.tanh %255 : vector<4x8xf32>
    %257 = arith.mulf %252, %256 : vector<4x8xf32>
    %258 = tpu.concatenate %257, %234 in 1 : vector<4x8xf32>, vector<4x8xf32> -> vector<4x16xf32>
    %cst_84 = arith.constant dense<0.000000e+00> : vector<4x32xf32>
    %259 = tpu.matmul %258, %2, %cst_84 {dimension_numbers = #tpu.dot_dimension_numbers<[1], [0], [0], [1], [0, 0, 1, 1], [], []>} : vector<4x16xf32>, vector<16x32xf32>, vector<4x32xf32> -> vector<4x32xf32>
    %260 = arith.addf %259, %12 : vector<4x32xf32>
    %cst_85 = arith.constant 0.000000e+00 : f32
    %261 = vector.broadcast %cst_85 : f32 to vector<4x32xf32>
    %262 = arith.subf %261, %260 : vector<4x32xf32>
    %263 = math.exp %262 : vector<4x32xf32>
    %cst_86 = arith.constant 1.000000e+00 : f32
    %264 = vector.broadcast %cst_86 : f32 to vector<4x32xf32>
    %265 = arith.addf %264, %263 : vector<4x32xf32>
    %cst_87 = arith.constant 1.000000e+00 : f32
    %266 = vector.broadcast %cst_87 : f32 to vector<4x32xf32>
    %267 = arith.divf %266, %265 : vector<4x32xf32>
    %268 = math.tanh %260 : vector<4x32xf32>
    %269 = vector.extract_strided_slice %267 {offsets = [0, 0], sizes = [4, 8], strides = [1, 1]} : vector<4x32xf32> to vector<4x8xf32>
    %270 = vector.extract_strided_slice %267 {offsets = [0, 8], sizes = [4, 8], strides = [1, 1]} : vector<4x32xf32> to vector<4x8xf32>
    %271 = vector.extract_strided_slice %268 {offsets = [0, 16], sizes = [4, 8], strides = [1, 1]} : vector<4x32xf32> to vector<4x8xf32>
    %272 = vector.extract_strided_slice %267 {offsets = [0, 24], sizes = [4, 8], strides = [1, 1]} : vector<4x32xf32> to vector<4x8xf32>
    %273 = arith.mulf %270, %232 : vector<4x8xf32>
    %274 = arith.mulf %269, %271 : vector<4x8xf32>
    %275 = arith.addf %273, %274 : vector<4x8xf32>
    %276 = math.tanh %275 : vector<4x8xf32>
    %277 = arith.mulf %272, %276 : vector<4x8xf32>
    %c6 = arith.constant 6 : index
    %c0_88 = arith.constant 0 : index
    %c0_89 = arith.constant 0 : index
    %278 = vector.load %arg0[%c6, %c0_88, %c0_89] : memref<8x4x8xf32, #tpu.memory_space<vmem>>, vector<1x4x8xf32>
    %279 = vector.shape_cast %278 : vector<1x4x8xf32> to vector<4x8xf32>
    %cst_90 = arith.constant dense<0.000000e+00> : vector<4x32xf32>
    %280 = tpu.matmul %279, %0, %cst_90 {dimension_numbers = #tpu.dot_dimension_numbers<[1], [0], [0], [1], [0, 0, 1, 1], [], []>} : vector<4x8xf32>, vector<8x32xf32>, vector<4x32xf32> -> vector<4x32xf32>
    %281 = arith.addf %280, %9 : vector<4x32xf32>
    %cst_91 = arith.constant dense<0.000000e+00> : vector<4x32xf32>
    %282 = tpu.matmul %257, %1, %cst_91 {dimension_numbers = #tpu.dot_dimension_numbers<[1], [0], [0], [1], [0, 0, 1, 1], [], []>} : vector<4x8xf32>, vector<8x32xf32>, vector<4x32xf32> -> vector<4x32xf32>
    %283 = arith.addf %281, %282 : vector<4x32xf32>
    %cst_92 = arith.constant 0.000000e+00 : f32
    %284 = vector.broadcast %cst_92 : f32 to vector<4x32xf32>
    %285 = arith.subf %284, %283 : vector<4x32xf32>
    %286 = math.exp %285 : vector<4x32xf32>
    %cst_93 = arith.constant 1.000000e+00 : f32
    %287 = vector.broadcast %cst_93 : f32 to vector<4x32xf32>
    %288 = arith.addf %287, %286 : vector<4x32xf32>
    %cst_94 = arith.constant 1.000000e+00 : f32
    %289 = vector.broadcast %cst_94 : f32 to vector<4x32xf32>
    %290 = arith.divf %289, %288 : vector<4x32xf32>
    %291 = math.tanh %283 : vector<4x32xf32>
    %292 = vector.extract_strided_slice %290 {offsets = [0, 0], sizes = [4, 8], strides = [1, 1]} : vector<4x32xf32> to vector<4x8xf32>
    %293 = vector.extract_strided_slice %290 {offsets = [0, 8], sizes = [4, 8], strides = [1, 1]} : vector<4x32xf32> to vector<4x8xf32>
    %294 = vector.extract_strided_slice %291 {offsets = [0, 16], sizes = [4, 8], strides = [1, 1]} : vector<4x32xf32> to vector<4x8xf32>
    %295 = vector.extract_strided_slice %290 {offsets = [0, 24], sizes = [4, 8], strides = [1, 1]} : vector<4x32xf32> to vector<4x8xf32>
    %296 = arith.mulf %293, %255 : vector<4x8xf32>
    %297 = arith.mulf %292, %294 : vector<4x8xf32>
    %298 = arith.addf %296, %297 : vector<4x8xf32>
    %299 = math.tanh %298 : vector<4x8xf32>
    %300 = arith.mulf %295, %299 : vector<4x8xf32>
    %301 = tpu.concatenate %300, %277 in 1 : vector<4x8xf32>, vector<4x8xf32> -> vector<4x16xf32>
    %cst_95 = arith.constant dense<0.000000e+00> : vector<4x32xf32>
    %302 = tpu.matmul %301, %2, %cst_95 {dimension_numbers = #tpu.dot_dimension_numbers<[1], [0], [0], [1], [0, 0, 1, 1], [], []>} : vector<4x16xf32>, vector<16x32xf32>, vector<4x32xf32> -> vector<4x32xf32>
    %303 = arith.addf %302, %12 : vector<4x32xf32>
    %cst_96 = arith.constant 0.000000e+00 : f32
    %304 = vector.broadcast %cst_96 : f32 to vector<4x32xf32>
    %305 = arith.subf %304, %303 : vector<4x32xf32>
    %306 = math.exp %305 : vector<4x32xf32>
    %cst_97 = arith.constant 1.000000e+00 : f32
    %307 = vector.broadcast %cst_97 : f32 to vector<4x32xf32>
    %308 = arith.addf %307, %306 : vector<4x32xf32>
    %cst_98 = arith.constant 1.000000e+00 : f32
    %309 = vector.broadcast %cst_98 : f32 to vector<4x32xf32>
    %310 = arith.divf %309, %308 : vector<4x32xf32>
    %311 = math.tanh %303 : vector<4x32xf32>
    %312 = vector.extract_strided_slice %310 {offsets = [0, 0], sizes = [4, 8], strides = [1, 1]} : vector<4x32xf32> to vector<4x8xf32>
    %313 = vector.extract_strided_slice %310 {offsets = [0, 8], sizes = [4, 8], strides = [1, 1]} : vector<4x32xf32> to vector<4x8xf32>
    %314 = vector.extract_strided_slice %311 {offsets = [0, 16], sizes = [4, 8], strides = [1, 1]} : vector<4x32xf32> to vector<4x8xf32>
    %315 = vector.extract_strided_slice %310 {offsets = [0, 24], sizes = [4, 8], strides = [1, 1]} : vector<4x32xf32> to vector<4x8xf32>
    %316 = arith.mulf %313, %275 : vector<4x8xf32>
    %317 = arith.mulf %312, %314 : vector<4x8xf32>
    %318 = arith.addf %316, %317 : vector<4x8xf32>
    %319 = math.tanh %318 : vector<4x8xf32>
    %320 = arith.mulf %315, %319 : vector<4x8xf32>
    %c7 = arith.constant 7 : index
    %c0_99 = arith.constant 0 : index
    %c0_100 = arith.constant 0 : index
    %321 = vector.load %arg0[%c7, %c0_99, %c0_100] : memref<8x4x8xf32, #tpu.memory_space<vmem>>, vector<1x4x8xf32>
    %322 = vector.shape_cast %321 : vector<1x4x8xf32> to vector<4x8xf32>
    %cst_101 = arith.constant dense<0.000000e+00> : vector<4x32xf32>
    %323 = tpu.matmul %322, %0, %cst_101 {dimension_numbers = #tpu.dot_dimension_numbers<[1], [0], [0], [1], [0, 0, 1, 1], [], []>} : vector<4x8xf32>, vector<8x32xf32>, vector<4x32xf32> -> vector<4x32xf32>
    %324 = arith.addf %323, %9 : vector<4x32xf32>
    %cst_102 = arith.constant dense<0.000000e+00> : vector<4x32xf32>
    %325 = tpu.matmul %300, %1, %cst_102 {dimension_numbers = #tpu.dot_dimension_numbers<[1], [0], [0], [1], [0, 0, 1, 1], [], []>} : vector<4x8xf32>, vector<8x32xf32>, vector<4x32xf32> -> vector<4x32xf32>
    %326 = arith.addf %324, %325 : vector<4x32xf32>
    %cst_103 = arith.constant 0.000000e+00 : f32
    %327 = vector.broadcast %cst_103 : f32 to vector<4x32xf32>
    %328 = arith.subf %327, %326 : vector<4x32xf32>
    %329 = math.exp %328 : vector<4x32xf32>
    %cst_104 = arith.constant 1.000000e+00 : f32
    %330 = vector.broadcast %cst_104 : f32 to vector<4x32xf32>
    %331 = arith.addf %330, %329 : vector<4x32xf32>
    %cst_105 = arith.constant 1.000000e+00 : f32
    %332 = vector.broadcast %cst_105 : f32 to vector<4x32xf32>
    %333 = arith.divf %332, %331 : vector<4x32xf32>
    %334 = math.tanh %326 : vector<4x32xf32>
    %335 = vector.extract_strided_slice %333 {offsets = [0, 0], sizes = [4, 8], strides = [1, 1]} : vector<4x32xf32> to vector<4x8xf32>
    %336 = vector.extract_strided_slice %333 {offsets = [0, 8], sizes = [4, 8], strides = [1, 1]} : vector<4x32xf32> to vector<4x8xf32>
    %337 = vector.extract_strided_slice %334 {offsets = [0, 16], sizes = [4, 8], strides = [1, 1]} : vector<4x32xf32> to vector<4x8xf32>
    %338 = vector.extract_strided_slice %333 {offsets = [0, 24], sizes = [4, 8], strides = [1, 1]} : vector<4x32xf32> to vector<4x8xf32>
    %339 = arith.mulf %336, %298 : vector<4x8xf32>
    %340 = arith.mulf %335, %337 : vector<4x8xf32>
    %341 = arith.addf %339, %340 : vector<4x8xf32>
    %342 = math.tanh %341 : vector<4x8xf32>
    %343 = arith.mulf %338, %342 : vector<4x8xf32>
    %344 = tpu.concatenate %343, %320 in 1 : vector<4x8xf32>, vector<4x8xf32> -> vector<4x16xf32>
    %cst_106 = arith.constant dense<0.000000e+00> : vector<4x32xf32>
    %345 = tpu.matmul %344, %2, %cst_106 {dimension_numbers = #tpu.dot_dimension_numbers<[1], [0], [0], [1], [0, 0, 1, 1], [], []>} : vector<4x16xf32>, vector<16x32xf32>, vector<4x32xf32> -> vector<4x32xf32>
    %346 = arith.addf %345, %12 : vector<4x32xf32>
    %cst_107 = arith.constant 0.000000e+00 : f32
    %347 = vector.broadcast %cst_107 : f32 to vector<4x32xf32>
    %348 = arith.subf %347, %346 : vector<4x32xf32>
    %349 = math.exp %348 : vector<4x32xf32>
    %cst_108 = arith.constant 1.000000e+00 : f32
    %350 = vector.broadcast %cst_108 : f32 to vector<4x32xf32>
    %351 = arith.addf %350, %349 : vector<4x32xf32>
    %cst_109 = arith.constant 1.000000e+00 : f32
    %352 = vector.broadcast %cst_109 : f32 to vector<4x32xf32>
    %353 = arith.divf %352, %351 : vector<4x32xf32>
    %354 = math.tanh %346 : vector<4x32xf32>
    %355 = vector.extract_strided_slice %353 {offsets = [0, 0], sizes = [4, 8], strides = [1, 1]} : vector<4x32xf32> to vector<4x8xf32>
    %356 = vector.extract_strided_slice %353 {offsets = [0, 8], sizes = [4, 8], strides = [1, 1]} : vector<4x32xf32> to vector<4x8xf32>
    %357 = vector.extract_strided_slice %354 {offsets = [0, 16], sizes = [4, 8], strides = [1, 1]} : vector<4x32xf32> to vector<4x8xf32>
    %358 = vector.extract_strided_slice %353 {offsets = [0, 24], sizes = [4, 8], strides = [1, 1]} : vector<4x32xf32> to vector<4x8xf32>
    %359 = arith.mulf %356, %318 : vector<4x8xf32>
    %360 = arith.mulf %355, %357 : vector<4x8xf32>
    %361 = arith.addf %359, %360 : vector<4x8xf32>
    %362 = math.tanh %361 : vector<4x8xf32>
    %363 = arith.mulf %358, %362 : vector<4x8xf32>
    %c0_110 = arith.constant 0 : index
    %c0_111 = arith.constant 0 : index
    %364 = vector.load %arg6[%c0_110, %c0_111] : memref<8x8xf32, #tpu.memory_space<vmem>>, vector<8x8xf32>
    %cst_112 = arith.constant dense<0.000000e+00> : vector<4x8xf32>
    %365 = tpu.matmul %363, %364, %cst_112 {dimension_numbers = #tpu.dot_dimension_numbers<[1], [0], [0], [1], [0, 0, 1, 1], [], []>} : vector<4x8xf32>, vector<8x8xf32>, vector<4x8xf32> -> vector<4x8xf32>
    %c0_113 = arith.constant 0 : index
    %c0_114 = arith.constant 0 : index
    %366 = vector.load %arg7[%c0_113, %c0_114] : memref<1x8xf32, #tpu.memory_space<vmem>>, vector<1x8xf32>
    %367 = vector.broadcast %366 : vector<1x8xf32> to vector<4x8xf32>
    %368 = arith.addf %365, %367 : vector<4x8xf32>
    %cst_115 = arith.constant 0.000000e+00 : f32
    %369 = vector.broadcast %cst_115 : f32 to vector<4x8xf32>
    %370 = arith.maximumf %368, %369 : vector<4x8xf32>
    %c0_116 = arith.constant 0 : index
    %c0_117 = arith.constant 0 : index
    %371 = vector.load %arg8[%c0_116, %c0_117] : memref<8x4xf32, #tpu.memory_space<vmem>>, vector<8x4xf32>
    %cst_118 = arith.constant dense<0.000000e+00> : vector<4x4xf32>
    %372 = tpu.matmul %370, %371, %cst_118 {dimension_numbers = #tpu.dot_dimension_numbers<[1], [0], [0], [1], [0, 0, 1, 1], [], []>} : vector<4x8xf32>, vector<8x4xf32>, vector<4x4xf32> -> vector<4x4xf32>
    %c0_119 = arith.constant 0 : index
    %c0_120 = arith.constant 0 : index
    %373 = vector.load %arg9[%c0_119, %c0_120] : memref<1x4xf32, #tpu.memory_space<vmem>>, vector<1x4xf32>
    %374 = vector.broadcast %373 : vector<1x4xf32> to vector<4x4xf32>
    %375 = arith.addf %372, %374 : vector<4x4xf32>
    %c0_121 = arith.constant 0 : index
    %c0_122 = arith.constant 0 : index
    %376 = vector.load %arg10[%c0_121, %c0_122] : memref<4x8xf32, #tpu.memory_space<vmem>>, vector<4x8xf32>
    %cst_123 = arith.constant dense<0.000000e+00> : vector<4x8xf32>
    %377 = tpu.matmul %375, %376, %cst_123 {dimension_numbers = #tpu.dot_dimension_numbers<[1], [0], [0], [1], [0, 0, 1, 1], [], []>} : vector<4x4xf32>, vector<4x8xf32>, vector<4x8xf32> -> vector<4x8xf32>
    %c0_124 = arith.constant 0 : index
    %c0_125 = arith.constant 0 : index
    %378 = vector.load %arg11[%c0_124, %c0_125] : memref<1x8xf32, #tpu.memory_space<vmem>>, vector<1x8xf32>
    %379 = vector.broadcast %378 : vector<1x8xf32> to vector<4x8xf32>
    %380 = arith.addf %377, %379 : vector<4x8xf32>
    %cst_126 = arith.constant 0.000000e+00 : f32
    %381 = vector.broadcast %cst_126 : f32 to vector<4x8xf32>
    %382 = arith.maximumf %380, %381 : vector<4x8xf32>
    %c0_127 = arith.constant 0 : index
    %c0_128 = arith.constant 0 : index
    %383 = vector.load %arg12[%c0_127, %c0_128] : memref<8x8xf32, #tpu.memory_space<vmem>>, vector<8x8xf32>
    %cst_129 = arith.constant dense<0.000000e+00> : vector<4x8xf32>
    %384 = tpu.matmul %382, %383, %cst_129 {dimension_numbers = #tpu.dot_dimension_numbers<[1], [0], [0], [1], [0, 0, 1, 1], [], []>} : vector<4x8xf32>, vector<8x8xf32>, vector<4x8xf32> -> vector<4x8xf32>
    %c0_130 = arith.constant 0 : index
    %c0_131 = arith.constant 0 : index
    %385 = vector.load %arg13[%c0_130, %c0_131] : memref<1x8xf32, #tpu.memory_space<vmem>>, vector<1x8xf32>
    %386 = vector.broadcast %385 : vector<1x8xf32> to vector<4x8xf32>
    %387 = arith.addf %384, %386 : vector<4x8xf32>
    %cst_132 = arith.constant 0.000000e+00 : f32
    %388 = vector.broadcast %cst_132 : f32 to vector<4x8xf32>
    %389 = arith.maximumf %387, %388 : vector<4x8xf32>
    %c0_133 = arith.constant 0 : index
    %c0_134 = arith.constant 0 : index
    %390 = vector.load %arg14[%c0_133, %c0_134] : memref<8x8xf32, #tpu.memory_space<vmem>>, vector<8x8xf32>
    %cst_135 = arith.constant dense<0.000000e+00> : vector<4x8xf32>
    %391 = tpu.matmul %389, %390, %cst_135 {dimension_numbers = #tpu.dot_dimension_numbers<[1], [0], [0], [1], [0, 0, 1, 1], [], []>} : vector<4x8xf32>, vector<8x8xf32>, vector<4x8xf32> -> vector<4x8xf32>
    %c0_136 = arith.constant 0 : index
    %c0_137 = arith.constant 0 : index
    %392 = vector.load %arg15[%c0_136, %c0_137] : memref<1x8xf32, #tpu.memory_space<vmem>>, vector<1x8xf32>
    %393 = vector.broadcast %392 : vector<1x8xf32> to vector<4x8xf32>
    %394 = arith.addf %391, %393 : vector<4x8xf32>
    %cst_138 = arith.constant 0.000000e+00 : f32
    %395 = vector.broadcast %cst_138 : f32 to vector<4x8xf32>
    %396 = arith.maximumf %394, %395 : vector<4x8xf32>
    %c0_139 = arith.constant 0 : index
    %c0_140 = arith.constant 0 : index
    %397 = vector.load %arg16[%c0_139, %c0_140] : memref<8x4xf32, #tpu.memory_space<vmem>>, vector<8x4xf32>
    %cst_141 = arith.constant dense<0.000000e+00> : vector<4x4xf32>
    %398 = tpu.matmul %396, %397, %cst_141 {dimension_numbers = #tpu.dot_dimension_numbers<[1], [0], [0], [1], [0, 0, 1, 1], [], []>} : vector<4x8xf32>, vector<8x4xf32>, vector<4x4xf32> -> vector<4x4xf32>
    %c0_142 = arith.constant 0 : index
    %c0_143 = arith.constant 0 : index
    %399 = vector.load %arg17[%c0_142, %c0_143] : memref<1x4xf32, #tpu.memory_space<vmem>>, vector<1x4xf32>
    %400 = vector.broadcast %399 : vector<1x4xf32> to vector<4x4xf32>
    %401 = arith.addf %398, %400 : vector<4x4xf32>
    %402 = tpu.concatenate %375, %401 in 0 : vector<4x4xf32>, vector<4x4xf32> -> vector<8x4xf32>
    %c0_144 = arith.constant 0 : index
    %c0_145 = arith.constant 0 : index
    %403 = vector.load %arg18[%c0_144, %c0_145] : memref<4x32xf32, #tpu.memory_space<vmem>>, vector<4x32xf32>
    %cst_146 = arith.constant dense<0.000000e+00> : vector<8x32xf32>
    %404 = tpu.matmul %402, %403, %cst_146 {dimension_numbers = #tpu.dot_dimension_numbers<[1], [0], [0], [1], [0, 0, 1, 1], [], []>} : vector<8x4xf32>, vector<4x32xf32>, vector<8x32xf32> -> vector<8x32xf32>
    %c0_147 = arith.constant 0 : index
    %c0_148 = arith.constant 0 : index
    %405 = vector.load %arg19[%c0_147, %c0_148] : memref<1x32xf32, #tpu.memory_space<vmem>>, vector<1x32xf32>
    %406 = vector.broadcast %405 : vector<1x32xf32> to vector<8x32xf32>
    %407 = arith.addf %404, %406 : vector<8x32xf32>
    %cst_149 = arith.constant 0.000000e+00 : f32
    %408 = vector.broadcast %cst_149 : f32 to vector<8x8xf32>
    %cst_150 = arith.constant 0.000000e+00 : f32
    %409 = vector.broadcast %cst_150 : f32 to vector<4x8xf32>
    %410 = vector.extract_strided_slice %407 {offsets = [0, 0], sizes = [8, 4], strides = [1, 1]} : vector<8x32xf32> to vector<8x4xf32>
    %cst_151 = arith.constant dense<0.000000e+00> : vector<8x32xf32>
    %411 = tpu.matmul %410, %3, %cst_151 {dimension_numbers = #tpu.dot_dimension_numbers<[1], [0], [0], [1], [0, 0, 1, 1], [], []>} : vector<8x4xf32>, vector<4x32xf32>, vector<8x32xf32> -> vector<8x32xf32>
    %412 = arith.addf %411, %15 : vector<8x32xf32>
    %cst_152 = arith.constant dense<0.000000e+00> : vector<8x32xf32>
    %413 = tpu.matmul %408, %4, %cst_152 {dimension_numbers = #tpu.dot_dimension_numbers<[1], [0], [0], [1], [0, 0, 1, 1], [], []>} : vector<8x8xf32>, vector<8x32xf32>, vector<8x32xf32> -> vector<8x32xf32>
    %414 = arith.addf %412, %413 : vector<8x32xf32>
    %cst_153 = arith.constant 0.000000e+00 : f32
    %415 = vector.broadcast %cst_153 : f32 to vector<8x32xf32>
    %416 = arith.subf %415, %414 : vector<8x32xf32>
    %417 = math.exp %416 : vector<8x32xf32>
    %cst_154 = arith.constant 1.000000e+00 : f32
    %418 = vector.broadcast %cst_154 : f32 to vector<8x32xf32>
    %419 = arith.addf %418, %417 : vector<8x32xf32>
    %cst_155 = arith.constant 1.000000e+00 : f32
    %420 = vector.broadcast %cst_155 : f32 to vector<8x32xf32>
    %421 = arith.divf %420, %419 : vector<8x32xf32>
    %422 = math.tanh %414 : vector<8x32xf32>
    %423 = vector.extract_strided_slice %421 {offsets = [0, 0], sizes = [8, 8], strides = [1, 1]} : vector<8x32xf32> to vector<8x8xf32>
    %424 = vector.extract_strided_slice %421 {offsets = [0, 8], sizes = [8, 8], strides = [1, 1]} : vector<8x32xf32> to vector<8x8xf32>
    %425 = vector.extract_strided_slice %422 {offsets = [0, 16], sizes = [8, 8], strides = [1, 1]} : vector<8x32xf32> to vector<8x8xf32>
    %426 = vector.extract_strided_slice %421 {offsets = [0, 24], sizes = [8, 8], strides = [1, 1]} : vector<8x32xf32> to vector<8x8xf32>
    %427 = arith.mulf %424, %408 : vector<8x8xf32>
    %428 = arith.mulf %423, %425 : vector<8x8xf32>
    %429 = arith.addf %427, %428 : vector<8x8xf32>
    %430 = math.tanh %429 : vector<8x8xf32>
    %431 = arith.mulf %426, %430 : vector<8x8xf32>
    %432 = tpu.concatenate %431, %408 in 1 : vector<8x8xf32>, vector<8x8xf32> -> vector<8x16xf32>
    %cst_156 = arith.constant dense<0.000000e+00> : vector<8x32xf32>
    %433 = tpu.matmul %432, %5, %cst_156 {dimension_numbers = #tpu.dot_dimension_numbers<[1], [0], [0], [1], [0, 0, 1, 1], [], []>} : vector<8x16xf32>, vector<16x32xf32>, vector<8x32xf32> -> vector<8x32xf32>
    %434 = arith.addf %433, %18 : vector<8x32xf32>
    %cst_157 = arith.constant 0.000000e+00 : f32
    %435 = vector.broadcast %cst_157 : f32 to vector<8x32xf32>
    %436 = arith.subf %435, %434 : vector<8x32xf32>
    %437 = math.exp %436 : vector<8x32xf32>
    %cst_158 = arith.constant 1.000000e+00 : f32
    %438 = vector.broadcast %cst_158 : f32 to vector<8x32xf32>
    %439 = arith.addf %438, %437 : vector<8x32xf32>
    %cst_159 = arith.constant 1.000000e+00 : f32
    %440 = vector.broadcast %cst_159 : f32 to vector<8x32xf32>
    %441 = arith.divf %440, %439 : vector<8x32xf32>
    %442 = math.tanh %434 : vector<8x32xf32>
    %443 = vector.extract_strided_slice %441 {offsets = [0, 0], sizes = [8, 8], strides = [1, 1]} : vector<8x32xf32> to vector<8x8xf32>
    %444 = vector.extract_strided_slice %441 {offsets = [0, 8], sizes = [8, 8], strides = [1, 1]} : vector<8x32xf32> to vector<8x8xf32>
    %445 = vector.extract_strided_slice %442 {offsets = [0, 16], sizes = [8, 8], strides = [1, 1]} : vector<8x32xf32> to vector<8x8xf32>
    %446 = vector.extract_strided_slice %441 {offsets = [0, 24], sizes = [8, 8], strides = [1, 1]} : vector<8x32xf32> to vector<8x8xf32>
    %447 = arith.mulf %444, %408 : vector<8x8xf32>
    %448 = arith.mulf %443, %445 : vector<8x8xf32>
    %449 = arith.addf %447, %448 : vector<8x8xf32>
    %450 = math.tanh %449 : vector<8x8xf32>
    %451 = arith.mulf %446, %450 : vector<8x8xf32>
    %452 = vector.extract_strided_slice %451 {offsets = [0, 0], sizes = [4, 8], strides = [1, 1]} : vector<8x8xf32> to vector<4x8xf32>
    %453 = vector.extract_strided_slice %451 {offsets = [4, 0], sizes = [4, 8], strides = [1, 1]} : vector<8x8xf32> to vector<4x8xf32>
    %454 = arith.subf %452, %453 : vector<4x8xf32>
    %cst_160 = arith.constant dense<0.000000e+00> : vector<4x8xf32>
    %455 = tpu.matmul %454, %6, %cst_160 {dimension_numbers = #tpu.dot_dimension_numbers<[1], [0], [0], [1], [0, 0, 1, 1], [], []>} : vector<4x8xf32>, vector<8x8xf32>, vector<4x8xf32> -> vector<4x8xf32>
    %456 = arith.mulf %455, %455 : vector<4x8xf32>
    %457 = arith.addf %409, %456 : vector<4x8xf32>
    %458 = vector.extract_strided_slice %407 {offsets = [0, 4], sizes = [8, 4], strides = [1, 1]} : vector<8x32xf32> to vector<8x4xf32>
    %cst_161 = arith.constant dense<0.000000e+00> : vector<8x32xf32>
    %459 = tpu.matmul %458, %3, %cst_161 {dimension_numbers = #tpu.dot_dimension_numbers<[1], [0], [0], [1], [0, 0, 1, 1], [], []>} : vector<8x4xf32>, vector<4x32xf32>, vector<8x32xf32> -> vector<8x32xf32>
    %460 = arith.addf %459, %15 : vector<8x32xf32>
    %cst_162 = arith.constant dense<0.000000e+00> : vector<8x32xf32>
    %461 = tpu.matmul %431, %4, %cst_162 {dimension_numbers = #tpu.dot_dimension_numbers<[1], [0], [0], [1], [0, 0, 1, 1], [], []>} : vector<8x8xf32>, vector<8x32xf32>, vector<8x32xf32> -> vector<8x32xf32>
    %462 = arith.addf %460, %461 : vector<8x32xf32>
    %cst_163 = arith.constant 0.000000e+00 : f32
    %463 = vector.broadcast %cst_163 : f32 to vector<8x32xf32>
    %464 = arith.subf %463, %462 : vector<8x32xf32>
    %465 = math.exp %464 : vector<8x32xf32>
    %cst_164 = arith.constant 1.000000e+00 : f32
    %466 = vector.broadcast %cst_164 : f32 to vector<8x32xf32>
    %467 = arith.addf %466, %465 : vector<8x32xf32>
    %cst_165 = arith.constant 1.000000e+00 : f32
    %468 = vector.broadcast %cst_165 : f32 to vector<8x32xf32>
    %469 = arith.divf %468, %467 : vector<8x32xf32>
    %470 = math.tanh %462 : vector<8x32xf32>
    %471 = vector.extract_strided_slice %469 {offsets = [0, 0], sizes = [8, 8], strides = [1, 1]} : vector<8x32xf32> to vector<8x8xf32>
    %472 = vector.extract_strided_slice %469 {offsets = [0, 8], sizes = [8, 8], strides = [1, 1]} : vector<8x32xf32> to vector<8x8xf32>
    %473 = vector.extract_strided_slice %470 {offsets = [0, 16], sizes = [8, 8], strides = [1, 1]} : vector<8x32xf32> to vector<8x8xf32>
    %474 = vector.extract_strided_slice %469 {offsets = [0, 24], sizes = [8, 8], strides = [1, 1]} : vector<8x32xf32> to vector<8x8xf32>
    %475 = arith.mulf %472, %429 : vector<8x8xf32>
    %476 = arith.mulf %471, %473 : vector<8x8xf32>
    %477 = arith.addf %475, %476 : vector<8x8xf32>
    %478 = math.tanh %477 : vector<8x8xf32>
    %479 = arith.mulf %474, %478 : vector<8x8xf32>
    %480 = tpu.concatenate %479, %451 in 1 : vector<8x8xf32>, vector<8x8xf32> -> vector<8x16xf32>
    %cst_166 = arith.constant dense<0.000000e+00> : vector<8x32xf32>
    %481 = tpu.matmul %480, %5, %cst_166 {dimension_numbers = #tpu.dot_dimension_numbers<[1], [0], [0], [1], [0, 0, 1, 1], [], []>} : vector<8x16xf32>, vector<16x32xf32>, vector<8x32xf32> -> vector<8x32xf32>
    %482 = arith.addf %481, %18 : vector<8x32xf32>
    %cst_167 = arith.constant 0.000000e+00 : f32
    %483 = vector.broadcast %cst_167 : f32 to vector<8x32xf32>
    %484 = arith.subf %483, %482 : vector<8x32xf32>
    %485 = math.exp %484 : vector<8x32xf32>
    %cst_168 = arith.constant 1.000000e+00 : f32
    %486 = vector.broadcast %cst_168 : f32 to vector<8x32xf32>
    %487 = arith.addf %486, %485 : vector<8x32xf32>
    %cst_169 = arith.constant 1.000000e+00 : f32
    %488 = vector.broadcast %cst_169 : f32 to vector<8x32xf32>
    %489 = arith.divf %488, %487 : vector<8x32xf32>
    %490 = math.tanh %482 : vector<8x32xf32>
    %491 = vector.extract_strided_slice %489 {offsets = [0, 0], sizes = [8, 8], strides = [1, 1]} : vector<8x32xf32> to vector<8x8xf32>
    %492 = vector.extract_strided_slice %489 {offsets = [0, 8], sizes = [8, 8], strides = [1, 1]} : vector<8x32xf32> to vector<8x8xf32>
    %493 = vector.extract_strided_slice %490 {offsets = [0, 16], sizes = [8, 8], strides = [1, 1]} : vector<8x32xf32> to vector<8x8xf32>
    %494 = vector.extract_strided_slice %489 {offsets = [0, 24], sizes = [8, 8], strides = [1, 1]} : vector<8x32xf32> to vector<8x8xf32>
    %495 = arith.mulf %492, %449 : vector<8x8xf32>
    %496 = arith.mulf %491, %493 : vector<8x8xf32>
    %497 = arith.addf %495, %496 : vector<8x8xf32>
    %498 = math.tanh %497 : vector<8x8xf32>
    %499 = arith.mulf %494, %498 : vector<8x8xf32>
    %500 = vector.extract_strided_slice %499 {offsets = [0, 0], sizes = [4, 8], strides = [1, 1]} : vector<8x8xf32> to vector<4x8xf32>
    %501 = vector.extract_strided_slice %499 {offsets = [4, 0], sizes = [4, 8], strides = [1, 1]} : vector<8x8xf32> to vector<4x8xf32>
    %502 = arith.subf %500, %501 : vector<4x8xf32>
    %cst_170 = arith.constant dense<0.000000e+00> : vector<4x8xf32>
    %503 = tpu.matmul %502, %6, %cst_170 {dimension_numbers = #tpu.dot_dimension_numbers<[1], [0], [0], [1], [0, 0, 1, 1], [], []>} : vector<4x8xf32>, vector<8x8xf32>, vector<4x8xf32> -> vector<4x8xf32>
    %504 = arith.mulf %503, %503 : vector<4x8xf32>
    %505 = arith.addf %457, %504 : vector<4x8xf32>
    %506 = vector.extract_strided_slice %407 {offsets = [0, 8], sizes = [8, 4], strides = [1, 1]} : vector<8x32xf32> to vector<8x4xf32>
    %cst_171 = arith.constant dense<0.000000e+00> : vector<8x32xf32>
    %507 = tpu.matmul %506, %3, %cst_171 {dimension_numbers = #tpu.dot_dimension_numbers<[1], [0], [0], [1], [0, 0, 1, 1], [], []>} : vector<8x4xf32>, vector<4x32xf32>, vector<8x32xf32> -> vector<8x32xf32>
    %508 = arith.addf %507, %15 : vector<8x32xf32>
    %cst_172 = arith.constant dense<0.000000e+00> : vector<8x32xf32>
    %509 = tpu.matmul %479, %4, %cst_172 {dimension_numbers = #tpu.dot_dimension_numbers<[1], [0], [0], [1], [0, 0, 1, 1], [], []>} : vector<8x8xf32>, vector<8x32xf32>, vector<8x32xf32> -> vector<8x32xf32>
    %510 = arith.addf %508, %509 : vector<8x32xf32>
    %cst_173 = arith.constant 0.000000e+00 : f32
    %511 = vector.broadcast %cst_173 : f32 to vector<8x32xf32>
    %512 = arith.subf %511, %510 : vector<8x32xf32>
    %513 = math.exp %512 : vector<8x32xf32>
    %cst_174 = arith.constant 1.000000e+00 : f32
    %514 = vector.broadcast %cst_174 : f32 to vector<8x32xf32>
    %515 = arith.addf %514, %513 : vector<8x32xf32>
    %cst_175 = arith.constant 1.000000e+00 : f32
    %516 = vector.broadcast %cst_175 : f32 to vector<8x32xf32>
    %517 = arith.divf %516, %515 : vector<8x32xf32>
    %518 = math.tanh %510 : vector<8x32xf32>
    %519 = vector.extract_strided_slice %517 {offsets = [0, 0], sizes = [8, 8], strides = [1, 1]} : vector<8x32xf32> to vector<8x8xf32>
    %520 = vector.extract_strided_slice %517 {offsets = [0, 8], sizes = [8, 8], strides = [1, 1]} : vector<8x32xf32> to vector<8x8xf32>
    %521 = vector.extract_strided_slice %518 {offsets = [0, 16], sizes = [8, 8], strides = [1, 1]} : vector<8x32xf32> to vector<8x8xf32>
    %522 = vector.extract_strided_slice %517 {offsets = [0, 24], sizes = [8, 8], strides = [1, 1]} : vector<8x32xf32> to vector<8x8xf32>
    %523 = arith.mulf %520, %477 : vector<8x8xf32>
    %524 = arith.mulf %519, %521 : vector<8x8xf32>
    %525 = arith.addf %523, %524 : vector<8x8xf32>
    %526 = math.tanh %525 : vector<8x8xf32>
    %527 = arith.mulf %522, %526 : vector<8x8xf32>
    %528 = tpu.concatenate %527, %499 in 1 : vector<8x8xf32>, vector<8x8xf32> -> vector<8x16xf32>
    %cst_176 = arith.constant dense<0.000000e+00> : vector<8x32xf32>
    %529 = tpu.matmul %528, %5, %cst_176 {dimension_numbers = #tpu.dot_dimension_numbers<[1], [0], [0], [1], [0, 0, 1, 1], [], []>} : vector<8x16xf32>, vector<16x32xf32>, vector<8x32xf32> -> vector<8x32xf32>
    %530 = arith.addf %529, %18 : vector<8x32xf32>
    %cst_177 = arith.constant 0.000000e+00 : f32
    %531 = vector.broadcast %cst_177 : f32 to vector<8x32xf32>
    %532 = arith.subf %531, %530 : vector<8x32xf32>
    %533 = math.exp %532 : vector<8x32xf32>
    %cst_178 = arith.constant 1.000000e+00 : f32
    %534 = vector.broadcast %cst_178 : f32 to vector<8x32xf32>
    %535 = arith.addf %534, %533 : vector<8x32xf32>
    %cst_179 = arith.constant 1.000000e+00 : f32
    %536 = vector.broadcast %cst_179 : f32 to vector<8x32xf32>
    %537 = arith.divf %536, %535 : vector<8x32xf32>
    %538 = math.tanh %530 : vector<8x32xf32>
    %539 = vector.extract_strided_slice %537 {offsets = [0, 0], sizes = [8, 8], strides = [1, 1]} : vector<8x32xf32> to vector<8x8xf32>
    %540 = vector.extract_strided_slice %537 {offsets = [0, 8], sizes = [8, 8], strides = [1, 1]} : vector<8x32xf32> to vector<8x8xf32>
    %541 = vector.extract_strided_slice %538 {offsets = [0, 16], sizes = [8, 8], strides = [1, 1]} : vector<8x32xf32> to vector<8x8xf32>
    %542 = vector.extract_strided_slice %537 {offsets = [0, 24], sizes = [8, 8], strides = [1, 1]} : vector<8x32xf32> to vector<8x8xf32>
    %543 = arith.mulf %540, %497 : vector<8x8xf32>
    %544 = arith.mulf %539, %541 : vector<8x8xf32>
    %545 = arith.addf %543, %544 : vector<8x8xf32>
    %546 = math.tanh %545 : vector<8x8xf32>
    %547 = arith.mulf %542, %546 : vector<8x8xf32>
    %548 = vector.extract_strided_slice %547 {offsets = [0, 0], sizes = [4, 8], strides = [1, 1]} : vector<8x8xf32> to vector<4x8xf32>
    %549 = vector.extract_strided_slice %547 {offsets = [4, 0], sizes = [4, 8], strides = [1, 1]} : vector<8x8xf32> to vector<4x8xf32>
    %550 = arith.subf %548, %549 : vector<4x8xf32>
    %cst_180 = arith.constant dense<0.000000e+00> : vector<4x8xf32>
    %551 = tpu.matmul %550, %6, %cst_180 {dimension_numbers = #tpu.dot_dimension_numbers<[1], [0], [0], [1], [0, 0, 1, 1], [], []>} : vector<4x8xf32>, vector<8x8xf32>, vector<4x8xf32> -> vector<4x8xf32>
    %552 = arith.mulf %551, %551 : vector<4x8xf32>
    %553 = arith.addf %505, %552 : vector<4x8xf32>
    %554 = vector.extract_strided_slice %407 {offsets = [0, 12], sizes = [8, 4], strides = [1, 1]} : vector<8x32xf32> to vector<8x4xf32>
    %cst_181 = arith.constant dense<0.000000e+00> : vector<8x32xf32>
    %555 = tpu.matmul %554, %3, %cst_181 {dimension_numbers = #tpu.dot_dimension_numbers<[1], [0], [0], [1], [0, 0, 1, 1], [], []>} : vector<8x4xf32>, vector<4x32xf32>, vector<8x32xf32> -> vector<8x32xf32>
    %556 = arith.addf %555, %15 : vector<8x32xf32>
    %cst_182 = arith.constant dense<0.000000e+00> : vector<8x32xf32>
    %557 = tpu.matmul %527, %4, %cst_182 {dimension_numbers = #tpu.dot_dimension_numbers<[1], [0], [0], [1], [0, 0, 1, 1], [], []>} : vector<8x8xf32>, vector<8x32xf32>, vector<8x32xf32> -> vector<8x32xf32>
    %558 = arith.addf %556, %557 : vector<8x32xf32>
    %cst_183 = arith.constant 0.000000e+00 : f32
    %559 = vector.broadcast %cst_183 : f32 to vector<8x32xf32>
    %560 = arith.subf %559, %558 : vector<8x32xf32>
    %561 = math.exp %560 : vector<8x32xf32>
    %cst_184 = arith.constant 1.000000e+00 : f32
    %562 = vector.broadcast %cst_184 : f32 to vector<8x32xf32>
    %563 = arith.addf %562, %561 : vector<8x32xf32>
    %cst_185 = arith.constant 1.000000e+00 : f32
    %564 = vector.broadcast %cst_185 : f32 to vector<8x32xf32>
    %565 = arith.divf %564, %563 : vector<8x32xf32>
    %566 = math.tanh %558 : vector<8x32xf32>
    %567 = vector.extract_strided_slice %565 {offsets = [0, 0], sizes = [8, 8], strides = [1, 1]} : vector<8x32xf32> to vector<8x8xf32>
    %568 = vector.extract_strided_slice %565 {offsets = [0, 8], sizes = [8, 8], strides = [1, 1]} : vector<8x32xf32> to vector<8x8xf32>
    %569 = vector.extract_strided_slice %566 {offsets = [0, 16], sizes = [8, 8], strides = [1, 1]} : vector<8x32xf32> to vector<8x8xf32>
    %570 = vector.extract_strided_slice %565 {offsets = [0, 24], sizes = [8, 8], strides = [1, 1]} : vector<8x32xf32> to vector<8x8xf32>
    %571 = arith.mulf %568, %525 : vector<8x8xf32>
    %572 = arith.mulf %567, %569 : vector<8x8xf32>
    %573 = arith.addf %571, %572 : vector<8x8xf32>
    %574 = math.tanh %573 : vector<8x8xf32>
    %575 = arith.mulf %570, %574 : vector<8x8xf32>
    %576 = tpu.concatenate %575, %547 in 1 : vector<8x8xf32>, vector<8x8xf32> -> vector<8x16xf32>
    %cst_186 = arith.constant dense<0.000000e+00> : vector<8x32xf32>
    %577 = tpu.matmul %576, %5, %cst_186 {dimension_numbers = #tpu.dot_dimension_numbers<[1], [0], [0], [1], [0, 0, 1, 1], [], []>} : vector<8x16xf32>, vector<16x32xf32>, vector<8x32xf32> -> vector<8x32xf32>
    %578 = arith.addf %577, %18 : vector<8x32xf32>
    %cst_187 = arith.constant 0.000000e+00 : f32
    %579 = vector.broadcast %cst_187 : f32 to vector<8x32xf32>
    %580 = arith.subf %579, %578 : vector<8x32xf32>
    %581 = math.exp %580 : vector<8x32xf32>
    %cst_188 = arith.constant 1.000000e+00 : f32
    %582 = vector.broadcast %cst_188 : f32 to vector<8x32xf32>
    %583 = arith.addf %582, %581 : vector<8x32xf32>
    %cst_189 = arith.constant 1.000000e+00 : f32
    %584 = vector.broadcast %cst_189 : f32 to vector<8x32xf32>
    %585 = arith.divf %584, %583 : vector<8x32xf32>
    %586 = math.tanh %578 : vector<8x32xf32>
    %587 = vector.extract_strided_slice %585 {offsets = [0, 0], sizes = [8, 8], strides = [1, 1]} : vector<8x32xf32> to vector<8x8xf32>
    %588 = vector.extract_strided_slice %585 {offsets = [0, 8], sizes = [8, 8], strides = [1, 1]} : vector<8x32xf32> to vector<8x8xf32>
    %589 = vector.extract_strided_slice %586 {offsets = [0, 16], sizes = [8, 8], strides = [1, 1]} : vector<8x32xf32> to vector<8x8xf32>
    %590 = vector.extract_strided_slice %585 {offsets = [0, 24], sizes = [8, 8], strides = [1, 1]} : vector<8x32xf32> to vector<8x8xf32>
    %591 = arith.mulf %588, %545 : vector<8x8xf32>
    %592 = arith.mulf %587, %589 : vector<8x8xf32>
    %593 = arith.addf %591, %592 : vector<8x8xf32>
    %594 = math.tanh %593 : vector<8x8xf32>
    %595 = arith.mulf %590, %594 : vector<8x8xf32>
    %596 = vector.extract_strided_slice %595 {offsets = [0, 0], sizes = [4, 8], strides = [1, 1]} : vector<8x8xf32> to vector<4x8xf32>
    %597 = vector.extract_strided_slice %595 {offsets = [4, 0], sizes = [4, 8], strides = [1, 1]} : vector<8x8xf32> to vector<4x8xf32>
    %598 = arith.subf %596, %597 : vector<4x8xf32>
    %cst_190 = arith.constant dense<0.000000e+00> : vector<4x8xf32>
    %599 = tpu.matmul %598, %6, %cst_190 {dimension_numbers = #tpu.dot_dimension_numbers<[1], [0], [0], [1], [0, 0, 1, 1], [], []>} : vector<4x8xf32>, vector<8x8xf32>, vector<4x8xf32> -> vector<4x8xf32>
    %600 = arith.mulf %599, %599 : vector<4x8xf32>
    %601 = arith.addf %553, %600 : vector<4x8xf32>
    %602 = vector.extract_strided_slice %407 {offsets = [0, 16], sizes = [8, 4], strides = [1, 1]} : vector<8x32xf32> to vector<8x4xf32>
    %cst_191 = arith.constant dense<0.000000e+00> : vector<8x32xf32>
    %603 = tpu.matmul %602, %3, %cst_191 {dimension_numbers = #tpu.dot_dimension_numbers<[1], [0], [0], [1], [0, 0, 1, 1], [], []>} : vector<8x4xf32>, vector<4x32xf32>, vector<8x32xf32> -> vector<8x32xf32>
    %604 = arith.addf %603, %15 : vector<8x32xf32>
    %cst_192 = arith.constant dense<0.000000e+00> : vector<8x32xf32>
    %605 = tpu.matmul %575, %4, %cst_192 {dimension_numbers = #tpu.dot_dimension_numbers<[1], [0], [0], [1], [0, 0, 1, 1], [], []>} : vector<8x8xf32>, vector<8x32xf32>, vector<8x32xf32> -> vector<8x32xf32>
    %606 = arith.addf %604, %605 : vector<8x32xf32>
    %cst_193 = arith.constant 0.000000e+00 : f32
    %607 = vector.broadcast %cst_193 : f32 to vector<8x32xf32>
    %608 = arith.subf %607, %606 : vector<8x32xf32>
    %609 = math.exp %608 : vector<8x32xf32>
    %cst_194 = arith.constant 1.000000e+00 : f32
    %610 = vector.broadcast %cst_194 : f32 to vector<8x32xf32>
    %611 = arith.addf %610, %609 : vector<8x32xf32>
    %cst_195 = arith.constant 1.000000e+00 : f32
    %612 = vector.broadcast %cst_195 : f32 to vector<8x32xf32>
    %613 = arith.divf %612, %611 : vector<8x32xf32>
    %614 = math.tanh %606 : vector<8x32xf32>
    %615 = vector.extract_strided_slice %613 {offsets = [0, 0], sizes = [8, 8], strides = [1, 1]} : vector<8x32xf32> to vector<8x8xf32>
    %616 = vector.extract_strided_slice %613 {offsets = [0, 8], sizes = [8, 8], strides = [1, 1]} : vector<8x32xf32> to vector<8x8xf32>
    %617 = vector.extract_strided_slice %614 {offsets = [0, 16], sizes = [8, 8], strides = [1, 1]} : vector<8x32xf32> to vector<8x8xf32>
    %618 = vector.extract_strided_slice %613 {offsets = [0, 24], sizes = [8, 8], strides = [1, 1]} : vector<8x32xf32> to vector<8x8xf32>
    %619 = arith.mulf %616, %573 : vector<8x8xf32>
    %620 = arith.mulf %615, %617 : vector<8x8xf32>
    %621 = arith.addf %619, %620 : vector<8x8xf32>
    %622 = math.tanh %621 : vector<8x8xf32>
    %623 = arith.mulf %618, %622 : vector<8x8xf32>
    %624 = tpu.concatenate %623, %595 in 1 : vector<8x8xf32>, vector<8x8xf32> -> vector<8x16xf32>
    %cst_196 = arith.constant dense<0.000000e+00> : vector<8x32xf32>
    %625 = tpu.matmul %624, %5, %cst_196 {dimension_numbers = #tpu.dot_dimension_numbers<[1], [0], [0], [1], [0, 0, 1, 1], [], []>} : vector<8x16xf32>, vector<16x32xf32>, vector<8x32xf32> -> vector<8x32xf32>
    %626 = arith.addf %625, %18 : vector<8x32xf32>
    %cst_197 = arith.constant 0.000000e+00 : f32
    %627 = vector.broadcast %cst_197 : f32 to vector<8x32xf32>
    %628 = arith.subf %627, %626 : vector<8x32xf32>
    %629 = math.exp %628 : vector<8x32xf32>
    %cst_198 = arith.constant 1.000000e+00 : f32
    %630 = vector.broadcast %cst_198 : f32 to vector<8x32xf32>
    %631 = arith.addf %630, %629 : vector<8x32xf32>
    %cst_199 = arith.constant 1.000000e+00 : f32
    %632 = vector.broadcast %cst_199 : f32 to vector<8x32xf32>
    %633 = arith.divf %632, %631 : vector<8x32xf32>
    %634 = math.tanh %626 : vector<8x32xf32>
    %635 = vector.extract_strided_slice %633 {offsets = [0, 0], sizes = [8, 8], strides = [1, 1]} : vector<8x32xf32> to vector<8x8xf32>
    %636 = vector.extract_strided_slice %633 {offsets = [0, 8], sizes = [8, 8], strides = [1, 1]} : vector<8x32xf32> to vector<8x8xf32>
    %637 = vector.extract_strided_slice %634 {offsets = [0, 16], sizes = [8, 8], strides = [1, 1]} : vector<8x32xf32> to vector<8x8xf32>
    %638 = vector.extract_strided_slice %633 {offsets = [0, 24], sizes = [8, 8], strides = [1, 1]} : vector<8x32xf32> to vector<8x8xf32>
    %639 = arith.mulf %636, %593 : vector<8x8xf32>
    %640 = arith.mulf %635, %637 : vector<8x8xf32>
    %641 = arith.addf %639, %640 : vector<8x8xf32>
    %642 = math.tanh %641 : vector<8x8xf32>
    %643 = arith.mulf %638, %642 : vector<8x8xf32>
    %644 = vector.extract_strided_slice %643 {offsets = [0, 0], sizes = [4, 8], strides = [1, 1]} : vector<8x8xf32> to vector<4x8xf32>
    %645 = vector.extract_strided_slice %643 {offsets = [4, 0], sizes = [4, 8], strides = [1, 1]} : vector<8x8xf32> to vector<4x8xf32>
    %646 = arith.subf %644, %645 : vector<4x8xf32>
    %cst_200 = arith.constant dense<0.000000e+00> : vector<4x8xf32>
    %647 = tpu.matmul %646, %6, %cst_200 {dimension_numbers = #tpu.dot_dimension_numbers<[1], [0], [0], [1], [0, 0, 1, 1], [], []>} : vector<4x8xf32>, vector<8x8xf32>, vector<4x8xf32> -> vector<4x8xf32>
    %648 = arith.mulf %647, %647 : vector<4x8xf32>
    %649 = arith.addf %601, %648 : vector<4x8xf32>
    %650 = vector.extract_strided_slice %407 {offsets = [0, 20], sizes = [8, 4], strides = [1, 1]} : vector<8x32xf32> to vector<8x4xf32>
    %cst_201 = arith.constant dense<0.000000e+00> : vector<8x32xf32>
    %651 = tpu.matmul %650, %3, %cst_201 {dimension_numbers = #tpu.dot_dimension_numbers<[1], [0], [0], [1], [0, 0, 1, 1], [], []>} : vector<8x4xf32>, vector<4x32xf32>, vector<8x32xf32> -> vector<8x32xf32>
    %652 = arith.addf %651, %15 : vector<8x32xf32>
    %cst_202 = arith.constant dense<0.000000e+00> : vector<8x32xf32>
    %653 = tpu.matmul %623, %4, %cst_202 {dimension_numbers = #tpu.dot_dimension_numbers<[1], [0], [0], [1], [0, 0, 1, 1], [], []>} : vector<8x8xf32>, vector<8x32xf32>, vector<8x32xf32> -> vector<8x32xf32>
    %654 = arith.addf %652, %653 : vector<8x32xf32>
    %cst_203 = arith.constant 0.000000e+00 : f32
    %655 = vector.broadcast %cst_203 : f32 to vector<8x32xf32>
    %656 = arith.subf %655, %654 : vector<8x32xf32>
    %657 = math.exp %656 : vector<8x32xf32>
    %cst_204 = arith.constant 1.000000e+00 : f32
    %658 = vector.broadcast %cst_204 : f32 to vector<8x32xf32>
    %659 = arith.addf %658, %657 : vector<8x32xf32>
    %cst_205 = arith.constant 1.000000e+00 : f32
    %660 = vector.broadcast %cst_205 : f32 to vector<8x32xf32>
    %661 = arith.divf %660, %659 : vector<8x32xf32>
    %662 = math.tanh %654 : vector<8x32xf32>
    %663 = vector.extract_strided_slice %661 {offsets = [0, 0], sizes = [8, 8], strides = [1, 1]} : vector<8x32xf32> to vector<8x8xf32>
    %664 = vector.extract_strided_slice %661 {offsets = [0, 8], sizes = [8, 8], strides = [1, 1]} : vector<8x32xf32> to vector<8x8xf32>
    %665 = vector.extract_strided_slice %662 {offsets = [0, 16], sizes = [8, 8], strides = [1, 1]} : vector<8x32xf32> to vector<8x8xf32>
    %666 = vector.extract_strided_slice %661 {offsets = [0, 24], sizes = [8, 8], strides = [1, 1]} : vector<8x32xf32> to vector<8x8xf32>
    %667 = arith.mulf %664, %621 : vector<8x8xf32>
    %668 = arith.mulf %663, %665 : vector<8x8xf32>
    %669 = arith.addf %667, %668 : vector<8x8xf32>
    %670 = math.tanh %669 : vector<8x8xf32>
    %671 = arith.mulf %666, %670 : vector<8x8xf32>
    %672 = tpu.concatenate %671, %643 in 1 : vector<8x8xf32>, vector<8x8xf32> -> vector<8x16xf32>
    %cst_206 = arith.constant dense<0.000000e+00> : vector<8x32xf32>
    %673 = tpu.matmul %672, %5, %cst_206 {dimension_numbers = #tpu.dot_dimension_numbers<[1], [0], [0], [1], [0, 0, 1, 1], [], []>} : vector<8x16xf32>, vector<16x32xf32>, vector<8x32xf32> -> vector<8x32xf32>
    %674 = arith.addf %673, %18 : vector<8x32xf32>
    %cst_207 = arith.constant 0.000000e+00 : f32
    %675 = vector.broadcast %cst_207 : f32 to vector<8x32xf32>
    %676 = arith.subf %675, %674 : vector<8x32xf32>
    %677 = math.exp %676 : vector<8x32xf32>
    %cst_208 = arith.constant 1.000000e+00 : f32
    %678 = vector.broadcast %cst_208 : f32 to vector<8x32xf32>
    %679 = arith.addf %678, %677 : vector<8x32xf32>
    %cst_209 = arith.constant 1.000000e+00 : f32
    %680 = vector.broadcast %cst_209 : f32 to vector<8x32xf32>
    %681 = arith.divf %680, %679 : vector<8x32xf32>
    %682 = math.tanh %674 : vector<8x32xf32>
    %683 = vector.extract_strided_slice %681 {offsets = [0, 0], sizes = [8, 8], strides = [1, 1]} : vector<8x32xf32> to vector<8x8xf32>
    %684 = vector.extract_strided_slice %681 {offsets = [0, 8], sizes = [8, 8], strides = [1, 1]} : vector<8x32xf32> to vector<8x8xf32>
    %685 = vector.extract_strided_slice %682 {offsets = [0, 16], sizes = [8, 8], strides = [1, 1]} : vector<8x32xf32> to vector<8x8xf32>
    %686 = vector.extract_strided_slice %681 {offsets = [0, 24], sizes = [8, 8], strides = [1, 1]} : vector<8x32xf32> to vector<8x8xf32>
    %687 = arith.mulf %684, %641 : vector<8x8xf32>
    %688 = arith.mulf %683, %685 : vector<8x8xf32>
    %689 = arith.addf %687, %688 : vector<8x8xf32>
    %690 = math.tanh %689 : vector<8x8xf32>
    %691 = arith.mulf %686, %690 : vector<8x8xf32>
    %692 = vector.extract_strided_slice %691 {offsets = [0, 0], sizes = [4, 8], strides = [1, 1]} : vector<8x8xf32> to vector<4x8xf32>
    %693 = vector.extract_strided_slice %691 {offsets = [4, 0], sizes = [4, 8], strides = [1, 1]} : vector<8x8xf32> to vector<4x8xf32>
    %694 = arith.subf %692, %693 : vector<4x8xf32>
    %cst_210 = arith.constant dense<0.000000e+00> : vector<4x8xf32>
    %695 = tpu.matmul %694, %6, %cst_210 {dimension_numbers = #tpu.dot_dimension_numbers<[1], [0], [0], [1], [0, 0, 1, 1], [], []>} : vector<4x8xf32>, vector<8x8xf32>, vector<4x8xf32> -> vector<4x8xf32>
    %696 = arith.mulf %695, %695 : vector<4x8xf32>
    %697 = arith.addf %649, %696 : vector<4x8xf32>
    %698 = vector.extract_strided_slice %407 {offsets = [0, 24], sizes = [8, 4], strides = [1, 1]} : vector<8x32xf32> to vector<8x4xf32>
    %cst_211 = arith.constant dense<0.000000e+00> : vector<8x32xf32>
    %699 = tpu.matmul %698, %3, %cst_211 {dimension_numbers = #tpu.dot_dimension_numbers<[1], [0], [0], [1], [0, 0, 1, 1], [], []>} : vector<8x4xf32>, vector<4x32xf32>, vector<8x32xf32> -> vector<8x32xf32>
    %700 = arith.addf %699, %15 : vector<8x32xf32>
    %cst_212 = arith.constant dense<0.000000e+00> : vector<8x32xf32>
    %701 = tpu.matmul %671, %4, %cst_212 {dimension_numbers = #tpu.dot_dimension_numbers<[1], [0], [0], [1], [0, 0, 1, 1], [], []>} : vector<8x8xf32>, vector<8x32xf32>, vector<8x32xf32> -> vector<8x32xf32>
    %702 = arith.addf %700, %701 : vector<8x32xf32>
    %cst_213 = arith.constant 0.000000e+00 : f32
    %703 = vector.broadcast %cst_213 : f32 to vector<8x32xf32>
    %704 = arith.subf %703, %702 : vector<8x32xf32>
    %705 = math.exp %704 : vector<8x32xf32>
    %cst_214 = arith.constant 1.000000e+00 : f32
    %706 = vector.broadcast %cst_214 : f32 to vector<8x32xf32>
    %707 = arith.addf %706, %705 : vector<8x32xf32>
    %cst_215 = arith.constant 1.000000e+00 : f32
    %708 = vector.broadcast %cst_215 : f32 to vector<8x32xf32>
    %709 = arith.divf %708, %707 : vector<8x32xf32>
    %710 = math.tanh %702 : vector<8x32xf32>
    %711 = vector.extract_strided_slice %709 {offsets = [0, 0], sizes = [8, 8], strides = [1, 1]} : vector<8x32xf32> to vector<8x8xf32>
    %712 = vector.extract_strided_slice %709 {offsets = [0, 8], sizes = [8, 8], strides = [1, 1]} : vector<8x32xf32> to vector<8x8xf32>
    %713 = vector.extract_strided_slice %710 {offsets = [0, 16], sizes = [8, 8], strides = [1, 1]} : vector<8x32xf32> to vector<8x8xf32>
    %714 = vector.extract_strided_slice %709 {offsets = [0, 24], sizes = [8, 8], strides = [1, 1]} : vector<8x32xf32> to vector<8x8xf32>
    %715 = arith.mulf %712, %669 : vector<8x8xf32>
    %716 = arith.mulf %711, %713 : vector<8x8xf32>
    %717 = arith.addf %715, %716 : vector<8x8xf32>
    %718 = math.tanh %717 : vector<8x8xf32>
    %719 = arith.mulf %714, %718 : vector<8x8xf32>
    %720 = tpu.concatenate %719, %691 in 1 : vector<8x8xf32>, vector<8x8xf32> -> vector<8x16xf32>
    %cst_216 = arith.constant dense<0.000000e+00> : vector<8x32xf32>
    %721 = tpu.matmul %720, %5, %cst_216 {dimension_numbers = #tpu.dot_dimension_numbers<[1], [0], [0], [1], [0, 0, 1, 1], [], []>} : vector<8x16xf32>, vector<16x32xf32>, vector<8x32xf32> -> vector<8x32xf32>
    %722 = arith.addf %721, %18 : vector<8x32xf32>
    %cst_217 = arith.constant 0.000000e+00 : f32
    %723 = vector.broadcast %cst_217 : f32 to vector<8x32xf32>
    %724 = arith.subf %723, %722 : vector<8x32xf32>
    %725 = math.exp %724 : vector<8x32xf32>
    %cst_218 = arith.constant 1.000000e+00 : f32
    %726 = vector.broadcast %cst_218 : f32 to vector<8x32xf32>
    %727 = arith.addf %726, %725 : vector<8x32xf32>
    %cst_219 = arith.constant 1.000000e+00 : f32
    %728 = vector.broadcast %cst_219 : f32 to vector<8x32xf32>
    %729 = arith.divf %728, %727 : vector<8x32xf32>
    %730 = math.tanh %722 : vector<8x32xf32>
    %731 = vector.extract_strided_slice %729 {offsets = [0, 0], sizes = [8, 8], strides = [1, 1]} : vector<8x32xf32> to vector<8x8xf32>
    %732 = vector.extract_strided_slice %729 {offsets = [0, 8], sizes = [8, 8], strides = [1, 1]} : vector<8x32xf32> to vector<8x8xf32>
    %733 = vector.extract_strided_slice %730 {offsets = [0, 16], sizes = [8, 8], strides = [1, 1]} : vector<8x32xf32> to vector<8x8xf32>
    %734 = vector.extract_strided_slice %729 {offsets = [0, 24], sizes = [8, 8], strides = [1, 1]} : vector<8x32xf32> to vector<8x8xf32>
    %735 = arith.mulf %732, %689 : vector<8x8xf32>
    %736 = arith.mulf %731, %733 : vector<8x8xf32>
    %737 = arith.addf %735, %736 : vector<8x8xf32>
    %738 = math.tanh %737 : vector<8x8xf32>
    %739 = arith.mulf %734, %738 : vector<8x8xf32>
    %740 = vector.extract_strided_slice %739 {offsets = [0, 0], sizes = [4, 8], strides = [1, 1]} : vector<8x8xf32> to vector<4x8xf32>
    %741 = vector.extract_strided_slice %739 {offsets = [4, 0], sizes = [4, 8], strides = [1, 1]} : vector<8x8xf32> to vector<4x8xf32>
    %742 = arith.subf %740, %741 : vector<4x8xf32>
    %cst_220 = arith.constant dense<0.000000e+00> : vector<4x8xf32>
    %743 = tpu.matmul %742, %6, %cst_220 {dimension_numbers = #tpu.dot_dimension_numbers<[1], [0], [0], [1], [0, 0, 1, 1], [], []>} : vector<4x8xf32>, vector<8x8xf32>, vector<4x8xf32> -> vector<4x8xf32>
    %744 = arith.mulf %743, %743 : vector<4x8xf32>
    %745 = arith.addf %697, %744 : vector<4x8xf32>
    %746 = vector.extract_strided_slice %407 {offsets = [0, 28], sizes = [8, 4], strides = [1, 1]} : vector<8x32xf32> to vector<8x4xf32>
    %cst_221 = arith.constant dense<0.000000e+00> : vector<8x32xf32>
    %747 = tpu.matmul %746, %3, %cst_221 {dimension_numbers = #tpu.dot_dimension_numbers<[1], [0], [0], [1], [0, 0, 1, 1], [], []>} : vector<8x4xf32>, vector<4x32xf32>, vector<8x32xf32> -> vector<8x32xf32>
    %748 = arith.addf %747, %15 : vector<8x32xf32>
    %cst_222 = arith.constant dense<0.000000e+00> : vector<8x32xf32>
    %749 = tpu.matmul %719, %4, %cst_222 {dimension_numbers = #tpu.dot_dimension_numbers<[1], [0], [0], [1], [0, 0, 1, 1], [], []>} : vector<8x8xf32>, vector<8x32xf32>, vector<8x32xf32> -> vector<8x32xf32>
    %750 = arith.addf %748, %749 : vector<8x32xf32>
    %cst_223 = arith.constant 0.000000e+00 : f32
    %751 = vector.broadcast %cst_223 : f32 to vector<8x32xf32>
    %752 = arith.subf %751, %750 : vector<8x32xf32>
    %753 = math.exp %752 : vector<8x32xf32>
    %cst_224 = arith.constant 1.000000e+00 : f32
    %754 = vector.broadcast %cst_224 : f32 to vector<8x32xf32>
    %755 = arith.addf %754, %753 : vector<8x32xf32>
    %cst_225 = arith.constant 1.000000e+00 : f32
    %756 = vector.broadcast %cst_225 : f32 to vector<8x32xf32>
    %757 = arith.divf %756, %755 : vector<8x32xf32>
    %758 = math.tanh %750 : vector<8x32xf32>
    %759 = vector.extract_strided_slice %757 {offsets = [0, 0], sizes = [8, 8], strides = [1, 1]} : vector<8x32xf32> to vector<8x8xf32>
    %760 = vector.extract_strided_slice %757 {offsets = [0, 8], sizes = [8, 8], strides = [1, 1]} : vector<8x32xf32> to vector<8x8xf32>
    %761 = vector.extract_strided_slice %758 {offsets = [0, 16], sizes = [8, 8], strides = [1, 1]} : vector<8x32xf32> to vector<8x8xf32>
    %762 = vector.extract_strided_slice %757 {offsets = [0, 24], sizes = [8, 8], strides = [1, 1]} : vector<8x32xf32> to vector<8x8xf32>
    %763 = arith.mulf %760, %717 : vector<8x8xf32>
    %764 = arith.mulf %759, %761 : vector<8x8xf32>
    %765 = arith.addf %763, %764 : vector<8x8xf32>
    %766 = math.tanh %765 : vector<8x8xf32>
    %767 = arith.mulf %762, %766 : vector<8x8xf32>
    %768 = tpu.concatenate %767, %739 in 1 : vector<8x8xf32>, vector<8x8xf32> -> vector<8x16xf32>
    %cst_226 = arith.constant dense<0.000000e+00> : vector<8x32xf32>
    %769 = tpu.matmul %768, %5, %cst_226 {dimension_numbers = #tpu.dot_dimension_numbers<[1], [0], [0], [1], [0, 0, 1, 1], [], []>} : vector<8x16xf32>, vector<16x32xf32>, vector<8x32xf32> -> vector<8x32xf32>
    %770 = arith.addf %769, %18 : vector<8x32xf32>
    %cst_227 = arith.constant 0.000000e+00 : f32
    %771 = vector.broadcast %cst_227 : f32 to vector<8x32xf32>
    %772 = arith.subf %771, %770 : vector<8x32xf32>
    %773 = math.exp %772 : vector<8x32xf32>
    %cst_228 = arith.constant 1.000000e+00 : f32
    %774 = vector.broadcast %cst_228 : f32 to vector<8x32xf32>
    %775 = arith.addf %774, %773 : vector<8x32xf32>
    %cst_229 = arith.constant 1.000000e+00 : f32
    %776 = vector.broadcast %cst_229 : f32 to vector<8x32xf32>
    %777 = arith.divf %776, %775 : vector<8x32xf32>
    %778 = math.tanh %770 : vector<8x32xf32>
    %779 = vector.extract_strided_slice %777 {offsets = [0, 0], sizes = [8, 8], strides = [1, 1]} : vector<8x32xf32> to vector<8x8xf32>
    %780 = vector.extract_strided_slice %777 {offsets = [0, 8], sizes = [8, 8], strides = [1, 1]} : vector<8x32xf32> to vector<8x8xf32>
    %781 = vector.extract_strided_slice %778 {offsets = [0, 16], sizes = [8, 8], strides = [1, 1]} : vector<8x32xf32> to vector<8x8xf32>
    %782 = vector.extract_strided_slice %777 {offsets = [0, 24], sizes = [8, 8], strides = [1, 1]} : vector<8x32xf32> to vector<8x8xf32>
    %783 = arith.mulf %780, %737 : vector<8x8xf32>
    %784 = arith.mulf %779, %781 : vector<8x8xf32>
    %785 = arith.addf %783, %784 : vector<8x8xf32>
    %786 = math.tanh %785 : vector<8x8xf32>
    %787 = arith.mulf %782, %786 : vector<8x8xf32>
    %788 = vector.extract_strided_slice %787 {offsets = [0, 0], sizes = [4, 8], strides = [1, 1]} : vector<8x8xf32> to vector<4x8xf32>
    %789 = vector.extract_strided_slice %787 {offsets = [4, 0], sizes = [4, 8], strides = [1, 1]} : vector<8x8xf32> to vector<4x8xf32>
    %790 = arith.subf %788, %789 : vector<4x8xf32>
    %cst_230 = arith.constant dense<0.000000e+00> : vector<4x8xf32>
    %791 = tpu.matmul %790, %6, %cst_230 {dimension_numbers = #tpu.dot_dimension_numbers<[1], [0], [0], [1], [0, 0, 1, 1], [], []>} : vector<4x8xf32>, vector<8x8xf32>, vector<4x8xf32> -> vector<4x8xf32>
    %792 = arith.mulf %791, %791 : vector<4x8xf32>
    %793 = arith.addf %745, %792 : vector<4x8xf32>
    %cst_231 = arith.constant dense<0.000000e+00> : vector<4xf32>
    %794 = vector.multi_reduction <add>, %793, %cst_231 [1] : vector<4x8xf32> to vector<4xf32>
    %795 = vector.shape_cast %794 : vector<4xf32> to vector<4x1xf32>
    %cst_232 = arith.constant dense<0.000000e+00> : vector<1xf32>
    %796 = vector.multi_reduction <add>, %795, %cst_232 [0] : vector<4x1xf32> to vector<1xf32>
    %797 = vector.shape_cast %796 : vector<1xf32> to vector<1x1xf32>
    %cst_233 = arith.constant 2.560000e+02 : f32
    %798 = vector.broadcast %cst_233 : f32 to vector<1x1xf32>
    %799 = arith.divf %797, %798 : vector<1x1xf32>
    %800 = arith.subf %401, %375 : vector<4x4xf32>
    %801 = arith.mulf %800, %800 : vector<4x4xf32>
    %cst_234 = arith.constant dense<0.000000e+00> : vector<4xf32>
    %802 = vector.multi_reduction <add>, %801, %cst_234 [1] : vector<4x4xf32> to vector<4xf32>
    %803 = vector.shape_cast %802 : vector<4xf32> to vector<4x1xf32>
    %cst_235 = arith.constant dense<0.000000e+00> : vector<1xf32>
    %804 = vector.multi_reduction <add>, %803, %cst_235 [0] : vector<4x1xf32> to vector<1xf32>
    %805 = vector.shape_cast %804 : vector<1xf32> to vector<1x1xf32>
    %cst_236 = arith.constant 1.600000e+01 : f32
    %806 = vector.broadcast %cst_236 : f32 to vector<1x1xf32>
    %807 = arith.divf %805, %806 : vector<1x1xf32>
    %cst_237 = arith.constant 9.99999968E-21 : f32
    %808 = vector.broadcast %cst_237 : f32 to vector<1x1xf32>
    %809 = arith.addf %799, %808 : vector<1x1xf32>
    %cst_238 = arith.constant 1.000000e+00 : f32
    %810 = vector.broadcast %cst_238 : f32 to vector<1x1xf32>
    %811 = arith.divf %810, %809 : vector<1x1xf32>
    %812 = arith.addf %807, %811 : vector<1x1xf32>
    %c0_239 = arith.constant 0 : index
    %c0_240 = arith.constant 0 : index
    %813 = vector.load %arg26[%c0_239, %c0_240] : memref<1x1xf32, #tpu.memory_space<vmem>>, vector<1x1xf32>
    tpu.vector_store %arg26[%c0_239, %c0_240], %812 {strides = array<i32>} : memref<1x1xf32, #tpu.memory_space<vmem>>, vector<1x1xf32>,
    %c0_241 = arith.constant 0 : index
    %c0_242 = arith.constant 0 : index
    %814 = vector.load %arg27[%c0_241, %c0_242] : memref<1x1xf32, #tpu.memory_space<vmem>>, vector<1x1xf32>
    tpu.vector_store %arg27[%c0_241, %c0_242], %807 {strides = array<i32>} : memref<1x1xf32, #tpu.memory_space<vmem>>, vector<1x1xf32>,
    %c0_243 = arith.constant 0 : index
    %c0_244 = arith.constant 0 : index
    %815 = vector.load %arg28[%c0_243, %c0_244] : memref<1x1xf32, #tpu.memory_space<vmem>>, vector<1x1xf32>
    tpu.vector_store %arg28[%c0_243, %c0_244], %799 {strides = array<i32>} : memref<1x1xf32, #tpu.memory_space<vmem>>, vector<1x1xf32>,
    return
  }
}

</mosaic_0001>

<bundles_post_ra>
// kernel: deception_forward.1
= control target key start
LH: loop header
LB: loop body
LE: loop exit
PB: predicated region body
PF: predicated region fallthrough
CT: control target
= control target key end

     0   :  { %s4383_s0 = inlined_call_operand.vmem [shape: f32[8,4,8], index: 0, kind: input, shape index: {}]   ;;  %s4384_s1 = inlined_call_operand.vmem [shape: f32[8,32], index: 1, kind: input, shape index: {}]   ;;  %s4385_s2 = inlined_call_operand.vmem [shape: f32[8,32], index: 2, kind: input, shape index: {}]   ;;  %s4386_s3 = inlined_call_operand.vmem [shape: f32[1,32], index: 3, kind: input, shape index: {}]   ;;  %s4387_s4 = inlined_call_operand.vmem [shape: f32[16,32], index: 4, kind: input, shape index: {}]   ;;  %s4388_s5 = inlined_call_operand.vmem [shape: f32[1,32], index: 5, kind: input, shape index: {}]   ;;  %s4389_s6 = inlined_call_operand.vmem [shape: f32[8,8], index: 6, kind: input, shape index: {}]   ;;  %s4390_s7 = inlined_call_operand.vmem [shape: f32[1,8], index: 7, kind: input, shape index: {}]   ;;  %s4391_s8 = inlined_call_operand.vmem [shape: f32[8,4], index: 8, kind: input, shape index: {}]   ;;  %s4392_s9 = inlined_call_operand.vmem [shape: f32[1,4], index: 9, kind: input, shape index: {}]   ;;  %s4393_s10 = inlined_call_operand.vmem [shape: f32[4,8], index: 10, kind: input, shape index: {}]   ;;  %s4394_s11 = inlined_call_operand.vmem [shape: f32[1,8], index: 11, kind: input, shape index: {}]   ;;  %s4395_s12 = inlined_call_operand.vmem [shape: f32[8,8], index: 12, kind: input, shape index: {}]   ;;  %s4396_s13 = inlined_call_operand.vmem [shape: f32[1,8], index: 13, kind: input, shape index: {}]   ;;  %s4397_s14 = inlined_call_operand.vmem [shape: f32[8,8], index: 14, kind: input, shape index: {}]   ;;  %s4398_s15 = inlined_call_operand.vmem [shape: f32[1,8], index: 15, kind: input, shape index: {}]   ;;  %s4399_s16 = inlined_call_operand.vmem [shape: f32[8,4], index: 16, kind: input, shape index: {}]   ;;  %s4400_s17 = inlined_call_operand.vmem [shape: f32[1,4], index: 17, kind: input, shape index: {}]   ;;  %s4401_s18 = inlined_call_operand.vmem [shape: f32[4,32], index: 18, kind: input, shape index: {}]   ;;  %s4402_s19 = inlined_call_operand.vmem [shape: f32[1,32], index: 19, kind: input, shape index: {}]   ;;  %s4403_s20 = inlined_call_operand.vmem [shape: f32[4,32], index: 20, kind: input, shape index: {}]   ;;  %s4404_s21 = inlined_call_operand.vmem [shape: f32[8,32], index: 21, kind: input, shape index: {}]   ;;  %s4405_s22 = inlined_call_operand.vmem [shape: f32[1,32], index: 22, kind: input, shape index: {}]   ;;  %s4406_s23 = inlined_call_operand.vmem [shape: f32[16,32], index: 23, kind: input, shape index: {}]   ;;  %s4407_s24 = inlined_call_operand.vmem [shape: f32[1,32], index: 24, kind: input, shape index: {}]   ;;  %s4408_s25 = inlined_call_operand.vmem [shape: f32[8,8], index: 25, kind: input, shape index: {}]   ;;  %s4409_s26 = inlined_call_operand.hbm [shape: f32[1,1], index: 26, kind: output, shape index: {0}]   ;;  %s4410_s27 = inlined_call_operand.hbm [shape: f32[1,1], index: 27, kind: output, shape index: {1}]   ;;  %s4411_s28 = inlined_call_operand.hbm [shape: f32[1,1], index: 28, kind: output, shape index: {2}]  }
   0x1   :  { %4416 = sst [smem:[#allocation9_spill]] %s4383_s0 }
   0x2   :  { %4417 = sst [smem:[#allocation10_spill]] %s4384_s1 }
   0x3   :  { %4418 = sst [smem:[#allocation11_spill]] %s4385_s2 }
   0x4   :  { %4419 = sst [smem:[#allocation12_spill]] %s4386_s3 }
   0x5   :  { %4420 = sst [smem:[#allocation13_spill]] %s4387_s4 }
   0x6   :  { %4421 = sst [smem:[#allocation14_spill]] %s4388_s5 }
   0x7   :  { %4422 = sst [smem:[#allocation15_spill]] %s4389_s6 }
   0x8   :  { %4423 = sst [smem:[#allocation16_spill]] %s4390_s7 }
   0x9   :  { %4424 = sst [smem:[#allocation17_spill]] %s4391_s8 }
   0xa   :  { %4425 = sst [smem:[#allocation18_spill]] %s4392_s9 }
   0xb   :  { %4426 = sst [smem:[#allocation19_spill]] %s4393_s10 }
   0xc   :  { %4427 = sst [smem:[#allocation20_spill]] %s4394_s11 }
   0xd   :  { %4428 = sst [smem:[#allocation21_spill]] %s4395_s12 }
   0xe   :  { %34 = vsyncpa [#allocation3], 0  ;;  %s4429_s9 = sld [smem:[#allocation10_spill]]  ;;  %vm114_vm0 = vcmask 64512   ;;  %v3572_v3 = vmov 0.0  }
   0xf   :  { %s4430_s6 = sld [smem:[#allocation9_spill]] }
  0x10   :  { %s4431_s11 = sld [smem:[#allocation11_spill]] }
  0x14   :  { %v3735_v0 = vld [vmem:[%s4429_s9] sm:$0xff] }
  0x15   :  { %v113_v1 = vld [vmem:[%s4430_s6] sm:$0xf]  ;;  %133 = vmatpush.msra.mxu0 %v3735_v0  ;;  %285 = vmatpush.msra.mxu3 %v3735_v0 }
  0x16   :  { %v3743_v2 = vld [vmem:[%s4431_s11] sm:$0xff]  ;;  %3126 = vmatmul.msk.f32.vlgmr.msra.gmra.mxu0 %vm114_vm0, %v113_v1 }
  0x17   :  { %156 = vmatpush.msra.mxu1 %v3743_v2  ;;  %307 = vmatpush.msrb.mxu0 %v3743_v2 }
  0x18   :  { %157 = vmatmul.f32.vlgmr.msra.gmra.mxu1 %v3572_v3  ;;  %439 = vmatpush.msrb.mxu3 %v3735_v0 }
  0x19   :  { %35 = vsyncpa [#allocation5], 0  ;;  %s4432_s7 = sld [smem:[#allocation12_spill]]  ;;  %s3573_s12 = smov 112   ;;  %v3128_v30 = vld [vmem:[%s4430_s6 + $0x4] sm:$0xf] }
  0x1a   :  { %s3574_s1 = smov 8   ;;  %s3575_s4 = smov 16   ;;  %3129 = vmatmul.msk.f32.vlgmr.msra.gmra.mxu3 %vm114_vm0, %v3128_v30  ;;  %vm204_vm5 = vcmask 130048  }
  0x1b   :  { %s4433_s3 = sld [smem:[#allocation13_spill]]  ;;  %615 = vmatpush.msra.mxu3 %v3743_v2  ;;  %s3576_s10 = smov 104  }
  0x1c   :  { %s4434_s8 = sld [smem:[#allocation14_spill]]  ;;  %s3581_s0 = smov 100  }
  0x1d   :  { %s4435_s2 = sld [smem:[#allocation15_spill]] }
  0x1e   :  { %s4436_s30 = sld [smem:[#allocation17_spill]] }
  0x1f   :  { %v3755_v4 = vld [vmem:[%s4432_s7] ss:$0 sm:$0xff]  ;;  %s4437_s11 = sld [smem:[#allocation19_spill]] }
  0x20   :  { %s4439_s5 = sld [smem:[#allocation21_spill]] }
  0x21   :  { %v3770_v31 = vld [vmem:[%s4433_s3 + $0x8] sm:$0xff]  ;;  %v3781_v34 = vld [vmem:[%s4433_s3] sm:$0xff]  ;;  %s4440_s3 = sld [smem:[#allocation18_spill]] }
  0x22   :  { %222 = vmatpush.msra.mxu2 %v3770_v31  ;;  %376 = vmatpush.msrb.mxu1 %v3770_v31  ;;  %v3798_v41 = vld [vmem:[%s4434_s8] ss:$0 sm:$0xff] }
  0x23   :  { %530 = vmatpush.msra.mxu0 %v3770_v31 }
  0x24   :  { %223 = vmatpush.msra.mxu2 %v3781_v34  ;;  %377 = vmatpush.msrb.mxu1 %v3781_v34 }
  0x25   :  { %531 = vmatpush.msra.mxu0 %v3781_v34 }
  0x26   :  { %461 = vmatpush.msrb.mxu2 %v3743_v2  ;;  %593 = vmatpush.msra.mxu1 %v3735_v0 }
  0x93   :  { %v135_v5 = vpop.f32.mrf.mxu0 }
  0x94   :  { %v136_v7 = vadd.f32 %v3755_v4, %v135_v5 }
  0x95   :  { %v158_v6 = vpop.f32.mrf.mxu1 }
  0x96   :  { %v161_v8 = vadd.f32 %v158_v6, %v136_v7 }
  0x98   :  { %3230 = vtanh.f32 %v161_v8  ;;  %v162_v10 = vsub.f32 0.0, %v161_v8 }
  0x9a   :  { %v163_v11 = vmul.f32 1.442695, %v162_v10 }
  0x9c   :  { %3232 = vpow2.f32 %v163_v11 }
  0x9d   :  { %v287_v37 = vpop.f32.mrf.mxu3 }
  0x9e   :  { %v3231_v9 = vpop.eup %3230  ;;  %v288_v38 = vadd.f32 %v3755_v4, %v287_v37 }
  0x9f   :  { %184 = vrot.lane.b32.xlu0 %v3231_v9, %s3573_s12 }
  0xa2   :  { %v3233_v12 = vpop.eup %3232 }
  0xa3   :  { %v165_v13 = vadd.f32 1.0, %v3233_v12 }
  0xa5   :  { %3234 = vrcp.f32 %v165_v13  ;;  %v177_v19 = vand.u32 2147483648, %v165_v13  ;;  %vm171_vm2 = vweird.f32 %v165_v13  ;;  %v175_v20 = vand.u32 2147483647, %v165_v13 }
  0xa7   :  { %v178_v22 = vor.u32 1.1754944e-38, %v177_v19  ;;  %vm176_vm4 = vcmp.eq.f32.partialorder %v175_v20, 8.507059e+37 }
  0xab   :  { %v3235_v14 = vpop.eup %3234 }
  0xac   :  { %v167_v15 = vmul.f32 %v3235_v14, %v165_v13  ;;  %vm172_vm1 = vweird.f32 %v3235_v14 }
  0xad   :  { %vm173_vm3 = vmor %vm171_vm2, %vm172_vm1 }
  0xae   :  { %v168_v16 = vsub.f32 1.0, %v167_v15 }
  0xb0   :  { %v169_v17 = vmul.f32 %v3235_v14, %v168_v16 }
  0xb2   :  { %v170_v18 = vadd.f32 %v3235_v14, %v169_v17 }
  0xb4   :  { %v174_v21 = vsel %vm173_vm3, %v3235_v14, %v170_v18 }
  0xb5   :  { %v179_v24 = vsel %vm176_vm4, %v178_v22, %v174_v21 }
  0xb6   :  { %v182_v26 = vmul.f32 0.0, %v179_v24 }
 0x111   :  { %v185_v23 = vpop.permute.xlu0 %184 }
 0x112   :  { %v187_v25 = vmul.f32 %v185_v23, %v179_v24 }
 0x114   :  { %189 = vrot.lane.b32.xlu0 %v187_v25, %s3574_s1 }
 0x186   :  { %v190_v27 = vpop.permute.xlu0 %189 }
 0x187   :  { %v3760_v28 = vadd.f32 %v190_v27, %v182_v26 }
 0x189   :  { %3236 = vtanh.f32 %v3760_v28 }
 0x18f   :  { %v3237_v29 = vpop.eup %3236 }
 0x190   :  { %195 = vrot.lane.b32.xlu1 %v3237_v29, %s3575_s4 }
 0x202   :  { %v196_v32 = vpop.permute.xlu1 %195 }
 0x203   :  { %v198_v33 = vmul.f32 %v196_v32, %v179_v24 }
 0x205   :  { %200 = vrot.lane.b32.xlu1 %v198_v33, %s3576_s10 }
 0x277   :  { %v201_v35 = vpop.permute.xlu1 %200 }
 0x278   :  { %3130 = vmatmul.msk.f32.vlgmr.msrb.gmra.mxu0 %vm114_vm0, %v201_v35  ;;  %v203_v36 = vsel %vm114_vm0, %v201_v35, 0.0 }
 0x279   :  { %3127 = vmatmul.msk.f32.vlgmr.msra.gmra.mxu2 %vm204_vm5, %v203_v36  ;;  %747 = vmatpush.msrb.mxu0 %v3735_v0 }
 0x27a   :  { %684 = vmatpush.msra.mxu2 %v3770_v31 }
 0x27c   :  { %685 = vmatpush.msra.mxu2 %v3781_v34 }
 0x2f5   :  { %v309_v39 = vpop.f32.mrf.mxu0 }
 0x2f6   :  { %v312_v40 = vadd.f32 %v309_v39, %v288_v38 }
 0x2f8   :  { %3238 = vtanh.f32 %v312_v40  ;;  %v313_v46 = vsub.f32 0.0, %v312_v40 }
 0x2fa   :  { %v314_v47 = vmul.f32 1.442695, %v313_v46 }
 0x2fc   :  { %v225_v42 = vpop.f32.mrf.mxu2 }
 0x2fd   :  { %v226_v43 = vadd.f32 %v3798_v41, %v225_v42 }
 0x2fe   :  { %v3239_v44 = vpop.eup %3238 }
 0x2ff   :  { %3240 = vtanh.f32 %v226_v43  ;;  %335 = vrot.lane.b32.xlu2 %v3239_v44, %s3573_s12  ;;  %v228_v48 = vsub.f32 0.0, %v226_v43 }
 0x300   :  { %3242 = vpow2.f32 %v314_v47 }
 0x301   :  { %v229_v49 = vmul.f32 1.442695, %v228_v48 }
 0x303   :  { %3244 = vpow2.f32 %v229_v49 }
 0x305   :  { %v3241_v45 = vpop.eup %3240 }
 0x306   :  { %v3243_v50 = vpop.eup %3242 }
 0x307   :  { %250 = vrot.lane.b32.xlu2 %v3241_v45, %s3573_s12  ;;  %v316_v51 = vadd.f32 1.0, %v3243_v50 }
 0x309   :  { %3246 = vrcp.f32 %v316_v51  ;;  %v3245_v52 = vpop.eup %3244  ;;  %v328_v62 = vand.u32 2147483648, %v316_v51  ;;  %vm322_vm7 = vweird.f32 %v316_v51  ;;  %v326_v63 = vand.u32 2147483647, %v316_v51 }
 0x30a   :  { %v231_v53 = vadd.f32 1.0, %v3245_v52 }
 0x30b   :  { %v329_v6 = vor.u32 1.1754944e-38, %v328_v62  ;;  %vm327_vm9 = vcmp.eq.f32.partialorder %v326_v63, 8.507059e+37 }
 0x30c   :  { %3248 = vrcp.f32 %v231_v53  ;;  %v243_v11 = vand.u32 2147483648, %v231_v53  ;;  %vm237_vm11 = vweird.f32 %v231_v53  ;;  %v241_v12 = vand.u32 2147483647, %v231_v53 }
 0x30e   :  { %v244_v14 = vor.u32 1.1754944e-38, %v243_v11  ;;  %vm242_vm13 = vcmp.eq.f32.partialorder %v241_v12, 8.507059e+37 }
 0x30f   :  { %v3247_v54 = vpop.eup %3246 }
 0x310   :  { %v318_v55 = vmul.f32 %v3247_v54, %v316_v51  ;;  %vm323_vm6 = vweird.f32 %v3247_v54 }
 0x311   :  { %vm324_vm8 = vmor %vm322_vm7, %vm323_vm6 }
 0x312   :  { %v319_v56 = vsub.f32 1.0, %v318_v55  ;;  %v3249_v57 = vpop.eup %3248 }
 0x313   :  { %v233_v59 = vmul.f32 %v3249_v57, %v231_v53  ;;  %vm238_vm10 = vweird.f32 %v3249_v57 }
 0x314   :  { %v320_v58 = vmul.f32 %v3247_v54, %v319_v56  ;;  %vm239_vm12 = vmor %vm237_vm11, %vm238_vm10 }
 0x315   :  { %v234_v61 = vsub.f32 1.0, %v233_v59 }
 0x316   :  { %v321_v60 = vadd.f32 %v3247_v54, %v320_v58 }
 0x317   :  { %v235_v5 = vmul.f32 %v3249_v57, %v234_v61 }
 0x318   :  { %v325_v1 = vsel %vm324_vm8, %v3247_v54, %v321_v60 }
 0x319   :  { %v330_v8 = vsel %vm327_vm9, %v329_v6, %v325_v1  ;;  %v236_v10 = vadd.f32 %v3249_v57, %v235_v5 }
 0x31a   :  { %v333_v18 = vmul.f32 %v330_v8, %v3760_v28  ;;  %v3132_v28 = vld [vmem:[%s4430_s6 + $0x8] sm:$0xf] }
 0x31b   :  { %v240_v13 = vsel %vm239_vm12, %v3249_v57, %v236_v10  ;;  %3133 = vmatmul.msk.f32.vlgmr.msrb.gmra.mxu3 %vm114_vm0, %v3132_v28 }
 0x31c   :  { %v245_v16 = vsel %vm242_vm13, %v244_v14, %v240_v13  ;;  %838 = vmatpush.msrb.mxu3 %v3770_v31 }
 0x31d   :  { %v248_v21 = vmul.f32 0.0, %v245_v16 }
 0x31e   :  { %839 = vmatpush.msrb.mxu3 %v3781_v34 }
 0x359   :  { %v336_v7 = vpop.permute.xlu2 %335 }
 0x35a   :  { %v338_v9 = vmul.f32 %v336_v7, %v330_v8 }
 0x35c   :  { %340 = vrot.lane.b32.xlu0 %v338_v9, %s3574_s1 }
 0x361   :  { %v251_v15 = vpop.permute.xlu2 %250 }
 0x362   :  { %v253_v17 = vmul.f32 %v251_v15, %v245_v16 }
 0x364   :  { %255 = vrot.lane.b32.xlu1 %v253_v17, %s3574_s1 }
 0x39e   :  { %v441_v36 = vpop.f32.mrf.mxu3 }
 0x39f   :  { %v442_v37 = vadd.f32 %v3755_v4, %v441_v36 }
 0x3ce   :  { %v341_v19 = vpop.permute.xlu0 %340 }
 0x3cf   :  { %v3806_v20 = vadd.f32 %v341_v19, %v333_v18 }
 0x3d1   :  { %3250 = vtanh.f32 %v3806_v20 }
 0x3d6   :  { %v256_v22 = vpop.permute.xlu1 %255 }
 0x3d7   :  { %v3251_v23 = vpop.eup %3250  ;;  %v3809_v24 = vadd.f32 %v256_v22, %v248_v21 }
 0x3d8   :  { %346 = vrot.lane.b32.xlu2 %v3251_v23, %s3575_s4 }
 0x3d9   :  { %3252 = vtanh.f32 %v3809_v24 }
 0x3df   :  { %v3253_v25 = vpop.eup %3252 }
 0x3e0   :  { %261 = vrot.lane.b32.xlu0 %v3253_v25, %s3575_s4 }
 0x432   :  { %v347_v26 = vpop.permute.xlu2 %346 }
 0x433   :  { %v349_v27 = vmul.f32 %v347_v26, %v330_v8 }
 0x435   :  { %351 = vrot.lane.b32.xlu1 %v349_v27, %s3576_s10 }
 0x452   :  { %v262_v29 = vpop.permute.xlu0 %261 }
 0x453   :  { %v264_v30 = vmul.f32 %v262_v29, %v245_v16 }
 0x455   :  { %355 = vrot.lane.b32.xlu2 %v264_v30, %s3573_s12 }
 0x4a7   :  { %v352_v32 = vpop.permute.xlu1 %351 }
 0x4a8   :  { %3134 = vmatmul.msk.f32.vlgmr.msrb.gmra.mxu2 %vm114_vm0, %v352_v32 }
 0x4a9   :  { %901 = vmatpush.msrb.mxu2 %v3735_v0 }
 0x4af   :  { %v356_v33 = vpop.permute.xlu2 %355 }
 0x4b0   :  { %v358_v35 = vsel %vm114_vm0, %v352_v32, %v356_v33 }
 0x4b1   :  { %3131 = vmatmul.msk.f32.vlgmr.msrb.gmra.mxu1 %vm204_vm5, %v358_v35 }
 0x4b2   :  { %769 = vmatpush.msrb.mxu1 %v3743_v2 }
 0x52b   :  { %v463_v38 = vpop.f32.mrf.mxu2 }
 0x52c   :  { %v466_v39 = vadd.f32 %v463_v38, %v442_v37 }
 0x52e   :  { %3254 = vtanh.f32 %v466_v39  ;;  %v379_v40 = vpop.f32.mrf.mxu1  ;;  %v467_v45 = vsub.f32 0.0, %v466_v39 }
 0x52f   :  { %v380_v42 = vadd.f32 %v3798_v41, %v379_v40 }
 0x530   :  { %v468_v47 = vmul.f32 1.442695, %v467_v45 }
 0x531   :  { %3256 = vtanh.f32 %v380_v42  ;;  %v382_v46 = vsub.f32 0.0, %v380_v42 }
 0x532   :  { %3258 = vpow2.f32 %v468_v47 }
 0x533   :  { %v383_v48 = vmul.f32 1.442695, %v382_v46 }
 0x534   :  { %v3255_v43 = vpop.eup %3254 }
 0x535   :  { %489 = vrot.lane.b32.xlu0 %v3255_v43, %s3573_s12  ;;  %3260 = vpow2.f32 %v383_v48 }
 0x537   :  { %v3257_v44 = vpop.eup %3256 }
 0x538   :  { %404 = vrot.lane.b32.xlu1 %v3257_v44, %s3573_s12  ;;  %v3259_v49 = vpop.eup %3258 }
 0x539   :  { %v470_v51 = vadd.f32 1.0, %v3259_v49 }
 0x53b   :  { %v3261_v50 = vpop.eup %3260  ;;  %3262 = vrcp.f32 %v470_v51  ;;  %v482_v62 = vand.u32 2147483648, %v470_v51  ;;  %vm476_vm15 = vweird.f32 %v470_v51  ;;  %v480_v63 = vand.u32 2147483647, %v470_v51 }
 0x53c   :  { %v385_v52 = vadd.f32 1.0, %v3261_v50 }
 0x53d   :  { %v483_v7 = vor.u32 1.1754944e-38, %v482_v62  ;;  %vm481_vm4 = vcmp.eq.f32.partialorder %v480_v63, 8.507059e+37 }
 0x53e   :  { %3264 = vrcp.f32 %v385_v52  ;;  %v397_v6 = vand.u32 2147483648, %v385_v52  ;;  %vm391_vm3 = vweird.f32 %v385_v52  ;;  %v395_v8 = vand.u32 2147483647, %v385_v52 }
 0x540   :  { %v398_v13 = vor.u32 1.1754944e-38, %v397_v6  ;;  %vm396_vm7 = vcmp.eq.f32.partialorder %v395_v8, 8.507059e+37 }
 0x541   :  { %v3263_v53 = vpop.eup %3262 }
 0x542   :  { %v472_v55 = vmul.f32 %v3263_v53, %v470_v51  ;;  %vm477_vm14 = vweird.f32 %v3263_v53 }
 0x543   :  { %vm478_vm1 = vmor %vm476_vm15, %vm477_vm14 }
 0x544   :  { %v3265_v54 = vpop.eup %3264  ;;  %v473_v57 = vsub.f32 1.0, %v472_v55 }
 0x545   :  { %v387_v56 = vmul.f32 %v3265_v54, %v385_v52  ;;  %vm392_vm2 = vweird.f32 %v3265_v54 }
 0x546   :  { %v474_v59 = vmul.f32 %v3263_v53, %v473_v57  ;;  %vm393_vm6 = vmor %vm391_vm3, %vm392_vm2 }
 0x547   :  { %v388_v58 = vsub.f32 1.0, %v387_v56 }
 0x548   :  { %v475_v61 = vadd.f32 %v3263_v53, %v474_v59 }
 0x549   :  { %v389_v60 = vmul.f32 %v3265_v54, %v388_v58 }
 0x54a   :  { %v479_v5 = vsel %vm478_vm1, %v3263_v53, %v475_v61 }
 0x54b   :  { %v390_v1 = vadd.f32 %v3265_v54, %v389_v60  ;;  %v484_v9 = vsel %vm481_vm4, %v483_v7, %v479_v5 }
 0x54c   :  { %v487_v17 = vmul.f32 %v484_v9, %v3806_v20 }
 0x54d   :  { %v394_v11 = vsel %vm393_vm6, %v3265_v54, %v390_v1 }
 0x54e   :  { %v399_v15 = vsel %vm396_vm7, %v398_v13, %v394_v11 }
 0x54f   :  { %v402_v22 = vmul.f32 %v399_v15, %v3809_v24  ;;  %v3136_v24 = vld [vmem:[%s4430_s6 + $0xc] sm:$0xf] }
 0x550   :  { %3137 = vmatmul.msk.f32.vlgmr.msra.gmra.mxu1 %vm114_vm0, %v3136_v24 }
 0x551   :  { %992 = vmatpush.msra.mxu1 %v3770_v31 }
 0x553   :  { %993 = vmatpush.msra.mxu1 %v3781_v34 }
 0x5a7   :  { %v490_v10 = vpop.permute.xlu0 %489 }
 0x5a8   :  { %v492_v12 = vmul.f32 %v490_v10, %v484_v9 }
 0x5aa   :  { %v405_v14 = vpop.permute.xlu1 %404  ;;  %494 = vrot.lane.b32.xlu2 %v492_v12, %s3574_s1 }
 0x5ab   :  { %v407_v16 = vmul.f32 %v405_v14, %v399_v15 }
 0x5ad   :  { %409 = vrot.lane.b32.xlu0 %v407_v16, %s3574_s1 }
 0x5cd   :  { %v595_v35 = vpop.f32.mrf.mxu1 }
 0x5ce   :  { %v596_v36 = vadd.f32 %v3755_v4, %v595_v35 }
 0x604   :  { %v495_v18 = vpop.permute.xlu2 %494 }
 0x605   :  { %v3834_v19 = vadd.f32 %v495_v18, %v487_v17 }
 0x607   :  { %3266 = vtanh.f32 %v3834_v19 }
 0x60d   :  { %v3267_v21 = vpop.eup %3266 }
 0x60e   :  { %500 = vrot.lane.b32.xlu1 %v3267_v21, %s3575_s4 }
 0x61f   :  { %v410_v23 = vpop.permute.xlu0 %409 }
 0x620   :  { %v3839_v25 = vadd.f32 %v410_v23, %v402_v22 }
 0x622   :  { %3268 = vtanh.f32 %v3839_v25 }
 0x628   :  { %v3269_v26 = vpop.eup %3268 }
 0x629   :  { %415 = vrot.lane.b32.xlu2 %v3269_v26, %s3575_s4 }
 0x680   :  { %v501_v27 = vpop.permute.xlu1 %500 }
 0x681   :  { %v503_v20 = vmul.f32 %v501_v27, %v484_v9 }
 0x683   :  { %505 = vrot.lane.b32.xlu0 %v503_v20, %s3576_s10  ;;  %v416_v28 = vpop.permute.xlu2 %415 }
 0x684   :  { %v418_v29 = vmul.f32 %v416_v28, %v399_v15 }
 0x686   :  { %509 = vrot.lane.b32.xlu1 %v418_v29, %s3573_s12 }
 0x6f5   :  { %v506_v30 = vpop.permute.xlu0 %505 }
 0x6f6   :  { %3138 = vmatmul.msk.f32.vlgmr.msra.gmra.mxu3 %vm114_vm0, %v506_v30 }
 0x6f7   :  { %1055 = vmatpush.msra.mxu3 %v3735_v0 }
 0x6f8   :  { %v510_v32 = vpop.permute.xlu1 %509 }
 0x6f9   :  { %v512_v33 = vsel %vm114_vm0, %v506_v30, %v510_v32 }
 0x6fa   :  { %3135 = vmatmul.msk.f32.vlgmr.msra.gmra.mxu0 %vm204_vm5, %v512_v33 }
 0x6fb   :  { %923 = vmatpush.msra.mxu0 %v3743_v2 }
 0x777   :  { %v533_v37 = vpop.f32.mrf.mxu0 }
 0x778   :  { %v534_v38 = vadd.f32 %v3798_v41, %v533_v37 }
 0x779   :  { %v617_v39 = vpop.f32.mrf.mxu3 }
 0x77a   :  { %3270 = vtanh.f32 %v534_v38  ;;  %v620_v40 = vadd.f32 %v617_v39, %v596_v36  ;;  %v536_v44 = vsub.f32 0.0, %v534_v38 }
 0x77c   :  { %3272 = vtanh.f32 %v620_v40  ;;  %v537_v45 = vmul.f32 1.442695, %v536_v44  ;;  %v621_v48 = vsub.f32 0.0, %v620_v40 }
 0x77e   :  { %3274 = vpow2.f32 %v537_v45  ;;  %v622_v50 = vmul.f32 1.442695, %v621_v48 }
 0x780   :  { %v3271_v42 = vpop.eup %3270 }
 0x781   :  { %558 = vrot.lane.b32.xlu2 %v3271_v42, %s3573_s12 }
 0x782   :  { %v3273_v43 = vpop.eup %3272 }
 0x783   :  { %643 = vrot.lane.b32.xlu0 %v3273_v43, %s3573_s12 }
 0x784   :  { %v3275_v46 = vpop.eup %3274 }
 0x785   :  { %v539_v47 = vadd.f32 1.0, %v3275_v46 }
 0x787   :  { %3276 = vrcp.f32 %v539_v47  ;;  %v551_v57 = vand.u32 2147483648, %v539_v47  ;;  %vm545_vm9 = vweird.f32 %v539_v47  ;;  %v549_v58 = vand.u32 2147483647, %v539_v47 }
 0x788   :  { %3278 = vpow2.f32 %v622_v50 }
 0x789   :  { %v552_v60 = vor.u32 1.1754944e-38, %v551_v57  ;;  %vm550_vm11 = vcmp.eq.f32.partialorder %v549_v58, 8.507059e+37 }
 0x78d   :  { %v3277_v49 = vpop.eup %3276 }
 0x78e   :  { %v541_v51 = vmul.f32 %v3277_v49, %v539_v47  ;;  %v3279_v54 = vpop.eup %3278  ;;  %vm546_vm8 = vweird.f32 %v3277_v49 }
 0x78f   :  { %v624_v56 = vadd.f32 1.0, %v3279_v54  ;;  %vm547_vm10 = vmor %vm545_vm9, %vm546_vm8 }
 0x790   :  { %v542_v52 = vsub.f32 1.0, %v541_v51 }
 0x791   :  { %3280 = vrcp.f32 %v624_v56  ;;  %v636_v9 = vand.u32 2147483648, %v624_v56  ;;  %vm630_vm13 = vweird.f32 %v624_v56  ;;  %v634_v10 = vand.u32 2147483647, %v624_v56 }
 0x792   :  { %v543_v53 = vmul.f32 %v3277_v49, %v542_v52 }
 0x793   :  { %v637_v12 = vor.u32 1.1754944e-38, %v636_v9  ;;  %vm635_vm15 = vcmp.eq.f32.partialorder %v634_v10, 8.507059e+37 }
 0x794   :  { %v544_v55 = vadd.f32 %v3277_v49, %v543_v53 }
 0x796   :  { %v548_v59 = vsel %vm547_vm10, %v3277_v49, %v544_v55 }
 0x797   :  { %v553_v62 = vsel %vm550_vm11, %v552_v60, %v548_v59  ;;  %v3281_v1 = vpop.eup %3280 }
 0x798   :  { %v626_v5 = vmul.f32 %v3281_v1, %v624_v56  ;;  %vm631_vm12 = vweird.f32 %v3281_v1  ;;  %v556_v16 = vmul.f32 %v553_v62, %v3839_v25  ;;  %v3140_v25 = vld [vmem:[%s4430_s6 + $0x10] sm:$0xf] }
 0x799   :  { %vm632_vm14 = vmor %vm630_vm13, %vm631_vm12  ;;  %3141 = vmatmul.msk.f32.vlgmr.msrb.gmra.mxu0 %vm114_vm0, %v3140_v25 }
 0x79a   :  { %v627_v6 = vsub.f32 1.0, %v626_v5  ;;  %1146 = vmatpush.msrb.mxu0 %v3770_v31 }
 0x79c   :  { %v628_v7 = vmul.f32 %v3281_v1, %v627_v6  ;;  %1147 = vmatpush.msrb.mxu0 %v3781_v34 }
 0x79e   :  { %v629_v8 = vadd.f32 %v3281_v1, %v628_v7 }
 0x7a0   :  { %v633_v11 = vsel %vm632_vm14, %v3281_v1, %v629_v8 }
 0x7a1   :  { %v638_v14 = vsel %vm635_vm15, %v637_v12, %v633_v11 }
 0x7a2   :  { %v641_v21 = vmul.f32 %v638_v14, %v3834_v19 }
 0x7db   :  { %v559_v61 = vpop.permute.xlu2 %558 }
 0x7dc   :  { %v561_v63 = vmul.f32 %v559_v61, %v553_v62 }
 0x7de   :  { %563 = vrot.lane.b32.xlu1 %v561_v63, %s3574_s1 }
 0x7f5   :  { %v644_v13 = vpop.permute.xlu0 %643 }
 0x7f6   :  { %v646_v15 = vmul.f32 %v644_v13, %v638_v14 }
 0x7f8   :  { %648 = vrot.lane.b32.xlu2 %v646_v15, %s3574_s1 }
 0x816   :  { %v749_v33 = vpop.f32.mrf.mxu0 }
 0x817   :  { %v750_v35 = vadd.f32 %v3755_v4, %v749_v33 }
 0x850   :  { %v564_v17 = vpop.permute.xlu1 %563 }
 0x851   :  { %v3863_v18 = vadd.f32 %v564_v17, %v556_v16 }
 0x852   :  { %v649_v22 = vpop.permute.xlu2 %648 }
 0x853   :  { %3282 = vtanh.f32 %v3863_v18  ;;  %v3867_v23 = vadd.f32 %v649_v22, %v641_v21 }
 0x855   :  { %3284 = vtanh.f32 %v3867_v23 }
 0x859   :  { %v3283_v26 = vpop.eup %3282 }
 0x85a   :  { %569 = vrot.lane.b32.xlu0 %v3283_v26, %s3575_s4 }
 0x85b   :  { %v3285_v27 = vpop.eup %3284 }
 0x85c   :  { %654 = vrot.lane.b32.xlu1 %v3285_v27, %s3575_s4 }
 0x8cc   :  { %v570_v19 = vpop.permute.xlu0 %569 }
 0x8cd   :  { %v572_v20 = vmul.f32 %v570_v19, %v553_v62 }
 0x8ce   :  { %v655_v28 = vpop.permute.xlu1 %654 }
 0x8cf   :  { %v657_v29 = vmul.f32 %v655_v28, %v638_v14  ;;  %663 = vrot.lane.b32.xlu0 %v572_v20, %s3573_s12 }
 0x8d1   :  { %659 = vrot.lane.b32.xlu2 %v657_v29, %s3576_s10 }
 0x92b   :  { %v660_v24 = vpop.permute.xlu2 %659 }
 0x92c   :  { %3142 = vmatmul.msk.f32.vlgmr.msrb.gmra.mxu1 %vm114_vm0, %v660_v24 }
 0x92d   :  { %1209 = vmatpush.msrb.mxu1 %v3735_v0 }
 0x941   :  { %v664_v30 = vpop.permute.xlu0 %663 }
 0x942   :  { %v666_v32 = vsel %vm114_vm0, %v660_v24, %v664_v30 }
 0x943   :  { %3139 = vmatmul.msk.f32.vlgmr.msra.gmra.mxu2 %vm204_vm5, %v666_v32 }
 0x944   :  { %1077 = vmatpush.msra.mxu2 %v3743_v2 }
 0x9a9   :  { %v771_v36 = vpop.f32.mrf.mxu1 }
 0x9aa   :  { %v774_v37 = vadd.f32 %v771_v36, %v750_v35 }
 0x9ac   :  { %3286 = vtanh.f32 %v774_v37  ;;  %v775_v42 = vsub.f32 0.0, %v774_v37 }
 0x9ae   :  { %v776_v43 = vmul.f32 1.442695, %v775_v42 }
 0x9b2   :  { %v3287_v38 = vpop.eup %3286 }
 0x9b3   :  { %797 = vrot.lane.b32.xlu1 %v3287_v38, %s3573_s12 }
 0x9c6   :  { %v687_v39 = vpop.f32.mrf.mxu2 }
 0x9c7   :  { %v688_v40 = vadd.f32 %v3798_v41, %v687_v39 }
 0x9c9   :  { %3288 = vtanh.f32 %v688_v40  ;;  %v690_v44 = vsub.f32 0.0, %v688_v40 }
 0x9ca   :  { %3290 = vpow2.f32 %v776_v43 }
 0x9cb   :  { %v691_v45 = vmul.f32 1.442695, %v690_v44 }
 0x9cd   :  { %3292 = vpow2.f32 %v691_v45 }
 0x9cf   :  { %v3289_v0 = vpop.eup %3288 }
 0x9d0   :  { %712 = vrot.lane.b32.xlu2 %v3289_v0, %s3573_s12  ;;  %v3291_v46 = vpop.eup %3290 }
 0x9d1   :  { %v778_v47 = vadd.f32 1.0, %v3291_v46 }
 0x9d3   :  { %v3293_v48 = vpop.eup %3292  ;;  %3294 = vrcp.f32 %v778_v47  ;;  %v790_v58 = vand.u32 2147483648, %v778_v47  ;;  %vm784_vm2 = vweird.f32 %v778_v47  ;;  %v788_v60 = vand.u32 2147483647, %v778_v47 }
 0x9d4   :  { %v693_v49 = vadd.f32 1.0, %v3293_v48 }
 0x9d5   :  { %v791_v62 = vor.u32 1.1754944e-38, %v790_v58  ;;  %vm789_vm6 = vcmp.eq.f32.partialorder %v788_v60, 8.507059e+37 }
 0x9d6   :  { %3296 = vrcp.f32 %v693_v49  ;;  %v705_v1 = vand.u32 2147483648, %v693_v49  ;;  %vm699_vm7 = vweird.f32 %v693_v49  ;;  %v703_v7 = vand.u32 2147483647, %v693_v49 }
 0x9d8   :  { %v706_v10 = vor.u32 1.1754944e-38, %v705_v1  ;;  %vm704_vm9 = vcmp.eq.f32.partialorder %v703_v7, 8.507059e+37 }
 0x9d9   :  { %v3295_v50 = vpop.eup %3294 }
 0x9da   :  { %v780_v51 = vmul.f32 %v3295_v50, %v778_v47  ;;  %vm785_vm1 = vweird.f32 %v3295_v50 }
 0x9db   :  { %vm786_vm3 = vmor %vm784_vm2, %vm785_vm1 }
 0x9dc   :  { %v3297_v52 = vpop.eup %3296  ;;  %v781_v53 = vsub.f32 1.0, %v780_v51 }
 0x9dd   :  { %v695_v54 = vmul.f32 %v3297_v52, %v693_v49  ;;  %vm700_vm4 = vweird.f32 %v3297_v52 }
 0x9de   :  { %v782_v55 = vmul.f32 %v3295_v50, %v781_v53  ;;  %vm701_vm8 = vmor %vm699_vm7, %vm700_vm4 }
 0x9df   :  { %v696_v56 = vsub.f32 1.0, %v695_v54 }
 0x9e0   :  { %v783_v57 = vadd.f32 %v3295_v50, %v782_v55 }
 0x9e1   :  { %v697_v59 = vmul.f32 %v3297_v52, %v696_v56 }
 0x9e2   :  { %v787_v61 = vsel %vm786_vm3, %v3295_v50, %v783_v57 }
 0x9e3   :  { %v698_v63 = vadd.f32 %v3297_v52, %v697_v59  ;;  %v792_v6 = vsel %vm789_vm6, %v791_v62, %v787_v61 }
 0x9e4   :  { %v795_v14 = vmul.f32 %v792_v6, %v3867_v23  ;;  %v3144_v23 = vld [vmem:[%s4430_s6 + $0x14] sm:$0xf] }
 0x9e5   :  { %v702_v9 = vsel %vm701_vm8, %v3297_v52, %v698_v63  ;;  %3145 = vmatmul.msk.f32.vlgmr.msrb.gmra.mxu2 %vm114_vm0, %v3144_v23 }
 0x9e6   :  { %v707_v12 = vsel %vm704_vm9, %v706_v10, %v702_v9  ;;  %1300 = vmatpush.msrb.mxu2 %v3770_v31 }
 0x9e7   :  { %v710_v17 = vmul.f32 %v707_v12, %v3863_v18 }
 0x9e8   :  { %1301 = vmatpush.msrb.mxu2 %v3781_v34 }
 0xa25   :  { %v798_v5 = vpop.permute.xlu1 %797 }
 0xa26   :  { %v800_v8 = vmul.f32 %v798_v5, %v792_v6 }
 0xa28   :  { %802 = vrot.lane.b32.xlu0 %v800_v8, %s3574_s1 }
 0xa2a   :  { %v713_v11 = vpop.permute.xlu2 %712 }
 0xa2b   :  { %v715_v13 = vmul.f32 %v713_v11, %v707_v12 }
 0xa2d   :  { %717 = vrot.lane.b32.xlu1 %v715_v13, %s3574_s1 }
 0xa68   :  { %v903_v30 = vpop.f32.mrf.mxu2 }
 0xa69   :  { %v904_v31 = vadd.f32 %v3755_v4, %v903_v30 }
 0xa9a   :  { %v803_v15 = vpop.permute.xlu0 %802 }
 0xa9b   :  { %v3892_v16 = vadd.f32 %v803_v15, %v795_v14 }
 0xa9d   :  { %3298 = vtanh.f32 %v3892_v16 }
 0xa9f   :  { %v718_v21 = vpop.permute.xlu1 %717 }
 0xaa0   :  { %v3896_v22 = vadd.f32 %v718_v21, %v710_v17 }
 0xaa2   :  { %3300 = vtanh.f32 %v3896_v22 }
 0xaa3   :  { %v3299_v26 = vpop.eup %3298 }
 0xaa4   :  { %808 = vrot.lane.b32.xlu2 %v3299_v26, %s3575_s4 }
 0xaa8   :  { %v3301_v27 = vpop.eup %3300 }
 0xaa9   :  { %723 = vrot.lane.b32.xlu0 %v3301_v27, %s3575_s4 }
 0xafe   :  { %v809_v25 = vpop.permute.xlu2 %808 }
 0xaff   :  { %v811_v19 = vmul.f32 %v809_v25, %v792_v6 }
 0xb01   :  { %813 = vrot.lane.b32.xlu1 %v811_v19, %s3576_s10 }
 0xb1b   :  { %v724_v18 = vpop.permute.xlu0 %723 }
 0xb1c   :  { %v726_v20 = vmul.f32 %v724_v18, %v707_v12 }
 0xb1e   :  { %817 = vrot.lane.b32.xlu2 %v726_v20, %s3573_s12 }
 0xb73   :  { %v814_v28 = vpop.permute.xlu1 %813 }
 0xb74   :  { %3146 = vmatmul.msk.f32.vlgmr.msra.gmra.mxu0 %vm114_vm0, %v814_v28 }
 0xb78   :  { %v818_v29 = vpop.permute.xlu2 %817 }
 0xb79   :  { %v820_v24 = vsel %vm114_vm0, %v814_v28, %v818_v29 }
 0xb7a   :  { %3143 = vmatmul.msk.f32.vlgmr.msrb.gmra.mxu3 %vm204_vm5, %v820_v24 }
 0xb7b   :  { %1231 = vmatpush.msrb.mxu3 %v3743_v2 }
 0xbf1   :  { %v925_v32 = vpop.f32.mrf.mxu0 }
 0xbf2   :  { %v928_v33 = vadd.f32 %v925_v32, %v904_v31 }
 0xbf4   :  { %3302 = vtanh.f32 %v928_v33  ;;  %v929_v38 = vsub.f32 0.0, %v928_v33 }
 0xbf6   :  { %v930_v39 = vmul.f32 1.442695, %v929_v38 }
 0xbfa   :  { %v3303_v34 = vpop.eup %3302 }
 0xbfb   :  { %951 = vrot.lane.b32.xlu0 %v3303_v34, %s3573_s12 }
 0xbfd   :  { %v841_v35 = vpop.f32.mrf.mxu3 }
 0xbfe   :  { %v842_v36 = vadd.f32 %v3798_v41, %v841_v35 }
 0xc00   :  { %3304 = vtanh.f32 %v842_v36  ;;  %v844_v2 = vsub.f32 0.0, %v842_v36 }
 0xc01   :  { %3306 = vpow2.f32 %v930_v39 }
 0xc02   :  { %v845_v0 = vmul.f32 1.442695, %v844_v2 }
 0xc04   :  { %3308 = vpow2.f32 %v845_v0 }
 0xc06   :  { %v3305_v37 = vpop.eup %3304 }
 0xc07   :  { %866 = vrot.lane.b32.xlu1 %v3305_v37, %s3573_s12  ;;  %v3307_v40 = vpop.eup %3306 }
 0xc08   :  { %v932_v42 = vadd.f32 1.0, %v3307_v40 }
 0xc0a   :  { %3310 = vrcp.f32 %v932_v42  ;;  %v3309_v43 = vpop.eup %3308  ;;  %v944_v52 = vand.u32 2147483648, %v932_v42  ;;  %vm938_vm11 = vweird.f32 %v932_v42  ;;  %v942_v53 = vand.u32 2147483647, %v932_v42 }
 0xc0b   :  { %v847_v45 = vadd.f32 1.0, %v3309_v43 }
 0xc0c   :  { %v945_v56 = vor.u32 1.1754944e-38, %v944_v52  ;;  %vm943_vm13 = vcmp.eq.f32.partialorder %v942_v53, 8.507059e+37 }
 0xc0d   :  { %3312 = vrcp.f32 %v847_v45  ;;  %v859_v62 = vand.u32 2147483648, %v847_v45  ;;  %vm853_vm15 = vweird.f32 %v847_v45  ;;  %v857_v63 = vand.u32 2147483647, %v847_v45 }
 0xc0f   :  { %v860_v5 = vor.u32 1.1754944e-38, %v859_v62  ;;  %vm858_vm2 = vcmp.eq.f32.partialorder %v857_v63, 8.507059e+37 }
 0xc10   :  { %v3311_v44 = vpop.eup %3310 }
 0xc11   :  { %v934_v46 = vmul.f32 %v3311_v44, %v932_v42  ;;  %vm939_vm10 = vweird.f32 %v3311_v44 }
 0xc12   :  { %vm940_vm12 = vmor %vm938_vm11, %vm939_vm10 }
 0xc13   :  { %v935_v47 = vsub.f32 1.0, %v934_v46  ;;  %v3313_v49 = vpop.eup %3312 }
 0xc14   :  { %v849_v51 = vmul.f32 %v3313_v49, %v847_v45  ;;  %vm854_vm14 = vweird.f32 %v3313_v49 }
 0xc15   :  { %v936_v48 = vmul.f32 %v3311_v44, %v935_v47  ;;  %vm855_vm1 = vmor %vm853_vm15, %vm854_vm14 }
 0xc16   :  { %v850_v55 = vsub.f32 1.0, %v849_v51 }
 0xc17   :  { %v937_v50 = vadd.f32 %v3311_v44, %v936_v48 }
 0xc18   :  { %v851_v60 = vmul.f32 %v3313_v49, %v850_v55 }
 0xc19   :  { %v941_v54 = vsel %vm940_vm12, %v3311_v44, %v937_v50 }
 0xc1a   :  { %v946_v57 = vsel %vm943_vm13, %v945_v56, %v941_v54  ;;  %v852_v61 = vadd.f32 %v3313_v49, %v851_v60 }
 0xc1b   :  { %v949_v9 = vmul.f32 %v946_v57, %v3892_v16  ;;  %v3148_v16 = vld [vmem:[%s4430_s6 + $0x18] sm:$0xf] }
 0xc1c   :  { %v856_v1 = vsel %vm855_vm1, %v3313_v49, %v852_v61  ;;  %3149 = vmatmul.msk.f32.vlgmr.msra.gmra.mxu3 %vm114_vm0, %v3148_v16 }
 0xc1d   :  { %v861_v7 = vsel %vm858_vm2, %v860_v5, %v856_v1 }
 0xc1e   :  { %v864_v13 = vmul.f32 %v861_v7, %v3896_v22 }
 0xc6d   :  { %v952_v58 = vpop.permute.xlu0 %951 }
 0xc6e   :  { %v954_v59 = vmul.f32 %v952_v58, %v946_v57 }
 0xc70   :  { %956 = vrot.lane.b32.xlu2 %v954_v59, %s3574_s1 }
 0xc79   :  { %v867_v6 = vpop.permute.xlu1 %866 }
 0xc7a   :  { %v869_v8 = vmul.f32 %v867_v6, %v861_v7 }
 0xc7c   :  { %871 = vrot.lane.b32.xlu0 %v869_v8, %s3574_s1 }
 0xc9f   :  { %v1057_v18 = vpop.f32.mrf.mxu3 }
 0xca0   :  { %v1058_v20 = vadd.f32 %v3755_v4, %v1057_v18  ;;  %v3970_v18 = vld [vmem:[%s4434_s8] ss:$0 sm:$0xff] }
 0xcca   :  { %v957_v10 = vpop.permute.xlu2 %956 }
 0xccb   :  { %v3920_v11 = vadd.f32 %v957_v10, %v949_v9 }
 0xccd   :  { %3314 = vtanh.f32 %v3920_v11 }
 0xcd3   :  { %v3315_v12 = vpop.eup %3314 }
 0xcd4   :  { %962 = vrot.lane.b32.xlu1 %v3315_v12, %s3575_s4 }
 0xcee   :  { %v872_v14 = vpop.permute.xlu0 %871 }
 0xcef   :  { %v3925_v15 = vadd.f32 %v872_v14, %v864_v13  ;;  %v3152_v14 = vld [vmem:[%s4430_s6 + $0x1c] sm:$0xf]  ;;  %s3108_s6 = sshll.u32 %s4411_s28, 4  ;;  %s3586_s28 = smov [#allocation2]   ;;  %s3109_s6 = int_to_ptr.hbm [resolvable:$true] %s3108_s6 }
 0xcf1   :  { %3316 = vtanh.f32 %v3925_v15 }
 0xcf7   :  { %v3317_v17 = vpop.eup %3316 }
 0xcf8   :  { %877 = vrot.lane.b32.xlu2 %v3317_v17, %s3575_s4 }
 0xd46   :  { %v963_v21 = vpop.permute.xlu1 %962 }
 0xd47   :  { %v965_v26 = vmul.f32 %v963_v21, %v946_v57 }
 0xd49   :  { %967 = vrot.lane.b32.xlu0 %v965_v26, %s3576_s10  ;;  %v3492_v26 = vld [vmem:[%s4432_s7] ss:$0 sm:$0xff]  ;;  %s4438_s7 = sld [smem:[#allocation16_spill]] }
 0xd52   :  { %v878_v27 = vpop.permute.xlu2 %877 }
 0xd53   :  { %v880_v22 = vmul.f32 %v878_v27, %v861_v7 }
 0xd55   :  { %971 = vrot.lane.b32.xlu1 %v880_v22, %s3573_s12 }
 0xdbb   :  { %v968_v25 = vpop.permute.xlu0 %967 }
 0xdbc   :  { %3150 = vmatmul.msk.f32.vlgmr.msra.gmra.mxu2 %vm114_vm0, %v968_v25 }
 0xdc7   :  { %v972_v23 = vpop.permute.xlu1 %971 }
 0xdc8   :  { %v974_v19 = vsel %vm114_vm0, %v968_v25, %v972_v23 }
 0xdc9   :  { %3147 = vmatmul.msk.f32.vlgmr.msra.gmra.mxu1 %vm204_vm5, %v974_v19 }
 0xdd1   :  { %3153 = vmatmul.msk.f32.vlgmr.msrb.gmra.mxu1 %vm114_vm0, %v3152_v14 }
 0xe3f   :  { %v1079_v28 = vpop.f32.mrf.mxu2 }
 0xe40   :  { %v1082_v29 = vadd.f32 %v1079_v28, %v1058_v20 }
 0xe42   :  { %3318 = vtanh.f32 %v1082_v29  ;;  %v1083_v33 = vsub.f32 0.0, %v1082_v29 }
 0xe44   :  { %v1084_v34 = vmul.f32 1.442695, %v1083_v33 }
 0xe46   :  { %v995_v24 = vpop.f32.mrf.mxu1 }
 0xe47   :  { %v996_v30 = vadd.f32 %v3798_v41, %v995_v24 }
 0xe48   :  { %v3319_v31 = vpop.eup %3318 }
 0xe49   :  { %3320 = vtanh.f32 %v996_v30  ;;  %1105 = vrot.lane.b32.xlu2 %v3319_v31, %s3573_s12  ;;  %v998_v38 = vsub.f32 0.0, %v996_v30 }
 0xe4a   :  { %3322 = vpow2.f32 %v1084_v34 }
 0xe4b   :  { %v999_v2 = vmul.f32 1.442695, %v998_v38 }
 0xe4e   :  { %v1211_v21 = vpop.f32.mrf.mxu1 }
 0xe4f   :  { %v3321_v32 = vpop.eup %3320  ;;  %v1212_v27 = vadd.f32 %v3492_v26, %v1211_v21 }
 0xe50   :  { %1020 = vrot.lane.b32.xlu0 %v3321_v32, %s3573_s12  ;;  %v3323_v35 = vpop.eup %3322 }
 0xe51   :  { %v1086_v36 = vadd.f32 1.0, %v3323_v35 }
 0xe53   :  { %3324 = vrcp.f32 %v1086_v36  ;;  %v1098_v0 = vand.u32 2147483648, %v1086_v36  ;;  %vm1092_vm4 = vweird.f32 %v1086_v36  ;;  %v1096_v42 = vand.u32 2147483647, %v1086_v36 }
 0xe54   :  { %3326 = vpow2.f32 %v999_v2 }
 0xe55   :  { %v1099_v45 = vor.u32 1.1754944e-38, %v1098_v0  ;;  %vm1097_vm7 = vcmp.eq.f32.partialorder %v1096_v42, 8.507059e+37 }
 0xe59   :  { %v3325_v4 = vpop.eup %3324 }
 0xe5a   :  { %v1088_v37 = vmul.f32 %v3325_v4, %v1086_v36  ;;  %vm1093_vm3 = vweird.f32 %v3325_v4  ;;  %v3327_v43 = vpop.eup %3326 }
 0xe5b   :  { %vm1094_vm6 = vmor %vm1092_vm4, %vm1093_vm3  ;;  %v1001_v46 = vadd.f32 1.0, %v3327_v43 }
 0xe5c   :  { %v1089_v39 = vsub.f32 1.0, %v1088_v37 }
 0xe5d   :  { %3328 = vrcp.f32 %v1001_v46  ;;  %v1013_v55 = vand.u32 2147483648, %v1001_v46  ;;  %vm1007_vm9 = vweird.f32 %v1001_v46  ;;  %v1011_v56 = vand.u32 2147483647, %v1001_v46 }
 0xe5e   :  { %v1090_v40 = vmul.f32 %v3325_v4, %v1089_v39 }
 0xe5f   :  { %v1014_v58 = vor.u32 1.1754944e-38, %v1013_v55  ;;  %vm1012_vm11 = vcmp.eq.f32.partialorder %v1011_v56, 8.507059e+37 }
 0xe60   :  { %v1091_v41 = vadd.f32 %v3325_v4, %v1090_v40 }
 0xe62   :  { %v1095_v44 = vsel %vm1094_vm6, %v3325_v4, %v1091_v41 }
 0xe63   :  { %v1100_v48 = vsel %vm1097_vm7, %v1099_v45, %v1095_v44  ;;  %v3329_v50 = vpop.eup %3328 }
 0xe64   :  { %v1003_v51 = vmul.f32 %v3329_v50, %v1001_v46  ;;  %vm1008_vm8 = vweird.f32 %v3329_v50  ;;  %v1103_v62 = vmul.f32 %v1100_v48, %v3920_v11 }
 0xe65   :  { %vm1009_vm10 = vmor %vm1007_vm9, %vm1008_vm8 }
 0xe66   :  { %v1004_v52 = vsub.f32 1.0, %v1003_v51 }
 0xe68   :  { %v1005_v53 = vmul.f32 %v3329_v50, %v1004_v52 }
 0xe6a   :  { %v1006_v54 = vadd.f32 %v3329_v50, %v1005_v53 }
 0xe6c   :  { %v1010_v57 = vsel %vm1009_vm10, %v3329_v50, %v1006_v54  ;;  %vm1411_vm10 = vcmask 1043456  }
 0xe6d   :  { %v1015_v60 = vsel %vm1012_vm11, %v1014_v58, %v1010_v57  ;;  %vm1407_vm11 = vcmask 31744  }
 0xe6e   :  { %v1018_v5 = vmul.f32 %v1015_v60, %v3925_v15 }
 0xea3   :  { %v1106_v47 = vpop.permute.xlu2 %1105 }
 0xea4   :  { %v1108_v49 = vmul.f32 %v1106_v47, %v1100_v48 }
 0xea6   :  { %1110 = vrot.lane.b32.xlu1 %v1108_v49, %s3574_s1 }
 0xec2   :  { %v1021_v59 = vpop.permute.xlu0 %1020 }
 0xec3   :  { %v1023_v61 = vmul.f32 %v1021_v59, %v1015_v60 }
 0xec5   :  { %1025 = vrot.lane.b32.xlu2 %v1023_v61, %s3574_s1 }
 0xf18   :  { %v1111_v63 = vpop.permute.xlu1 %1110 }
 0xf19   :  { %v3945_v1 = vadd.f32 %v1111_v63, %v1103_v62 }
 0xf1b   :  { %3330 = vtanh.f32 %v3945_v1 }
 0xf1f   :  { %v1026_v6 = vpop.permute.xlu2 %1025 }
 0xf20   :  { %v3949_v7 = vadd.f32 %v1026_v6, %v1018_v5 }
 0xf21   :  { %v3331_v8 = vpop.eup %3330 }
 0xf22   :  { %3332 = vtanh.f32 %v3949_v7  ;;  %1116 = vrot.lane.b32.xlu0 %v3331_v8, %s3575_s4 }
 0xf28   :  { %v3333_v9 = vpop.eup %3332 }
 0xf29   :  { %1031 = vrot.lane.b32.xlu1 %v3333_v9, %s3575_s4 }
 0xf94   :  { %v1117_v10 = vpop.permute.xlu0 %1116 }
 0xf95   :  { %v1119_v11 = vmul.f32 %v1117_v10, %v1100_v48 }
 0xf97   :  { %1121 = vrot.lane.b32.xlu2 %v1119_v11, %s3576_s10 }
 0xf9b   :  { %v1032_v12 = vpop.permute.xlu1 %1031 }
 0xf9c   :  { %v1034_v13 = vmul.f32 %v1032_v12, %v1015_v60 }
 0xf9e   :  { %1125 = vrot.lane.b32.xlu0 %v1034_v13, %s3573_s12 }
 0xff1   :  { %v1122_v15 = vpop.permute.xlu2 %1121 }
 0xff2   :  { %3154 = vmatmul.msk.f32.vlgmr.msrb.gmra.mxu3 %vm114_vm0, %v1122_v15 }
0x1010   :  { %v1126_v17 = vpop.permute.xlu0 %1125 }
0x1011   :  { %v1128_v16 = vsel %vm114_vm0, %v1122_v15, %v1126_v17 }
0x1012   :  { %3151 = vmatmul.msk.f32.vlgmr.msrb.gmra.mxu0 %vm204_vm5, %v1128_v16 }
0x1075   :  { %v1233_v22 = vpop.f32.mrf.mxu3 }
0x1076   :  { %v1236_v25 = vadd.f32 %v1233_v22, %v1212_v27 }
0x1078   :  { %3334 = vtanh.f32 %v1236_v25  ;;  %v1237_v29 = vsub.f32 0.0, %v1236_v25 }
0x107a   :  { %v1238_v24 = vmul.f32 1.442695, %v1237_v29 }
0x107e   :  { %v3335_v23 = vpop.eup %3334 }
0x107f   :  { %1259 = vrot.lane.b32.xlu2 %v3335_v23, %s3573_s12 }
0x108f   :  { %v1149_v19 = vpop.f32.mrf.mxu0 }
0x1090   :  { %v1150_v20 = vadd.f32 %v3970_v18, %v1149_v19 }
0x1092   :  { %3336 = vtanh.f32 %v1150_v20  ;;  %v1152_v41 = vsub.f32 0.0, %v1150_v20 }
0x1093   :  { %3338 = vpow2.f32 %v1238_v24 }
0x1094   :  { %v1153_v42 = vmul.f32 1.442695, %v1152_v41 }
0x1098   :  { %v3337_v28 = vpop.eup %3336 }
0x1099   :  { %1174 = vrot.lane.b32.xlu1 %v3337_v28, %s3573_s12  ;;  %v3339_v30 = vpop.eup %3338 }
0x109a   :  { %v1240_v31 = vadd.f32 1.0, %v3339_v30 }
0x109c   :  { %3340 = vrcp.f32 %v1240_v31  ;;  %v1252_v4 = vand.u32 2147483648, %v1240_v31  ;;  %vm1246_vm13 = vweird.f32 %v1240_v31  ;;  %v1250_v37 = vand.u32 2147483647, %v1240_v31 }
0x109d   :  { %3342 = vpow2.f32 %v1153_v42  ;;  %v1436_v42 = vld [vmem:[%s4439_s5] sm:$0xff] }
0x109e   :  { %v1253_v39 = vor.u32 1.1754944e-38, %v1252_v4  ;;  %vm1251_vm15 = vcmp.eq.f32.partialorder %v1250_v37, 8.507059e+37  ;;  %v1374_v37 = vld [vmem:[%s4436_s30] sm:$0xff]  ;;  %1459 = vmatpush.msra.mxu2 %v1436_v42  ;;  %s3579_s30 = smov 116  }
0x109f   :  { %1397 = vmatpush.msra.mxu1 %v1374_v37 }
0x10a2   :  { %v3341_v32 = vpop.eup %3340 }
0x10a3   :  { %v1242_v33 = vmul.f32 %v3341_v32, %v1240_v31  ;;  %vm1247_vm12 = vweird.f32 %v3341_v32  ;;  %v3343_v43 = vpop.eup %3342 }
0x10a4   :  { %vm1248_vm14 = vmor %vm1246_vm13, %vm1247_vm12  ;;  %v1155_v44 = vadd.f32 1.0, %v3343_v43  ;;  %v3222_v43 = vld [vmem:[%s4440_s3] ss:$0 sm:$0xff]  ;;  %s3580_s3 = smov 108  }
0x10a5   :  { %v1243_v34 = vsub.f32 1.0, %v1242_v33 }
0x10a6   :  { %3344 = vrcp.f32 %v1155_v44  ;;  %v1167_v50 = vand.u32 2147483648, %v1155_v44  ;;  %vm1161_vm2 = vweird.f32 %v1155_v44  ;;  %v1165_v51 = vand.u32 2147483647, %v1155_v44 }
0x10a7   :  { %v1244_v35 = vmul.f32 %v3341_v32, %v1243_v34 }
0x10a8   :  { %v1168_v53 = vor.u32 1.1754944e-38, %v1167_v50  ;;  %vm1166_vm4 = vcmp.eq.f32.partialorder %v1165_v51, 8.507059e+37  ;;  %v1494_v51 = vld [vmem:[%s4399_s16] sm:$0xff] }
0x10a9   :  { %v1245_v36 = vadd.f32 %v3341_v32, %v1244_v35  ;;  %v1343_v35 = vld [vmem:[%s4435_s2] sm:$0xff]  ;;  %1517 = vmatpush.msrb.mxu1 %v1494_v51 }
0x10aa   :  { %1368 = vmatpush.msra.mxu0 %v1343_v35 }
0x10ab   :  { %v1249_v38 = vsel %vm1248_vm14, %v3341_v32, %v1245_v36 }
0x10ac   :  { %v1254_v40 = vsel %vm1251_vm15, %v1253_v39, %v1249_v38  ;;  %v3345_v45 = vpop.eup %3344  ;;  %v1402_v39 = vld [vmem:[%s4437_s11] sm:$0xf] }
0x10ad   :  { %v1157_v46 = vmul.f32 %v3345_v45, %v1155_v44  ;;  %vm1162_vm1 = vweird.f32 %v3345_v45  ;;  %v1257_v57 = vmul.f32 %v1254_v40, %v3945_v1  ;;  %3158 = vmatpush.msk.msra.mxu3 %vm1411_vm10, %v1402_v39  ;;  %v4098_v39 = vld [vmem:[%s4406_s23] sm:$0xff] }
0x10ae   :  { %vm1163_vm3 = vmor %vm1161_vm2, %vm1162_vm1 }
0x10af   :  { %v1158_v47 = vsub.f32 1.0, %v1157_v46  ;;  %v1465_v46 = vld [vmem:[%s4397_s14] sm:$0xff]  ;;  %s3578_s14 = smov 120  }
0x10b0   :  { %1488 = vmatpush.msrb.mxu0 %v1465_v46 }
0x10b1   :  { %v1159_v48 = vmul.f32 %v3345_v45, %v1158_v47 }
0x10b3   :  { %v1160_v49 = vadd.f32 %v3345_v45, %v1159_v48 }
0x10b5   :  { %v1164_v52 = vsel %vm1163_vm3, %v3345_v45, %v1160_v49 }
0x10b6   :  { %v1169_v55 = vsel %vm1166_vm4, %v1168_v53, %v1164_v52  ;;  %v3224_v52 = vld [vmem:[%s4396_s13] ss:$0 sm:$0xff] }
0x10b7   :  { %v1172_v61 = vmul.f32 %v1169_v55, %v3949_v7 }
0x10d9   :  { %v1260_v2 = vpop.permute.xlu2 %1259 }
0x10da   :  { %v1262_v0 = vmul.f32 %v1260_v2, %v1254_v40  ;;  %v3221_v2 = vld [vmem:[%s4438_s7] ss:$0 sm:$0xff]  ;;  %s4441_s7 = sld [smem:[#allocation20_spill]] }
0x10dc   :  { %1264 = vrot.lane.b32.xlu1 %v1262_v0, %s3574_s1 }
0x10e0   :  { %v3223_v47 = vld [vmem:[%s4441_s7] ss:$0 sm:$0xff]  ;;  %s3086_s7 = sshll.u32 %s4409_s26, 4  ;;  %s3087_s7 = int_to_ptr.hbm [resolvable:$true] %s3086_s7 }
0x110b   :  { %v1175_v54 = vpop.permute.xlu1 %1174 }
0x110c   :  { %v1177_v56 = vmul.f32 %v1175_v54, %v1169_v55 }
0x110e   :  { %1179 = vrot.lane.b32.xlu0 %v1177_v56, %s3574_s1  ;;  %v1526_v56 = vld [vmem:[%s4401_s18] sm:$0xf] }
0x110f   :  { %3163 = vmatpush.msk.msrb.mxu3 %vm1411_vm10, %v1526_v56 }
0x114e   :  { %v1265_v58 = vpop.permute.xlu1 %1264 }
0x114f   :  { %v1267_v59 = vadd.f32 %v1265_v58, %v1257_v57  ;;  %v3225_v57 = vld [vmem:[%s4398_s15] ss:$0 sm:$0xff] }
0x1151   :  { %3346 = vtanh.f32 %v1267_v59 }
0x1157   :  { %v3347_v60 = vpop.eup %3346 }
0x1158   :  { %1270 = vrot.lane.b32.xlu0 %v3347_v60, %s3575_s4 }
0x1180   :  { %v1180_v62 = vpop.permute.xlu0 %1179 }
0x1181   :  { %v1182_v63 = vadd.f32 %v1180_v62, %v1172_v61  ;;  %v4039_v61 = vld [vmem:[%s4403_s20] sm:$0xf] }
0x1182   :  { %v3226_v62 = vld [vmem:[%s4400_s17] ss:$0 sm:$0xff] }
0x1183   :  { %3348 = vtanh.f32 %v1182_v63 }
0x1189   :  { %v3349_v5 = vpop.eup %3348 }
0x118a   :  { %1185 = vrot.lane.b32.xlu2 %v3349_v5, %s3575_s4 }
0x11ca   :  { %v1271_v6 = vpop.permute.xlu0 %1270 }
0x11cb   :  { %v1273_v8 = vmul.f32 %v1271_v6, %v1254_v40 }
0x11cd   :  { %1275 = vrot.lane.b32.xlu1 %v1273_v8, %s3576_s10 }
0x11e4   :  { %v1186_v9 = vpop.permute.xlu2 %1185 }
0x11e5   :  { %v1188_v1 = vmul.f32 %v1186_v9, %v1169_v55  ;;  %v4057_v9 = vld [vmem:[%s4404_s21] sm:$0xff]  ;;  %s3084_s21 = sshll.u32 %s3586_s28, 4  ;;  %s3085_s21 = int_to_ptr.vmem [resolvable:$true] %s3084_s21 }
0x11e7   :  { %1279 = vrot.lane.b32.xlu2 %v1188_v1, %s3573_s12  ;;  %v3227_v1 = vld [vmem:[%s4402_s19] ss:$0 sm:$0xff]  ;;  %s3577_s19 = smov 124  }
0x123f   :  { %v1276_v10 = vpop.permute.xlu1 %1275 }
0x1241   :  { %v1280_v11 = vpop.permute.xlu2 %1279 }
0x1242   :  { %v1282_v12 = vsel %vm114_vm0, %v1276_v10, %v1280_v11 }
0x1243   :  { %3155 = vmatmul.msk.f32.vlgmr.msrb.gmra.mxu2 %vm204_vm5, %v1282_v12 }
0x1244   :  { %3165 = vmatpush.msk.msrb.mxu2 %vm1411_vm10, %v4039_v61 }
0x12c6   :  { %v1303_v7 = vpop.f32.mrf.mxu2 }
0x12c7   :  { %v1304_v13 = vadd.f32 %v3970_v18, %v1303_v7 }
0x12c9   :  { %3350 = vtanh.f32 %v1304_v13  ;;  %v1306_v15 = vsub.f32 0.0, %v1304_v13 }
0x12cb   :  { %v1307_v17 = vmul.f32 1.442695, %v1306_v15 }
0x12cd   :  { %3352 = vpow2.f32 %v1307_v17 }
0x12cf   :  { %v3351_v14 = vpop.eup %3350 }
0x12d0   :  { %1328 = vrot.lane.b32.xlu0 %v3351_v14, %s3573_s12 }
0x12d3   :  { %v3353_v16 = vpop.eup %3352 }
0x12d4   :  { %v1309_v21 = vadd.f32 1.0, %v3353_v16 }
0x12d6   :  { %3354 = vrcp.f32 %v1309_v21  ;;  %v1321_v19 = vand.u32 2147483648, %v1309_v21  ;;  %vm1315_vm7 = vweird.f32 %v1309_v21  ;;  %v1319_v20 = vand.u32 2147483647, %v1309_v21 }
0x12d8   :  { %v1322_v28 = vor.u32 1.1754944e-38, %v1321_v19  ;;  %vm1320_vm9 = vcmp.eq.f32.partialorder %v1319_v20, 8.507059e+37 }
0x12dc   :  { %v3355_v26 = vpop.eup %3354 }
0x12dd   :  { %v1311_v27 = vmul.f32 %v3355_v26, %v1309_v21  ;;  %vm1316_vm6 = vweird.f32 %v3355_v26 }
0x12de   :  { %vm1317_vm8 = vmor %vm1315_vm7, %vm1316_vm6 }
0x12df   :  { %v1312_v22 = vsub.f32 1.0, %v1311_v27 }
0x12e1   :  { %v1313_v25 = vmul.f32 %v3355_v26, %v1312_v22 }
0x12e3   :  { %v1314_v23 = vadd.f32 %v3355_v26, %v1313_v25 }
0x12e5   :  { %v1318_v18 = vsel %vm1317_vm8, %v3355_v26, %v1314_v23 }
0x12e6   :  { %v1323_v24 = vsel %vm1320_vm9, %v1322_v28, %v1318_v18 }
0x12e7   :  { %v1326_v31 = vmul.f32 %v1323_v24, %v1182_v63 }
0x1342   :  { %v1329_v29 = vpop.permute.xlu0 %1328 }
0x1343   :  { %v1331_v30 = vmul.f32 %v1329_v29, %v1323_v24 }
0x1345   :  { %1333 = vrot.lane.b32.xlu1 %v1331_v30, %s3574_s1 }
0x13b7   :  { %v1334_v32 = vpop.permute.xlu1 %1333 }
0x13b8   :  { %v1336_v33 = vadd.f32 %v1334_v32, %v1326_v31 }
0x13ba   :  { %3356 = vtanh.f32 %v1336_v33 }
0x13c0   :  { %v3357_v34 = vpop.eup %3356 }
0x13c1   :  { %1339 = vrot.lane.b32.xlu2 %v3357_v34, %s3575_s4 }
0x141b   :  { %v1340_v36 = vpop.permute.xlu2 %1339 }
0x141c   :  { %v1342_v4 = vmul.f32 %v1340_v36, %v1323_v24 }
0x141e   :  { %1349 = vrot.lane.b32.xlu0 %v1342_v4, %s3576_s10  ;;  %v4091_v4 = vld [vmem:[%s4406_s23 + $0x8] sm:$0xff] }
0x1490   :  { %v1350_v38 = vpop.permute.xlu0 %1349 }
0x1491   :  { %3156 = vmatmul.msk.f32.vlgmr.msra.gmra.mxu0 %vm114_vm0, %v1350_v38 }
0x1492   :  { %1598 = vmatpush.msra.mxu0 %v4057_v9 }
0x150e   :  { %v1370_v40 = vpop.f32.mrf.mxu0 }
0x150f   :  { %v1371_v41 = vadd.f32 %v3221_v2, %v1370_v40 }
0x1511   :  { %v1373_v0 = vmax.f32 %v1371_v41, 0.0 }
0x1513   :  { %3157 = vmatmul.msk.f32.vlgmr.msra.gmra.mxu1 %vm114_vm0, %v1373_v0  ;;  %v4112_v0 = vld [vmem:[%s4407_s24] ss:$0 sm:$0xff] }
0x1514   :  { %1663 = vmatpush.msra.mxu1 %v4091_v4 }
0x1516   :  { %1664 = vmatpush.msra.mxu1 %v4098_v39 }
0x1590   :  { %v1399_v44 = vpop.f32.mrf.mxu1 }
0x1591   :  { %v4010_v45 = vadd.f32 %v3222_v43, %v1399_v44 }
0x1593   :  { %3159 = vmatmul.msk.f32.vlgmr.msra.gmra.mxu3 %vm1407_vm11, %v4010_v45 }
0x1616   :  { %v1432_v48 = vpop.f32.mrf.mxu3 }
0x1617   :  { %v1433_v49 = vadd.f32 %v3223_v47, %v1432_v48 }
0x1619   :  { %v1435_v50 = vmax.f32 %v1433_v49, 0.0 }
0x161b   :  { %3160 = vmatmul.msk.f32.vlgmr.msra.gmra.mxu2 %vm114_vm0, %v1435_v50 }
0x161c   :  { %3169 = vmatpush.msk.msra.mxu2 %vm1411_vm10, %v4039_v61 }
0x169e   :  { %v1461_v53 = vpop.f32.mrf.mxu2 }
0x169f   :  { %v1462_v54 = vadd.f32 %v3224_v52, %v1461_v53 }
0x16a1   :  { %v1464_v55 = vmax.f32 %v1462_v54, 0.0 }
0x16a3   :  { %3161 = vmatmul.msk.f32.vlgmr.msrb.gmra.mxu0 %vm114_vm0, %v1464_v55 }
0x16a4   :  { %1778 = vmatpush.msrb.mxu0 %v4057_v9 }
0x16ab   :  { %1599 = vmatmul.f32.vlgmr.msra.gmra.mxu0 %v3572_v3  ;;  %v4075_v3 = vld [vmem:[%s4405_s22] ss:$0 sm:$0xff] }
0x16ac   :  { %1961 = vmatpush.msra.mxu0 %v4057_v9 }
0x1720   :  { %v1490_v58 = vpop.f32.mrf.mxu0 }
0x1721   :  { %v1491_v59 = vadd.f32 %v3225_v57, %v1490_v58 }
0x1723   :  { %v1493_v60 = vmax.f32 %v1491_v59, 0.0 }
0x1725   :  { %3162 = vmatmul.msk.f32.vlgmr.msrb.gmra.mxu1 %vm114_vm0, %v1493_v60 }
0x1726   :  { %1846 = vmatpush.msrb.mxu1 %v4091_v4 }
0x1728   :  { %v1600_v7 = vpop.f32.mrf.mxu0  ;;  %1847 = vmatpush.msrb.mxu1 %v4098_v39 }
0x17a2   :  { %v1519_v63 = vpop.f32.mrf.mxu1 }
0x17a3   :  { %v4048_v5 = vadd.f32 %v3226_v62, %v1519_v63 }
0x17a5   :  { %v1523_v6 = vrot.slane %v4048_v5, 4 }
0x17a7   :  { %v1525_v8 = vsel %vm1411_vm10, %v4010_v45, %v1523_v6 }
0x17a8   :  { %3164 = vmatmul.msk.f32.vlgmr.msrb.gmra.mxu3 %vm1407_vm11, %v1525_v8 }
0x182b   :  { %v1554_v10 = vpop.f32.mrf.mxu3 }
0x182c   :  { %v4066_v11 = vadd.f32 %v3227_v1, %v1554_v10 }
0x182e   :  { %3166 = vmatmul.msk.f32.vlgmr.msrb.gmra.mxu2 %vm1407_vm11, %v4066_v11 }
0x182f   :  { %3174 = vmatpush.msk.msrb.mxu2 %vm1411_vm10, %v4039_v61 }
0x18b1   :  { %v1580_v12 = vpop.f32.mrf.mxu2 }
0x18b2   :  { %v1581_v13 = vadd.f32 %v4075_v3, %v1580_v12 }
0x18b4   :  { %v1603_v14 = vadd.f32 %v1600_v7, %v1581_v13 }
0x18b6   :  { %3358 = vtanh.f32 %v1603_v14  ;;  %v1604_v17 = vsub.f32 0.0, %v1603_v14 }
0x18b8   :  { %v1605_v16 = vmul.f32 1.442695, %v1604_v17 }
0x18ba   :  { %3360 = vpow2.f32 %v1605_v16 }
0x18bc   :  { %v3359_v15 = vpop.eup %3358 }
0x18bd   :  { %1626 = vrot.lane.b32.xlu1 %v3359_v15, %s3573_s12 }
0x18c0   :  { %v3361_v21 = vpop.eup %3360 }
0x18c1   :  { %v1607_v26 = vadd.f32 1.0, %v3361_v21 }
0x18c3   :  { %3362 = vrcp.f32 %v1607_v26  ;;  %v1619_v20 = vand.u32 2147483648, %v1607_v26  ;;  %vm1613_vm13 = vweird.f32 %v1607_v26  ;;  %v1617_v18 = vand.u32 2147483647, %v1607_v26 }
0x18c5   :  { %1737 = vrot.lane.b32.xlu1 %v4066_v11, %s3577_s19  ;;  %v1620_v29 = vor.u32 1.1754944e-38, %v1619_v20  ;;  %vm1618_vm15 = vcmp.eq.f32.partialorder %v1617_v18, 8.507059e+37 }
0x18c9   :  { %v3363_v27 = vpop.eup %3362 }
0x18ca   :  { %v1609_v22 = vmul.f32 %v3363_v27, %v1607_v26  ;;  %vm1614_vm12 = vweird.f32 %v3363_v27 }
0x18cb   :  { %vm1615_vm14 = vmor %vm1613_vm13, %vm1614_vm12 }
0x18cc   :  { %v1610_v25 = vsub.f32 1.0, %v1609_v22 }
0x18ce   :  { %v1611_v23 = vmul.f32 %v3363_v27, %v1610_v25 }
0x18d0   :  { %v1612_v19 = vadd.f32 %v3363_v27, %v1611_v23 }
0x18d2   :  { %v1616_v28 = vsel %vm1615_vm14, %v3363_v27, %v1612_v19 }
0x18d3   :  { %v1621_v30 = vsel %vm1618_vm15, %v1620_v29, %v1616_v28 }
0x18d4   :  { %v1624_v33 = vmul.f32 0.0, %v1621_v30 }
0x192f   :  { %v1627_v24 = vpop.permute.xlu1 %1626 }
0x1930   :  { %v1629_v31 = vmul.f32 %v1627_v24, %v1621_v30 }
0x1932   :  { %1631 = vrot.lane.b32.xlu2 %v1629_v31, %s3574_s1 }
0x1937   :  { %v1738_v32 = vpop.permute.xlu1 %1737 }
0x1938   :  { %3170 = vmatmul.msk.f32.vlgmr.msra.gmra.mxu2 %vm1407_vm11, %v1738_v32 }
0x1939   :  { %3179 = vmatpush.msk.msra.mxu2 %vm1411_vm10, %v4039_v61 }
0x198c   :  { %v1632_v34 = vpop.permute.xlu2 %1631 }
0x198d   :  { %v4084_v35 = vadd.f32 %v1632_v34, %v1624_v33 }
0x198f   :  { %3364 = vtanh.f32 %v4084_v35 }
0x1995   :  { %v3365_v36 = vpop.eup %3364 }
0x1996   :  { %1637 = vrot.lane.b32.xlu0 %v3365_v36, %s3575_s4 }
0x19bb   :  { %v1758_v41 = vpop.f32.mrf.mxu2 }
0x19bc   :  { %v1759_v42 = vadd.f32 %v4075_v3, %v1758_v41 }
0x1a08   :  { %v1638_v37 = vpop.permute.xlu0 %1637 }
0x1a09   :  { %v1640_v38 = vmul.f32 %v1638_v37, %v1621_v30 }
0x1a0b   :  { %1642 = vrot.lane.b32.xlu2 %v1640_v38, %s3576_s10 }
0x1a65   :  { %v1643_v2 = vpop.permute.xlu2 %1642 }
0x1a66   :  { %v1645_v40 = vsel %vm114_vm0, %v1643_v2, 0.0  ;;  %3171 = vmatmul.msk.f32.vlgmr.msrb.gmra.mxu0 %vm114_vm0, %v1643_v2 }
0x1a67   :  { %3167 = vmatmul.msk.f32.vlgmr.msra.gmra.mxu1 %vm204_vm5, %v1645_v40  ;;  %2144 = vmatpush.msrb.mxu0 %v4057_v9 }
0x1a68   :  { %2029 = vmatpush.msra.mxu1 %v4091_v4 }
0x1a6a   :  { %2030 = vmatpush.msra.mxu1 %v4098_v39 }
0x1ae3   :  { %v1780_v43 = vpop.f32.mrf.mxu0 }
0x1ae4   :  { %v1783_v44 = vadd.f32 %v1780_v43, %v1759_v42  ;;  %v1666_v46 = vpop.f32.mrf.mxu1 }
0x1ae5   :  { %v1667_v47 = vadd.f32 %v4112_v0, %v1666_v46 }
0x1ae6   :  { %3366 = vtanh.f32 %v1783_v44  ;;  %v1784_v50 = vsub.f32 0.0, %v1783_v44 }
0x1ae7   :  { %3368 = vtanh.f32 %v1667_v47  ;;  %v1669_v51 = vsub.f32 0.0, %v1667_v47 }
0x1ae8   :  { %v1785_v52 = vmul.f32 1.442695, %v1784_v50 }
0x1ae9   :  { %v1670_v53 = vmul.f32 1.442695, %v1669_v51 }
0x1aea   :  { %3370 = vpow2.f32 %v1785_v52 }
0x1aeb   :  { %3372 = vpow2.f32 %v1670_v53 }
0x1aec   :  { %v3367_v48 = vpop.eup %3366 }
0x1aed   :  { %v3369_v49 = vpop.eup %3368  ;;  %1806 = vrot.lane.b32.xlu1 %v3367_v48, %s3573_s12 }
0x1aee   :  { %1691 = vrot.lane.b32.xlu0 %v3369_v49, %s3573_s12 }
0x1af0   :  { %v3371_v54 = vpop.eup %3370 }
0x1af1   :  { %v3373_v55 = vpop.eup %3372  ;;  %v1787_v56 = vadd.f32 1.0, %v3371_v54 }
0x1af2   :  { %v1672_v57 = vadd.f32 1.0, %v3373_v55 }
0x1af3   :  { %3374 = vrcp.f32 %v1787_v56  ;;  %v1799_v12 = vand.u32 2147483648, %v1787_v56  ;;  %vm1793_vm3 = vweird.f32 %v1787_v56  ;;  %v1797_v13 = vand.u32 2147483647, %v1787_v56 }
0x1af4   :  { %3376 = vrcp.f32 %v1672_v57  ;;  %v1684_v14 = vand.u32 2147483648, %v1672_v57  ;;  %vm1678_vm6 = vweird.f32 %v1672_v57  ;;  %v1682_v15 = vand.u32 2147483647, %v1672_v57 }
0x1af5   :  { %v1800_v16 = vor.u32 1.1754944e-38, %v1799_v12  ;;  %vm1798_vm8 = vcmp.eq.f32.partialorder %v1797_v13, 8.507059e+37 }
0x1af6   :  { %v1685_v26 = vor.u32 1.1754944e-38, %v1684_v14  ;;  %vm1683_vm9 = vcmp.eq.f32.partialorder %v1682_v15, 8.507059e+37 }
0x1af9   :  { %v3375_v58 = vpop.eup %3374 }
0x1afa   :  { %v3377_v59 = vpop.eup %3376  ;;  %v1789_v60 = vmul.f32 %v3375_v58, %v1787_v56  ;;  %vm1794_vm1 = vweird.f32 %v3375_v58 }
0x1afb   :  { %v1674_v62 = vmul.f32 %v3377_v59, %v1672_v57  ;;  %vm1679_vm2 = vweird.f32 %v3377_v59  ;;  %vm1795_vm4 = vmor %vm1793_vm3, %vm1794_vm1 }
0x1afc   :  { %v1790_v63 = vsub.f32 1.0, %v1789_v60  ;;  %vm1680_vm7 = vmor %vm1678_vm6, %vm1679_vm2 }
0x1afd   :  { %v1675_v6 = vsub.f32 1.0, %v1674_v62 }
0x1afe   :  { %v1791_v8 = vmul.f32 %v3375_v58, %v1790_v63 }
0x1aff   :  { %v1676_v1 = vmul.f32 %v3377_v59, %v1675_v6 }
0x1b00   :  { %v1792_v10 = vadd.f32 %v3375_v58, %v1791_v8 }
0x1b01   :  { %v1677_v7 = vadd.f32 %v3377_v59, %v1676_v1 }
0x1b02   :  { %v1796_v17 = vsel %vm1795_vm4, %v3375_v58, %v1792_v10 }
0x1b03   :  { %v1681_v21 = vsel %vm1680_vm7, %v3377_v59, %v1677_v7  ;;  %v1801_v22 = vsel %vm1798_vm8, %v1800_v16, %v1796_v17 }
0x1b04   :  { %v1686_v19 = vsel %vm1683_vm9, %v1685_v26, %v1681_v21  ;;  %v1804_v30 = vmul.f32 %v1801_v22, %v4084_v35 }
0x1b05   :  { %v1689_v18 = vmul.f32 0.0, %v1686_v19 }
0x1b5f   :  { %v1807_v27 = vpop.permute.xlu1 %1806 }
0x1b60   :  { %v1809_v25 = vmul.f32 %v1807_v27, %v1801_v22  ;;  %v1692_v23 = vpop.permute.xlu0 %1691 }
0x1b61   :  { %v1694_v20 = vmul.f32 %v1692_v23, %v1686_v19 }
0x1b62   :  { %1811 = vrot.lane.b32.xlu0 %v1809_v25, %s3574_s1 }
0x1b63   :  { %1696 = vrot.lane.b32.xlu2 %v1694_v20, %s3574_s1 }
0x1b6a   :  { %1920 = vrot.lane.b32.xlu0 %v4066_v11, %s3578_s14 }
0x1bbd   :  { %v1697_v28 = vpop.permute.xlu2 %1696 }
0x1bbe   :  { %v4121_v29 = vadd.f32 %v1697_v28, %v1689_v18 }
0x1bc0   :  { %3378 = vtanh.f32 %v4121_v29 }
0x1bc6   :  { %v3379_v24 = vpop.eup %3378 }
0x1bc7   :  { %1702 = vrot.lane.b32.xlu1 %v3379_v24, %s3575_s4 }
0x1bd4   :  { %v1812_v31 = vpop.permute.xlu0 %1811 }
0x1bd5   :  { %v4126_v32 = vadd.f32 %v1812_v31, %v1804_v30 }
0x1bd7   :  { %3380 = vtanh.f32 %v4126_v32 }
0x1bdc   :  { %v1921_v33 = vpop.permute.xlu0 %1920 }
0x1bdd   :  { %v3381_v34 = vpop.eup %3380  ;;  %3175 = vmatmul.msk.f32.vlgmr.msrb.gmra.mxu2 %vm1407_vm11, %v1921_v33 }
0x1bde   :  { %1817 = vrot.lane.b32.xlu2 %v3381_v34, %s3575_s4  ;;  %3184 = vmatpush.msk.msrb.mxu2 %vm1411_vm10, %v4039_v61 }
0x1c38   :  { %v1818_v36 = vpop.permute.xlu2 %1817 }
0x1c39   :  { %v1820_v37 = vmul.f32 %v1818_v36, %v1801_v22  ;;  %v1703_v38 = vpop.permute.xlu1 %1702 }
0x1c3a   :  { %v4133_v2 = vmul.f32 %v1703_v38, %v1686_v19 }
0x1c3b   :  { %1822 = vrot.lane.b32.xlu1 %v1820_v37, %s3576_s10 }
0x1c3c   :  { %1825 = vrot.lane.b32.xlu2 %v4133_v2, %s3573_s12 }
0x1c60   :  { %v1941_v42 = vpop.f32.mrf.mxu2 }
0x1c61   :  { %v1942_v43 = vadd.f32 %v4075_v3, %v1941_v42 }
0x1c96   :  { %v1826_v35 = vpop.permute.xlu2 %1825 }
0x1cad   :  { %v1823_v40 = vpop.permute.xlu1 %1822 }
0x1cae   :  { %v1828_v41 = vsel %vm114_vm0, %v1823_v40, %v1826_v35  ;;  %3176 = vmatmul.msk.f32.vlgmr.msra.gmra.mxu0 %vm114_vm0, %v1823_v40 }
0x1caf   :  { %3172 = vmatmul.msk.f32.vlgmr.msrb.gmra.mxu1 %vm204_vm5, %v1828_v41  ;;  %2327 = vmatpush.msra.mxu0 %v4057_v9 }
0x1cb0   :  { %2212 = vmatpush.msrb.mxu1 %v4091_v4 }
0x1cb2   :  { %2213 = vmatpush.msrb.mxu1 %v4098_v39 }
0x1d2b   :  { %v1963_v44 = vpop.f32.mrf.mxu0 }
0x1d2c   :  { %v1966_v46 = vadd.f32 %v1963_v44, %v1942_v43  ;;  %v1849_v47 = vpop.f32.mrf.mxu1 }
0x1d2d   :  { %v1850_v48 = vadd.f32 %v4112_v0, %v1849_v47 }
0x1d2e   :  { %3382 = vtanh.f32 %v1966_v46  ;;  %v1967_v51 = vsub.f32 0.0, %v1966_v46 }
0x1d2f   :  { %3384 = vtanh.f32 %v1850_v48  ;;  %v1852_v52 = vsub.f32 0.0, %v1850_v48 }
0x1d30   :  { %v1968_v53 = vmul.f32 1.442695, %v1967_v51 }
0x1d31   :  { %v1853_v54 = vmul.f32 1.442695, %v1852_v52 }
0x1d32   :  { %3386 = vpow2.f32 %v1968_v53 }
0x1d33   :  { %3388 = vpow2.f32 %v1853_v54 }
0x1d34   :  { %v3383_v49 = vpop.eup %3382 }
0x1d35   :  { %v3385_v50 = vpop.eup %3384  ;;  %1989 = vrot.lane.b32.xlu1 %v3383_v49, %s3573_s12 }
0x1d36   :  { %1874 = vrot.lane.b32.xlu0 %v3385_v50, %s3573_s12 }
0x1d38   :  { %v3387_v55 = vpop.eup %3386 }
0x1d39   :  { %v3389_v56 = vpop.eup %3388  ;;  %v1970_v57 = vadd.f32 1.0, %v3387_v55 }
0x1d3a   :  { %v1855_v58 = vadd.f32 1.0, %v3389_v56 }
0x1d3b   :  { %3390 = vrcp.f32 %v1970_v57  ;;  %v1982_v7 = vand.u32 2147483648, %v1970_v57  ;;  %vm1976_vm14 = vweird.f32 %v1970_v57  ;;  %v1980_v14 = vand.u32 2147483647, %v1970_v57 }
0x1d3c   :  { %3392 = vrcp.f32 %v1855_v58  ;;  %v1867_v15 = vand.u32 2147483648, %v1855_v58  ;;  %vm1861_vm1 = vweird.f32 %v1855_v58  ;;  %v1865_v17 = vand.u32 2147483647, %v1855_v58 }
0x1d3d   :  { %v1983_v21 = vor.u32 1.1754944e-38, %v1982_v7  ;;  %vm1981_vm3 = vcmp.eq.f32.partialorder %v1980_v14, 8.507059e+37 }
0x1d3e   :  { %v1868_v27 = vor.u32 1.1754944e-38, %v1867_v15  ;;  %vm1866_vm4 = vcmp.eq.f32.partialorder %v1865_v17, 8.507059e+37 }
0x1d41   :  { %v3391_v59 = vpop.eup %3390 }
0x1d42   :  { %v3393_v60 = vpop.eup %3392  ;;  %v1972_v62 = vmul.f32 %v3391_v59, %v1970_v57  ;;  %vm1977_vm12 = vweird.f32 %v3391_v59 }
0x1d43   :  { %v1857_v63 = vmul.f32 %v3393_v60, %v1855_v58  ;;  %vm1862_vm13 = vweird.f32 %v3393_v60  ;;  %vm1978_vm15 = vmor %vm1976_vm14, %vm1977_vm12 }
0x1d44   :  { %v1973_v6 = vsub.f32 1.0, %v1972_v62  ;;  %vm1863_vm2 = vmor %vm1861_vm1, %vm1862_vm13 }
0x1d45   :  { %v1858_v8 = vsub.f32 1.0, %v1857_v63 }
0x1d46   :  { %v1974_v1 = vmul.f32 %v3391_v59, %v1973_v6 }
0x1d47   :  { %v1859_v10 = vmul.f32 %v3393_v60, %v1858_v8 }
0x1d48   :  { %v1975_v12 = vadd.f32 %v3391_v59, %v1974_v1 }
0x1d49   :  { %v1860_v13 = vadd.f32 %v3393_v60, %v1859_v10 }
0x1d4a   :  { %v1979_v16 = vsel %vm1978_vm15, %v3391_v59, %v1975_v12 }
0x1d4b   :  { %v1864_v26 = vsel %vm1863_vm2, %v3393_v60, %v1860_v13  ;;  %v1984_v25 = vsel %vm1981_vm3, %v1983_v21, %v1979_v16 }
0x1d4c   :  { %v1869_v20 = vsel %vm1866_vm4, %v1868_v27, %v1864_v26  ;;  %v1987_v33 = vmul.f32 %v1984_v25, %v4126_v32 }
0x1d4d   :  { %v1872_v28 = vmul.f32 %v1869_v20, %v4121_v29 }
0x1da7   :  { %v1990_v22 = vpop.permute.xlu1 %1989 }
0x1da8   :  { %v1992_v23 = vmul.f32 %v1990_v22, %v1984_v25  ;;  %v1875_v19 = vpop.permute.xlu0 %1874 }
0x1da9   :  { %v1877_v18 = vmul.f32 %v1875_v19, %v1869_v20 }
0x1daa   :  { %1994 = vrot.lane.b32.xlu0 %v1992_v23, %s3574_s1 }
0x1dab   :  { %1879 = vrot.lane.b32.xlu2 %v1877_v18, %s3574_s1 }
0x1db2   :  { %2103 = vrot.lane.b32.xlu0 %v4066_v11, %s3579_s30 }
0x1e05   :  { %v1880_v24 = vpop.permute.xlu2 %1879 }
0x1e06   :  { %v4152_v30 = vadd.f32 %v1880_v24, %v1872_v28 }
0x1e08   :  { %3394 = vtanh.f32 %v4152_v30 }
0x1e0e   :  { %v3395_v31 = vpop.eup %3394 }
0x1e0f   :  { %1885 = vrot.lane.b32.xlu1 %v3395_v31, %s3575_s4 }
0x1e1c   :  { %v1995_v34 = vpop.permute.xlu0 %1994 }
0x1e1d   :  { %v4157_v36 = vadd.f32 %v1995_v34, %v1987_v33 }
0x1e1f   :  { %3396 = vtanh.f32 %v4157_v36 }
0x1e24   :  { %v2104_v37 = vpop.permute.xlu0 %2103 }
0x1e25   :  { %v3397_v38 = vpop.eup %3396  ;;  %3180 = vmatmul.msk.f32.vlgmr.msra.gmra.mxu2 %vm1407_vm11, %v2104_v37 }
0x1e26   :  { %2000 = vrot.lane.b32.xlu2 %v3397_v38, %s3575_s4  ;;  %3189 = vmatpush.msk.msra.mxu2 %vm1411_vm10, %v4039_v61 }
0x1e80   :  { %v2001_v29 = vpop.permute.xlu2 %2000 }
0x1e81   :  { %v2003_v35 = vmul.f32 %v2001_v29, %v1984_v25  ;;  %v1886_v40 = vpop.permute.xlu1 %1885 }
0x1e82   :  { %v4164_v41 = vmul.f32 %v1886_v40, %v1869_v20 }
0x1e83   :  { %2005 = vrot.lane.b32.xlu1 %v2003_v35, %s3576_s10 }
0x1e84   :  { %2008 = vrot.lane.b32.xlu2 %v4164_v41, %s3573_s12 }
0x1ea8   :  { %v2124_v44 = vpop.f32.mrf.mxu2 }
0x1ea9   :  { %v2125_v46 = vadd.f32 %v4075_v3, %v2124_v44 }
0x1ede   :  { %v2009_v32 = vpop.permute.xlu2 %2008 }
0x1ef5   :  { %v2006_v42 = vpop.permute.xlu1 %2005 }
0x1ef6   :  { %v2011_v43 = vsel %vm114_vm0, %v2006_v42, %v2009_v32  ;;  %3181 = vmatmul.msk.f32.vlgmr.msrb.gmra.mxu0 %vm114_vm0, %v2006_v42 }
0x1ef7   :  { %3177 = vmatmul.msk.f32.vlgmr.msra.gmra.mxu1 %vm204_vm5, %v2011_v43  ;;  %2510 = vmatpush.msrb.mxu0 %v4057_v9 }
0x1ef8   :  { %2395 = vmatpush.msra.mxu1 %v4091_v4 }
0x1efa   :  { %2396 = vmatpush.msra.mxu1 %v4098_v39 }
0x1f73   :  { %v2146_v47 = vpop.f32.mrf.mxu0 }
0x1f74   :  { %v2149_v48 = vadd.f32 %v2146_v47, %v2125_v46  ;;  %v2032_v49 = vpop.f32.mrf.mxu1 }
0x1f75   :  { %v2033_v50 = vadd.f32 %v4112_v0, %v2032_v49 }
0x1f76   :  { %3398 = vtanh.f32 %v2149_v48  ;;  %v2150_v53 = vsub.f32 0.0, %v2149_v48 }
0x1f77   :  { %3400 = vtanh.f32 %v2033_v50  ;;  %v2035_v54 = vsub.f32 0.0, %v2033_v50 }
0x1f78   :  { %v2151_v55 = vmul.f32 1.442695, %v2150_v53 }
0x1f79   :  { %v2036_v56 = vmul.f32 1.442695, %v2035_v54 }
0x1f7a   :  { %3402 = vpow2.f32 %v2151_v55 }
0x1f7b   :  { %3404 = vpow2.f32 %v2036_v56 }
0x1f7c   :  { %v3399_v51 = vpop.eup %3398 }
0x1f7d   :  { %v3401_v52 = vpop.eup %3400  ;;  %2172 = vrot.lane.b32.xlu1 %v3399_v51, %s3573_s12 }
0x1f7e   :  { %2057 = vrot.lane.b32.xlu0 %v3401_v52, %s3573_s12 }
0x1f80   :  { %v3403_v57 = vpop.eup %3402 }
0x1f81   :  { %v3405_v58 = vpop.eup %3404  ;;  %v2153_v59 = vadd.f32 1.0, %v3403_v57 }
0x1f82   :  { %v2038_v60 = vadd.f32 1.0, %v3405_v58 }
0x1f83   :  { %3406 = vrcp.f32 %v2153_v59  ;;  %v2165_v14 = vand.u32 2147483648, %v2153_v59  ;;  %vm2159_vm8 = vweird.f32 %v2153_v59  ;;  %v2163_v17 = vand.u32 2147483647, %v2153_v59 }
0x1f84   :  { %3408 = vrcp.f32 %v2038_v60  ;;  %v2050_v16 = vand.u32 2147483648, %v2038_v60  ;;  %vm2044_vm12 = vweird.f32 %v2038_v60  ;;  %v2048_v21 = vand.u32 2147483647, %v2038_v60 }
0x1f85   :  { %v2166_v27 = vor.u32 1.1754944e-38, %v2165_v14  ;;  %vm2164_vm14 = vcmp.eq.f32.partialorder %v2163_v17, 8.507059e+37 }
0x1f86   :  { %v2051_v25 = vor.u32 1.1754944e-38, %v2050_v16  ;;  %vm2049_vm15 = vcmp.eq.f32.partialorder %v2048_v21, 8.507059e+37 }
0x1f89   :  { %v3407_v62 = vpop.eup %3406 }
0x1f8a   :  { %v3409_v63 = vpop.eup %3408  ;;  %v2155_v6 = vmul.f32 %v3407_v62, %v2153_v59  ;;  %vm2160_vm6 = vweird.f32 %v3407_v62 }
0x1f8b   :  { %v2040_v8 = vmul.f32 %v3409_v63, %v2038_v60  ;;  %vm2045_vm7 = vweird.f32 %v3409_v63  ;;  %vm2161_vm9 = vmor %vm2159_vm8, %vm2160_vm6 }
0x1f8c   :  { %v2156_v1 = vsub.f32 1.0, %v2155_v6  ;;  %vm2046_vm13 = vmor %vm2044_vm12, %vm2045_vm7 }
0x1f8d   :  { %v2041_v10 = vsub.f32 1.0, %v2040_v8 }
0x1f8e   :  { %v2157_v12 = vmul.f32 %v3407_v62, %v2156_v1 }
0x1f8f   :  { %v2042_v7 = vmul.f32 %v3409_v63, %v2041_v10 }
0x1f90   :  { %v2158_v13 = vadd.f32 %v3407_v62, %v2157_v12 }
0x1f91   :  { %v2043_v15 = vadd.f32 %v3409_v63, %v2042_v7 }
0x1f92   :  { %v2162_v26 = vsel %vm2161_vm9, %v3407_v62, %v2158_v13 }
0x1f93   :  { %v2047_v22 = vsel %vm2046_vm13, %v3409_v63, %v2043_v15  ;;  %v2167_v19 = vsel %vm2164_vm14, %v2166_v27, %v2162_v26 }
0x1f94   :  { %v2052_v28 = vsel %vm2049_vm15, %v2051_v25, %v2047_v22  ;;  %v2170_v38 = vmul.f32 %v2167_v19, %v4157_v36 }
0x1f95   :  { %v2055_v31 = vmul.f32 %v2052_v28, %v4152_v30 }
0x1fef   :  { %v2173_v23 = vpop.permute.xlu1 %2172 }
0x1ff0   :  { %v2175_v20 = vmul.f32 %v2173_v23, %v2167_v19  ;;  %v2058_v18 = vpop.permute.xlu0 %2057 }
0x1ff1   :  { %v2060_v24 = vmul.f32 %v2058_v18, %v2052_v28 }
0x1ff2   :  { %2177 = vrot.lane.b32.xlu0 %v2175_v20, %s3574_s1 }
0x1ff3   :  { %2062 = vrot.lane.b32.xlu2 %v2060_v24, %s3574_s1 }
0x1ffa   :  { %2286 = vrot.lane.b32.xlu0 %v4066_v11, %s3573_s12 }
0x204d   :  { %v2063_v33 = vpop.permute.xlu2 %2062 }
0x204e   :  { %v4184_v34 = vadd.f32 %v2063_v33, %v2055_v31 }
0x2050   :  { %3410 = vtanh.f32 %v4184_v34 }
0x2056   :  { %v3411_v37 = vpop.eup %3410 }
0x2057   :  { %2068 = vrot.lane.b32.xlu1 %v3411_v37, %s3575_s4 }
0x2064   :  { %v2178_v29 = vpop.permute.xlu0 %2177 }
0x2065   :  { %v4189_v35 = vadd.f32 %v2178_v29, %v2170_v38 }
0x2067   :  { %3412 = vtanh.f32 %v4189_v35 }
0x206c   :  { %v2287_v40 = vpop.permute.xlu0 %2286 }
0x206d   :  { %v3413_v32 = vpop.eup %3412  ;;  %3185 = vmatmul.msk.f32.vlgmr.msrb.gmra.mxu2 %vm1407_vm11, %v2287_v40 }
0x206e   :  { %2183 = vrot.lane.b32.xlu2 %v3413_v32, %s3575_s4  ;;  %3194 = vmatpush.msk.msrb.mxu2 %vm1411_vm10, %v4039_v61 }
0x20c8   :  { %v2184_v30 = vpop.permute.xlu2 %2183 }
0x20c9   :  { %v2186_v42 = vmul.f32 %v2184_v30, %v2167_v19  ;;  %v2069_v43 = vpop.permute.xlu1 %2068 }
0x20ca   :  { %v4196_v44 = vmul.f32 %v2069_v43, %v2052_v28 }
0x20cb   :  { %2188 = vrot.lane.b32.xlu1 %v2186_v42, %s3576_s10 }
0x20cc   :  { %2191 = vrot.lane.b32.xlu2 %v4196_v44, %s3573_s12 }
0x20f0   :  { %v2307_v48 = vpop.f32.mrf.mxu2 }
0x20f1   :  { %v2308_v49 = vadd.f32 %v4075_v3, %v2307_v48 }
0x2126   :  { %v2192_v36 = vpop.permute.xlu2 %2191 }
0x213d   :  { %v2189_v46 = vpop.permute.xlu1 %2188 }
0x213e   :  { %v2194_v47 = vsel %vm114_vm0, %v2189_v46, %v2192_v36  ;;  %3186 = vmatmul.msk.f32.vlgmr.msra.gmra.mxu0 %vm114_vm0, %v2189_v46 }
0x213f   :  { %3182 = vmatmul.msk.f32.vlgmr.msrb.gmra.mxu1 %vm204_vm5, %v2194_v47  ;;  %2693 = vmatpush.msra.mxu0 %v4057_v9 }
0x2140   :  { %2578 = vmatpush.msrb.mxu1 %v4091_v4 }
0x2142   :  { %2579 = vmatpush.msrb.mxu1 %v4098_v39 }
0x21bb   :  { %v2329_v50 = vpop.f32.mrf.mxu0 }
0x21bc   :  { %v2332_v51 = vadd.f32 %v2329_v50, %v2308_v49  ;;  %v2215_v52 = vpop.f32.mrf.mxu1 }
0x21bd   :  { %v2216_v53 = vadd.f32 %v4112_v0, %v2215_v52 }
0x21be   :  { %3414 = vtanh.f32 %v2332_v51  ;;  %v2333_v56 = vsub.f32 0.0, %v2332_v51 }
0x21bf   :  { %3416 = vtanh.f32 %v2216_v53  ;;  %v2218_v57 = vsub.f32 0.0, %v2216_v53 }
0x21c0   :  { %v2334_v58 = vmul.f32 1.442695, %v2333_v56 }
0x21c1   :  { %v2219_v59 = vmul.f32 1.442695, %v2218_v57 }
0x21c2   :  { %3418 = vpow2.f32 %v2334_v58 }
0x21c3   :  { %3420 = vpow2.f32 %v2219_v59 }
0x21c4   :  { %v3415_v54 = vpop.eup %3414 }
0x21c5   :  { %v3417_v55 = vpop.eup %3416  ;;  %2355 = vrot.lane.b32.xlu1 %v3415_v54, %s3573_s12 }
0x21c6   :  { %2240 = vrot.lane.b32.xlu0 %v3417_v55, %s3573_s12 }
0x21c8   :  { %v3419_v60 = vpop.eup %3418 }
0x21c9   :  { %v3421_v62 = vpop.eup %3420  ;;  %v2336_v63 = vadd.f32 1.0, %v3419_v60 }
0x21ca   :  { %v2221_v6 = vadd.f32 1.0, %v3421_v62 }
0x21cb   :  { %3422 = vrcp.f32 %v2336_v63  ;;  %v2348_v16 = vand.u32 2147483648, %v2336_v63  ;;  %vm2342_vm3 = vweird.f32 %v2336_v63  ;;  %v2346_v26 = vand.u32 2147483647, %v2336_v63 }
0x21cc   :  { %3424 = vrcp.f32 %v2221_v6  ;;  %v2233_v27 = vand.u32 2147483648, %v2221_v6  ;;  %vm2227_vm6 = vweird.f32 %v2221_v6  ;;  %v2231_v22 = vand.u32 2147483647, %v2221_v6 }
0x21cd   :  { %v2349_v23 = vor.u32 1.1754944e-38, %v2348_v16  ;;  %vm2347_vm8 = vcmp.eq.f32.partialorder %v2346_v26, 8.507059e+37 }
0x21ce   :  { %v2234_v20 = vor.u32 1.1754944e-38, %v2233_v27  ;;  %vm2232_vm9 = vcmp.eq.f32.partialorder %v2231_v22, 8.507059e+37 }
0x21d1   :  { %v3423_v8 = vpop.eup %3422 }
0x21d2   :  { %v3425_v1 = vpop.eup %3424  ;;  %v2338_v10 = vmul.f32 %v3423_v8, %v2336_v63  ;;  %vm2343_vm1 = vweird.f32 %v3423_v8 }
0x21d3   :  { %v2223_v12 = vmul.f32 %v3425_v1, %v2221_v6  ;;  %vm2228_vm2 = vweird.f32 %v3425_v1  ;;  %vm2344_vm4 = vmor %vm2342_vm3, %vm2343_vm1 }
0x21d4   :  { %v2339_v7 = vsub.f32 1.0, %v2338_v10  ;;  %vm2229_vm7 = vmor %vm2227_vm6, %vm2228_vm2 }
0x21d5   :  { %v2224_v13 = vsub.f32 1.0, %v2223_v12 }
0x21d6   :  { %v2340_v14 = vmul.f32 %v3423_v8, %v2339_v7 }
0x21d7   :  { %v2225_v15 = vmul.f32 %v3425_v1, %v2224_v13 }
0x21d8   :  { %v2341_v17 = vadd.f32 %v3423_v8, %v2340_v14 }
0x21d9   :  { %v2226_v21 = vadd.f32 %v3425_v1, %v2225_v15 }
0x21da   :  { %v2345_v25 = vsel %vm2344_vm4, %v3423_v8, %v2341_v17 }
0x21db   :  { %v2230_v19 = vsel %vm2229_vm7, %v3425_v1, %v2226_v21  ;;  %v2350_v28 = vsel %vm2347_vm8, %v2349_v23, %v2345_v25 }
0x21dc   :  { %v2235_v33 = vsel %vm2232_vm9, %v2234_v20, %v2230_v19  ;;  %v2353_v30 = vmul.f32 %v2350_v28, %v4189_v35 }
0x21dd   :  { %v2238_v38 = vmul.f32 %v2235_v33, %v4184_v34 }
0x2237   :  { %v2356_v18 = vpop.permute.xlu1 %2355 }
0x2238   :  { %v2358_v24 = vmul.f32 %v2356_v18, %v2350_v28  ;;  %v2241_v31 = vpop.permute.xlu0 %2240 }
0x2239   :  { %v2243_v37 = vmul.f32 %v2241_v31, %v2235_v33 }
0x223a   :  { %2360 = vrot.lane.b32.xlu0 %v2358_v24, %s3574_s1 }
0x223b   :  { %2245 = vrot.lane.b32.xlu2 %v2243_v37, %s3574_s1 }
0x2242   :  { %2469 = vrot.lane.b32.xlu0 %v4066_v11, %s3580_s3 }
0x2295   :  { %v2246_v29 = vpop.permute.xlu2 %2245 }
0x2296   :  { %v4215_v40 = vadd.f32 %v2246_v29, %v2238_v38 }
0x2298   :  { %3426 = vtanh.f32 %v4215_v40 }
0x229e   :  { %v3427_v32 = vpop.eup %3426 }
0x229f   :  { %2251 = vrot.lane.b32.xlu1 %v3427_v32, %s3575_s4 }
0x22ac   :  { %v2361_v42 = vpop.permute.xlu0 %2360 }
0x22ad   :  { %v4220_v43 = vadd.f32 %v2361_v42, %v2353_v30 }
0x22af   :  { %3428 = vtanh.f32 %v4220_v43 }
0x22b4   :  { %v2470_v36 = vpop.permute.xlu0 %2469 }
0x22b5   :  { %v3429_v46 = vpop.eup %3428  ;;  %3190 = vmatmul.msk.f32.vlgmr.msra.gmra.mxu2 %vm1407_vm11, %v2470_v36 }
0x22b6   :  { %2366 = vrot.lane.b32.xlu2 %v3429_v46, %s3575_s4  ;;  %3199 = vmatpush.msk.msra.mxu2 %vm1411_vm10, %v4039_v61 }
0x2310   :  { %v2367_v34 = vpop.permute.xlu2 %2366 }
0x2311   :  { %v2369_v47 = vmul.f32 %v2367_v34, %v2350_v28  ;;  %v2252_v48 = vpop.permute.xlu1 %2251 }
0x2312   :  { %v4227_v49 = vmul.f32 %v2252_v48, %v2235_v33 }
0x2313   :  { %2371 = vrot.lane.b32.xlu1 %v2369_v47, %s3576_s10 }
0x2314   :  { %2374 = vrot.lane.b32.xlu2 %v4227_v49, %s3573_s12 }
0x2338   :  { %v2490_v61 = vpop.f32.mrf.mxu2 }
0x2339   :  { %v2491_v52 = vadd.f32 %v4075_v3, %v2490_v61 }
0x236e   :  { %v2375_v35 = vpop.permute.xlu2 %2374 }
0x2385   :  { %v2372_v50 = vpop.permute.xlu1 %2371 }
0x2386   :  { %v2377_v51 = vsel %vm114_vm0, %v2372_v50, %v2375_v35  ;;  %3191 = vmatmul.msk.f32.vlgmr.msrb.gmra.mxu0 %vm114_vm0, %v2372_v50 }
0x2387   :  { %3187 = vmatmul.msk.f32.vlgmr.msra.gmra.mxu1 %vm204_vm5, %v2377_v51  ;;  %2876 = vmatpush.msrb.mxu0 %v4057_v9 }
0x2388   :  { %2761 = vmatpush.msra.mxu1 %v4091_v4 }
0x238a   :  { %2762 = vmatpush.msra.mxu1 %v4098_v39 }
0x2403   :  { %v2512_v53 = vpop.f32.mrf.mxu0 }
0x2404   :  { %v2515_v54 = vadd.f32 %v2512_v53, %v2491_v52  ;;  %v2398_v55 = vpop.f32.mrf.mxu1 }
0x2405   :  { %v2399_v56 = vadd.f32 %v4112_v0, %v2398_v55 }
0x2406   :  { %3430 = vtanh.f32 %v2515_v54  ;;  %v2516_v9 = vsub.f32 0.0, %v2515_v54 }
0x2407   :  { %3432 = vtanh.f32 %v2399_v56  ;;  %v2401_v59 = vsub.f32 0.0, %v2399_v56 }
0x2408   :  { %v2517_v60 = vmul.f32 1.442695, %v2516_v9 }
0x2409   :  { %v2402_v62 = vmul.f32 1.442695, %v2401_v59 }
0x240a   :  { %3434 = vpow2.f32 %v2517_v60 }
0x240b   :  { %3436 = vpow2.f32 %v2402_v62 }
0x240c   :  { %v3431_v57 = vpop.eup %3430 }
0x240d   :  { %v3433_v58 = vpop.eup %3432  ;;  %2538 = vrot.lane.b32.xlu1 %v3431_v57, %s3573_s12 }
0x240e   :  { %2423 = vrot.lane.b32.xlu0 %v3433_v58, %s3573_s12 }
0x2410   :  { %v3435_v63 = vpop.eup %3434 }
0x2411   :  { %v3437_v6 = vpop.eup %3436  ;;  %v2519_v8 = vadd.f32 1.0, %v3435_v63 }
0x2412   :  { %v2404_v1 = vadd.f32 1.0, %v3437_v6 }
0x2413   :  { %3438 = vrcp.f32 %v2519_v8  ;;  %v2531_v26 = vand.u32 2147483648, %v2519_v8  ;;  %vm2525_vm14 = vweird.f32 %v2519_v8  ;;  %v2529_v22 = vand.u32 2147483647, %v2519_v8 }
0x2414   :  { %3440 = vrcp.f32 %v2404_v1  ;;  %v2416_v25 = vand.u32 2147483648, %v2404_v1  ;;  %vm2410_vm1 = vweird.f32 %v2404_v1  ;;  %v2414_v23 = vand.u32 2147483647, %v2404_v1 }
0x2415   :  { %v2532_v20 = vor.u32 1.1754944e-38, %v2531_v26  ;;  %vm2530_vm3 = vcmp.eq.f32.partialorder %v2529_v22, 8.507059e+37 }
0x2416   :  { %v2417_v28 = vor.u32 1.1754944e-38, %v2416_v25  ;;  %vm2415_vm4 = vcmp.eq.f32.partialorder %v2414_v23, 8.507059e+37 }
0x2419   :  { %v3439_v10 = vpop.eup %3438 }
0x241a   :  { %v3441_v12 = vpop.eup %3440  ;;  %v2521_v7 = vmul.f32 %v3439_v10, %v2519_v8  ;;  %vm2526_vm12 = vweird.f32 %v3439_v10 }
0x241b   :  { %v2406_v13 = vmul.f32 %v3441_v12, %v2404_v1  ;;  %vm2411_vm13 = vweird.f32 %v3441_v12  ;;  %vm2527_vm15 = vmor %vm2525_vm14, %vm2526_vm12 }
0x241c   :  { %v2522_v14 = vsub.f32 1.0, %v2521_v7  ;;  %vm2412_vm2 = vmor %vm2410_vm1, %vm2411_vm13 }
0x241d   :  { %v2407_v15 = vsub.f32 1.0, %v2406_v13 }
0x241e   :  { %v2523_v17 = vmul.f32 %v3439_v10, %v2522_v14 }
0x241f   :  { %v2408_v16 = vmul.f32 %v3441_v12, %v2407_v15 }
0x2420   :  { %v2524_v21 = vadd.f32 %v3439_v10, %v2523_v17 }
0x2421   :  { %v2409_v27 = vadd.f32 %v3441_v12, %v2408_v16 }
0x2422   :  { %v2528_v19 = vsel %vm2527_vm15, %v3439_v10, %v2524_v21 }
0x2423   :  { %v2413_v18 = vsel %vm2412_vm2, %v3441_v12, %v2409_v27  ;;  %v2533_v31 = vsel %vm2530_vm3, %v2532_v20, %v2528_v19 }
0x2424   :  { %v2418_v38 = vsel %vm2415_vm4, %v2417_v28, %v2413_v18  ;;  %v2536_v46 = vmul.f32 %v2533_v31, %v4220_v43 }
0x2425   :  { %v2421_v32 = vmul.f32 %v2418_v38, %v4215_v40 }
0x247f   :  { %v2539_v24 = vpop.permute.xlu1 %2538 }
0x2480   :  { %v2541_v33 = vmul.f32 %v2539_v24, %v2533_v31  ;;  %v2424_v37 = vpop.permute.xlu0 %2423 }
0x2481   :  { %v2426_v29 = vmul.f32 %v2424_v37, %v2418_v38 }
0x2482   :  { %2543 = vrot.lane.b32.xlu0 %v2541_v33, %s3574_s1 }
0x2483   :  { %2428 = vrot.lane.b32.xlu2 %v2426_v29, %s3574_s1 }
0x248a   :  { %2652 = vrot.lane.b32.xlu0 %v4066_v11, %s3576_s10 }
0x24dd   :  { %v2429_v30 = vpop.permute.xlu2 %2428 }
0x24de   :  { %v4247_v42 = vadd.f32 %v2429_v30, %v2421_v32 }
0x24e0   :  { %3442 = vtanh.f32 %v4247_v42 }
0x24e6   :  { %v3443_v36 = vpop.eup %3442 }
0x24e7   :  { %2434 = vrot.lane.b32.xlu1 %v3443_v36, %s3575_s4 }
0x24f4   :  { %v2544_v34 = vpop.permute.xlu0 %2543 }
0x24f5   :  { %v4252_v47 = vadd.f32 %v2544_v34, %v2536_v46 }
0x24f7   :  { %3444 = vtanh.f32 %v4252_v47 }
0x24fc   :  { %v2653_v48 = vpop.permute.xlu0 %2652 }
0x24fd   :  { %v3445_v35 = vpop.eup %3444  ;;  %3195 = vmatmul.msk.f32.vlgmr.msrb.gmra.mxu2 %vm1407_vm11, %v2653_v48 }
0x24fe   :  { %2549 = vrot.lane.b32.xlu2 %v3445_v35, %s3575_s4 }
0x2558   :  { %v2550_v40 = vpop.permute.xlu2 %2549 }
0x2559   :  { %v2552_v50 = vmul.f32 %v2550_v40, %v2533_v31  ;;  %v2435_v51 = vpop.permute.xlu1 %2434 }
0x255a   :  { %v4257_v61 = vmul.f32 %v2435_v51, %v2418_v38 }
0x255b   :  { %2554 = vrot.lane.b32.xlu1 %v2552_v50, %s3576_s10 }
0x255c   :  { %2557 = vrot.lane.b32.xlu2 %v4257_v61, %s3573_s12 }
0x2580   :  { %v2673_v54 = vpop.f32.mrf.mxu2 }
0x2581   :  { %v2674_v55 = vadd.f32 %v4075_v3, %v2673_v54  ;;  %v3494_v54 = vld [vmem:[%s4405_s22] ss:$0 sm:$0xff] }
0x25b6   :  { %v2558_v43 = vpop.permute.xlu2 %2557 }
0x25cd   :  { %v2555_v52 = vpop.permute.xlu1 %2554 }
0x25ce   :  { %v2560_v53 = vsel %vm114_vm0, %v2555_v52, %v2558_v43  ;;  %3196 = vmatmul.msk.f32.vlgmr.msra.gmra.mxu0 %vm114_vm0, %v2555_v52 }
0x25cf   :  { %3192 = vmatmul.msk.f32.vlgmr.msrb.gmra.mxu1 %vm204_vm5, %v2560_v53 }
0x25d0   :  { %2944 = vmatpush.msrb.mxu1 %v4091_v4 }
0x25d2   :  { %2945 = vmatpush.msrb.mxu1 %v4098_v39 }
0x264b   :  { %v2695_v56 = vpop.f32.mrf.mxu0 }
0x264c   :  { %v2698_v57 = vadd.f32 %v2695_v56, %v2674_v55  ;;  %v2581_v58 = vpop.f32.mrf.mxu1 }
0x264d   :  { %v2582_v9 = vadd.f32 %v4112_v0, %v2581_v58 }
0x264e   :  { %3446 = vtanh.f32 %v2698_v57  ;;  %v2699_v62 = vsub.f32 0.0, %v2698_v57 }
0x264f   :  { %3448 = vtanh.f32 %v2582_v9  ;;  %v2584_v4 = vsub.f32 0.0, %v2582_v9  ;;  %v4299_v9 = vld [vmem:[%s4407_s24] ss:$0 sm:$0xff] }
0x2650   :  { %v2700_v63 = vmul.f32 1.442695, %v2699_v62 }
0x2651   :  { %v2585_v39 = vmul.f32 1.442695, %v2584_v4 }
0x2652   :  { %3450 = vpow2.f32 %v2700_v63 }
0x2653   :  { %3452 = vpow2.f32 %v2585_v39 }
0x2654   :  { %v3447_v59 = vpop.eup %3446 }
0x2655   :  { %v3449_v60 = vpop.eup %3448  ;;  %2721 = vrot.lane.b32.xlu1 %v3447_v59, %s3573_s12 }
0x2656   :  { %2606 = vrot.lane.b32.xlu0 %v3449_v60, %s3573_s12 }
0x2658   :  { %v3451_v3 = vpop.eup %3450 }
0x2659   :  { %v3453_v6 = vpop.eup %3452  ;;  %v2702_v8 = vadd.f32 1.0, %v3451_v3 }
0x265a   :  { %v2587_v1 = vadd.f32 1.0, %v3453_v6 }
0x265b   :  { %3454 = vrcp.f32 %v2702_v8  ;;  %v2714_v21 = vand.u32 2147483648, %v2702_v8  ;;  %vm2708_vm8 = vweird.f32 %v2702_v8  ;;  %v2712_v27 = vand.u32 2147483647, %v2702_v8 }
0x265c   :  { %3456 = vrcp.f32 %v2587_v1  ;;  %v2599_v22 = vand.u32 2147483648, %v2587_v1  ;;  %vm2593_vm12 = vweird.f32 %v2587_v1  ;;  %v2597_v25 = vand.u32 2147483647, %v2587_v1 }
0x265d   :  { %v2715_v19 = vor.u32 1.1754944e-38, %v2714_v21  ;;  %vm2713_vm14 = vcmp.eq.f32.partialorder %v2712_v27, 8.507059e+37 }
0x265e   :  { %v2600_v18 = vor.u32 1.1754944e-38, %v2599_v22  ;;  %vm2598_vm15 = vcmp.eq.f32.partialorder %v2597_v25, 8.507059e+37 }
0x2661   :  { %v3455_v0 = vpop.eup %3454 }
0x2662   :  { %v3457_v10 = vpop.eup %3456  ;;  %v2704_v12 = vmul.f32 %v3455_v0, %v2702_v8  ;;  %vm2709_vm6 = vweird.f32 %v3455_v0 }
0x2663   :  { %v2589_v7 = vmul.f32 %v3457_v10, %v2587_v1  ;;  %vm2594_vm7 = vweird.f32 %v3457_v10  ;;  %vm2710_vm9 = vmor %vm2708_vm8, %vm2709_vm6 }
0x2664   :  { %v2705_v13 = vsub.f32 1.0, %v2704_v12  ;;  %vm2595_vm13 = vmor %vm2593_vm12, %vm2594_vm7 }
0x2665   :  { %v2590_v14 = vsub.f32 1.0, %v2589_v7 }
0x2666   :  { %v2706_v15 = vmul.f32 %v3455_v0, %v2705_v13 }
0x2667   :  { %v2591_v17 = vmul.f32 %v3457_v10, %v2590_v14 }
0x2668   :  { %v2707_v16 = vadd.f32 %v3455_v0, %v2706_v15 }
0x2669   :  { %v2592_v26 = vadd.f32 %v3457_v10, %v2591_v17 }
0x266a   :  { %v2711_v23 = vsel %vm2710_vm9, %v3455_v0, %v2707_v16 }
0x266b   :  { %v2596_v20 = vsel %vm2595_vm13, %v3457_v10, %v2592_v26  ;;  %v2716_v24 = vsel %vm2713_vm14, %v2715_v19, %v2711_v23 }
0x266c   :  { %v2601_v37 = vsel %vm2598_vm15, %v2600_v18, %v2596_v20  ;;  %v2719_v46 = vmul.f32 %v2716_v24, %v4252_v47 }
0x266d   :  { %v2604_v29 = vmul.f32 %v2601_v37, %v4247_v42 }
0x26c7   :  { %v2722_v28 = vpop.permute.xlu1 %2721 }
0x26c8   :  { %v2724_v31 = vmul.f32 %v2722_v28, %v2716_v24  ;;  %v2607_v33 = vpop.permute.xlu0 %2606 }
0x26c9   :  { %v2609_v38 = vmul.f32 %v2607_v33, %v2601_v37 }
0x26ca   :  { %2726 = vrot.lane.b32.xlu0 %v2724_v31, %s3574_s1 }
0x26cb   :  { %2611 = vrot.lane.b32.xlu2 %v2609_v38, %s3574_s1 }
0x26d2   :  { %2835 = vrot.lane.b32.xlu0 %v4066_v11, %s3581_s0 }
0x2725   :  { %v2612_v32 = vpop.permute.xlu2 %2611 }
0x2726   :  { %v4275_v30 = vadd.f32 %v2612_v32, %v2604_v29 }
0x2728   :  { %3458 = vtanh.f32 %v4275_v30 }
0x272e   :  { %v3459_v36 = vpop.eup %3458 }
0x272f   :  { %2617 = vrot.lane.b32.xlu1 %v3459_v36, %s3575_s4 }
0x273c   :  { %v2727_v34 = vpop.permute.xlu0 %2726 }
0x273d   :  { %v4280_v48 = vadd.f32 %v2727_v34, %v2719_v46 }
0x273f   :  { %3460 = vtanh.f32 %v4280_v48 }
0x2744   :  { %v2836_v35 = vpop.permute.xlu0 %2835 }
0x2745   :  { %v3461_v40 = vpop.eup %3460  ;;  %3200 = vmatmul.msk.f32.vlgmr.msra.gmra.mxu2 %vm1407_vm11, %v2836_v35 }
0x2746   :  { %2732 = vrot.lane.b32.xlu2 %v3461_v40, %s3575_s4 }
0x27a0   :  { %v2733_v11 = vpop.permute.xlu2 %2732 }
0x27a1   :  { %v2735_v42 = vmul.f32 %v2733_v11, %v2716_v24  ;;  %v2618_v50 = vpop.permute.xlu1 %2617 }
0x27a2   :  { %v4285_v51 = vmul.f32 %v2618_v50, %v2601_v37 }
0x27a3   :  { %2737 = vrot.lane.b32.xlu1 %v2735_v42, %s3576_s10 }
0x27a4   :  { %2740 = vrot.lane.b32.xlu2 %v4285_v51, %s3573_s12 }
0x27c8   :  { %v2856_v53 = vpop.f32.mrf.mxu2 }
0x27c9   :  { %v2857_v55 = vadd.f32 %v3494_v54, %v2856_v53 }
0x27fe   :  { %v2741_v47 = vpop.permute.xlu2 %2740 }
0x2815   :  { %v2738_v43 = vpop.permute.xlu1 %2737 }
0x2816   :  { %v2743_v52 = vsel %vm114_vm0, %v2738_v43, %v2741_v47  ;;  %3201 = vmatmul.msk.f32.vlgmr.msrb.gmra.mxu0 %vm114_vm0, %v2738_v43 }
0x2817   :  { %3197 = vmatmul.msk.f32.vlgmr.msra.gmra.mxu1 %vm204_vm5, %v2743_v52  ;;  %v1707_v52 = vrot.slane %v4133_v2, 4 }
0x2819   :  { %v1709_v53 = vsub.f32 %v4133_v2, %v1707_v52 }
0x2893   :  { %v2878_v56 = vpop.f32.mrf.mxu0 }
0x2894   :  { %v2881_v57 = vadd.f32 %v2878_v56, %v2857_v55  ;;  %v2764_v58 = vpop.f32.mrf.mxu1  ;;  %v2622_v55 = vrot.slane %v4285_v51, 4 }
0x2895   :  { %v2765_v59 = vadd.f32 %v4299_v9, %v2764_v58 }
0x2896   :  { %3462 = vtanh.f32 %v2881_v57  ;;  %v2882_v4 = vsub.f32 0.0, %v2881_v57  ;;  %v2624_v56 = vsub.f32 %v4285_v51, %v2622_v55  ;;  %v4327_v57 = vld [vmem:[%s4408_s25] sm:$0xff] }
0x2897   :  { %3464 = vtanh.f32 %v2765_v59  ;;  %v2767_v63 = vsub.f32 0.0, %v2765_v59  ;;  %1730 = vmatpush.msra.mxu3 %v4327_v57 }
0x2898   :  { %v2883_v39 = vmul.f32 1.442695, %v2882_v4  ;;  %v1890_v4 = vrot.slane %v4164_v41, 4 }
0x2899   :  { %v2768_v3 = vmul.f32 1.442695, %v2767_v63  ;;  %1913 = vmatpush.msrb.mxu3 %v4327_v57 }
0x289a   :  { %3466 = vpow2.f32 %v2883_v39  ;;  %v1892_v63 = vsub.f32 %v4164_v41, %v1890_v4  ;;  %v2256_v39 = vrot.slane %v4227_v49, 4 }
0x289b   :  { %3468 = vpow2.f32 %v2768_v3 }
0x289c   :  { %v3463_v60 = vpop.eup %3462  ;;  %v2258_v3 = vsub.f32 %v4227_v49, %v2256_v39 }
0x289d   :  { %v3465_v62 = vpop.eup %3464  ;;  %2904 = vrot.lane.b32.xlu1 %v3463_v60, %s3573_s12 }
0x289e   :  { %2789 = vrot.lane.b32.xlu0 %v3465_v62, %s3573_s12 }
0x28a0   :  { %v3467_v6 = vpop.eup %3466 }
0x28a1   :  { %v3469_v8 = vpop.eup %3468  ;;  %v2885_v1 = vadd.f32 1.0, %v3467_v6 }
0x28a2   :  { %v2770_v0 = vadd.f32 1.0, %v3469_v8 }
0x28a3   :  { %3470 = vrcp.f32 %v2885_v1  ;;  %v2897_v26 = vand.u32 2147483648, %v2885_v1  ;;  %vm2891_vm2 = vweird.f32 %v2885_v1  ;;  %v2895_v22 = vand.u32 2147483647, %v2885_v1 }
0x28a4   :  { %3472 = vrcp.f32 %v2770_v0  ;;  %v2782_v25 = vand.u32 2147483648, %v2770_v0  ;;  %vm2776_vm4 = vweird.f32 %v2770_v0  ;;  %v2780_v23 = vand.u32 2147483647, %v2770_v0 }
0x28a5   :  { %v2898_v20 = vor.u32 1.1754944e-38, %v2897_v26  ;;  %vm2896_vm7 = vcmp.eq.f32.partialorder %v2895_v22, 8.507059e+37 }
0x28a6   :  { %v2783_v28 = vor.u32 1.1754944e-38, %v2782_v25  ;;  %vm2781_vm8 = vcmp.eq.f32.partialorder %v2780_v23, 8.507059e+37 }
0x28a9   :  { %v3471_v10 = vpop.eup %3470 }
0x28aa   :  { %v3473_v12 = vpop.eup %3472  ;;  %v2887_v7 = vmul.f32 %v3471_v10, %v2885_v1  ;;  %vm2892_vm11 = vweird.f32 %v3471_v10 }
0x28ab   :  { %v2772_v13 = vmul.f32 %v3473_v12, %v2770_v0  ;;  %vm2777_vm1 = vweird.f32 %v3473_v12  ;;  %vm2893_vm3 = vmor %vm2891_vm2, %vm2892_vm11  ;;  %vm3075_vm11 = vcmask 0  }
0x28ac   :  { %v2888_v14 = vsub.f32 1.0, %v2887_v7  ;;  %vm2778_vm6 = vmor %vm2776_vm4, %vm2777_vm1 }
0x28ad   :  { %v2773_v15 = vsub.f32 1.0, %v2772_v13 }
0x28ae   :  { %v2889_v17 = vmul.f32 %v3471_v10, %v2888_v14 }
0x28af   :  { %v2774_v16 = vmul.f32 %v3473_v12, %v2773_v15 }
0x28b0   :  { %v2890_v21 = vadd.f32 %v3471_v10, %v2889_v17 }
0x28b1   :  { %v2775_v27 = vadd.f32 %v3473_v12, %v2774_v16 }
0x28b2   :  { %v2894_v19 = vsel %vm2893_vm3, %v3471_v10, %v2890_v21  ;;  %v3037_v10 = vsub.f32 %v4048_v5, %v4010_v45 }
0x28b3   :  { %v2779_v18 = vsel %vm2778_vm6, %v3473_v12, %v2775_v27  ;;  %v2899_v31 = vsel %vm2896_vm7, %v2898_v20, %v2894_v19  ;;  %v3582_v20 = vmov 16.0  }
0x28b4   :  { %v2784_v38 = vsel %vm2781_vm8, %v2783_v28, %v2779_v18  ;;  %v2902_v35 = vmul.f32 %v2899_v31, %v4280_v48  ;;  %v2073_v48 = vrot.slane %v4196_v44, 4  ;;  %v3038_v12 = vmul.f32 %v3037_v10, %v3037_v10 }
0x28b5   :  { %v2787_v32 = vmul.f32 %v2784_v38, %v4275_v30 }
0x28b6   :  { %v2075_v54 = vsub.f32 %v4196_v44, %v2073_v48 }
0x290f   :  { %v2905_v24 = vpop.permute.xlu1 %2904 }
0x2910   :  { %v2907_v33 = vmul.f32 %v2905_v24, %v2899_v31  ;;  %v2790_v37 = vpop.permute.xlu0 %2789 }
0x2911   :  { %v2792_v29 = vmul.f32 %v2790_v37, %v2784_v38 }
0x2912   :  { %2909 = vrot.lane.b32.xlu0 %v2907_v33, %s3574_s1 }
0x2913   :  { %2794 = vrot.lane.b32.xlu2 %v2792_v29, %s3574_s1 }
0x296d   :  { %v2795_v36 = vpop.permute.xlu2 %2794 }
0x296e   :  { %v4307_v46 = vadd.f32 %v2795_v36, %v2787_v32 }
0x2970   :  { %3474 = vtanh.f32 %v4307_v46 }
0x2976   :  { %v3475_v34 = vpop.eup %3474 }
0x2977   :  { %2800 = vrot.lane.b32.xlu1 %v3475_v34, %s3575_s4 }
0x2984   :  { %v2910_v40 = vpop.permute.xlu0 %2909 }
0x2985   :  { %v2912_v11 = vadd.f32 %v2910_v40, %v2902_v35 }
0x2987   :  { %3476 = vtanh.f32 %v2912_v11 }
0x298d   :  { %v3477_v42 = vpop.eup %3476 }
0x298e   :  { %2915 = vrot.lane.b32.xlu2 %v3477_v42, %s3575_s4 }
0x29e8   :  { %v2916_v50 = vpop.permute.xlu2 %2915 }
0x29e9   :  { %v2918_v47 = vmul.f32 %v2916_v50, %v2899_v31  ;;  %v2801_v43 = vpop.permute.xlu1 %2800 }
0x29ea   :  { %v2803_v30 = vmul.f32 %v2801_v43, %v2784_v38 }
0x29eb   :  { %2920 = vrot.lane.b32.xlu0 %v2918_v47, %s3576_s10 }
0x29ec   :  { %2923 = vrot.lane.b32.xlu1 %v2803_v30, %s3573_s12  ;;  %v2805_v6 = vrot.slane %v2803_v30, 4 }
0x29ee   :  { %v2807_v8 = vsub.f32 %v2803_v30, %v2805_v6 }
0x29f4   :  { %1711 = vrot.lane.b32.xlu1 %v1709_v53, %s3576_s10  ;;  %v2439_v53 = vrot.slane %v4257_v61, 4 }
0x29f6   :  { %v2441_v48 = vsub.f32 %v4257_v61, %v2439_v53 }
0x29fc   :  { %2077 = vrot.lane.b32.xlu1 %v2075_v54, %s3576_s10 }
0x2a04   :  { %2626 = vrot.lane.b32.xlu1 %v2624_v56, %s3576_s10 }
0x2a5d   :  { %v2921_v2 = vpop.permute.xlu0 %2920 }
0x2a5e   :  { %v2924_v58 = vpop.permute.xlu1 %2923 }
0x2a5f   :  { %v2926_v44 = vsel %vm114_vm0, %v2921_v2, %v2924_v58 }
0x2a60   :  { %3202 = vmatmul.msk.f32.vlgmr.msrb.gmra.mxu1 %vm204_vm5, %v2926_v44  ;;  %vm3039_vm5 = vcmask 27648  }
0x2a61   :  { %v3040_v7 = vsel %vm3039_vm5, %v3038_v12, 0.0 }
0x2a66   :  { %v1712_v59 = vpop.permute.xlu1 %1711 }
0x2a67   :  { %3168 = vmatmul.msk.f32.vlgmr.msra.gmra.mxu3 %vm114_vm0, %v1712_v59 }
0x2a68   :  { %2096 = vmatpush.msra.mxu3 %v4327_v57 }
0x2a6e   :  { %v2078_v23 = vpop.permute.xlu1 %2077 }
0x2add   :  { %v2947_v51 = vpop.f32.mrf.mxu1 }
0x2ade   :  { %v2948_v60 = vadd.f32 %v4299_v9, %v2947_v51 }
0x2ae0   :  { %3478 = vtanh.f32 %v2948_v60  ;;  %v2950_v9 = vsub.f32 0.0, %v2948_v60 }
0x2ae2   :  { %v2951_v1 = vmul.f32 1.442695, %v2950_v9 }
0x2ae4   :  { %3480 = vpow2.f32 %v2951_v1 }
0x2ae6   :  { %v3479_v62 = vpop.eup %3478 }
0x2ae7   :  { %2972 = vrot.lane.b32.xlu2 %v3479_v62, %s3573_s12 }
0x2aea   :  { %v3481_v0 = vpop.eup %3480  ;;  %v1732_v44 = vpop.f32.mrf.mxu3 }
0x2aeb   :  { %v2953_v41 = vadd.f32 1.0, %v3481_v0  ;;  %v1735_v39 = vmul.f32 %v1732_v44, %v1732_v44 }
0x2aed   :  { %3482 = vrcp.f32 %v2953_v41  ;;  %v2965_v16 = vand.u32 2147483648, %v2953_v41  ;;  %vm2959_vm12 = vweird.f32 %v2953_v41  ;;  %v2963_v21 = vand.u32 2147483647, %v2953_v41 }
0x2aee   :  { %3484 = vrcp.f32 %v3582_v20 }
0x2aef   :  { %1894 = vrot.lane.b32.xlu2 %v1892_v63, %s3576_s10  ;;  %v2966_v27 = vor.u32 1.1754944e-38, %v2965_v16  ;;  %vm2964_vm14 = vcmp.eq.f32.partialorder %v2963_v21, 8.507059e+37  ;;  %v3584_v16 = vmov 256.0  }
0x2af3   :  { %v3483_v49 = vpop.eup %3482 }
0x2af4   :  { %v2955_v13 = vmul.f32 %v3483_v49, %v2953_v41  ;;  %vm2960_vm9 = vweird.f32 %v3483_v49  ;;  %v3485_v18 = vpop.eup %3484 }
0x2af5   :  { %vm2961_vm13 = vmor %vm2959_vm12, %vm2960_vm9  ;;  %v3051_v24 = vmul.f32 16.0, %v3485_v18  ;;  %vm3055_vm15 = vweird.f32 %v3485_v18 }
0x2af6   :  { %v2956_v14 = vsub.f32 1.0, %v2955_v13 }
0x2af7   :  { %2260 = vrot.lane.b32.xlu2 %v2258_v3, %s3576_s10  ;;  %v3052_v31 = vsub.f32 1.0, %v3051_v24 }
0x2af8   :  { %v2957_v15 = vmul.f32 %v3483_v49, %v2956_v14 }
0x2af9   :  { %v3053_v29 = vmul.f32 %v3485_v18, %v3052_v31 }
0x2afa   :  { %v2958_v17 = vadd.f32 %v3483_v49, %v2957_v15 }
0x2afb   :  { %v3054_v34 = vadd.f32 %v3485_v18, %v3053_v29 }
0x2afc   :  { %v2962_v26 = vsel %vm2961_vm13, %v3483_v49, %v2958_v17 }
0x2afd   :  { %v2967_v5 = vsel %vm2964_vm14, %v2966_v27, %v2962_v26  ;;  %v3056_v11 = vsel %vm3055_vm15, %v3485_v18, %v3054_v34 }
0x2afe   :  { %v2970_v47 = vmul.f32 %v2967_v5, %v4307_v46  ;;  %v2627_v46 = vpop.permute.xlu1 %2626 }
0x2aff   :  { %2809 = vrot.lane.b32.xlu2 %v2807_v8, %s3576_s10 }
0x2b28   :  { %3041 = vadd.xlane.f32.xlu2 %v3040_v7 }
0x2b41   :  { %v2973_v45 = vpop.permute.xlu2 %2972 }
0x2b42   :  { %v2975_v22 = vmul.f32 %v2973_v45, %v2967_v5 }
0x2b44   :  { %2977 = vrot.lane.b32.xlu0 %v2975_v22, %s3574_s1  ;;  %s3097_s1 = sshll.u32 %s4410_s27, 4  ;;  %s3585_s27 = smov [#allocation6]   ;;  %s3098_s1 = int_to_ptr.hbm [resolvable:$true] %s3097_s1 }
0x2b45   :  { %s3106_s15 = sshll.u32 %s3585_s27, 4  ;;  %s3107_s15 = int_to_ptr.vmem [resolvable:$true] %s3106_s15 }
0x2b49   :  { %v1895_v25 = vpop.permute.xlu2 %1894 }
0x2b4a   :  { %3173 = vmatmul.msk.f32.vlgmr.msrb.gmra.mxu3 %vm114_vm0, %v1895_v25 }
0x2b4b   :  { %2279 = vmatpush.msrb.mxu3 %v4327_v57 }
0x2b51   :  { %v2261_v19 = vpop.permute.xlu2 %2260 }
0x2b52   :  { %3178 = vmatmul.msk.f32.vlgmr.msra.gmra.mxu3 %vm114_vm0, %v2078_v23 }
0x2b53   :  { %2462 = vmatpush.msra.mxu3 %v4327_v57 }
0x2b59   :  { %v2810_v28 = vpop.permute.xlu2 %2809 }
0x2b5a   :  { %3183 = vmatmul.msk.f32.vlgmr.msrb.gmra.mxu3 %vm114_vm0, %v2261_v19 }
0x2b5b   :  { %2645 = vmatpush.msrb.mxu3 %v4327_v57 }
0x2b9b   :  { %v3042_v33 = vpop.xlane.xlu2 %3041 }
0x2b9c   :  { %v3043_v37 = vsel %vm1411_vm10, %v3042_v33, 0.0 }
0x2b9d   :  { %v3044_v38 = vrot.slane %v3043_v37, 4 }
0x2b9f   :  { %v3045_v32 = vadd.f32 %v3044_v38, %v3043_v37 }
0x2ba1   :  { %v3046_v36 = vrot.slane %v3045_v32, 2 }
0x2ba3   :  { %v3047_v35 = vadd.f32 %v3046_v36, %v3045_v32 }
0x2ba5   :  { %v3048_v40 = vrot.slane %v3047_v35, 1 }
0x2ba7   :  { %v3049_v42 = vadd.f32 %v3048_v40, %v3047_v35 }
0x2ba9   :  { %v4354_v50 = vmul.f32 %v3056_v11, %v3049_v42 }
0x2bab   :  { %3077 = vst.msk [vmem:[#allocation4] sm:$0x1] %vm3075_vm11, %v4354_v50 }
0x2bb6   :  { %v2978_v43 = vpop.permute.xlu0 %2977 }
0x2bb7   :  { %v2980_v30 = vadd.f32 %v2978_v43, %v2970_v47 }
0x2bb9   :  { %3486 = vtanh.f32 %v2980_v30 }
0x2bba   :  { %3488 = vrcp.f32 %v3584_v16 }
0x2bbf   :  { %v3487_v52 = vpop.eup %3486 }
0x2bc0   :  { %2983 = vrot.lane.b32.xlu0 %v3487_v52, %s3575_s4  ;;  %s3583_s4 = smov [#allocation4]   ;;  %v3489_v21 = vpop.eup %3488 }
0x2bc1   :  { %v3030_v26 = vmul.f32 256.0, %v3489_v21  ;;  %vm3034_vm1 = vweird.f32 %v3489_v21 }
0x2bc3   :  { %v3031_v27 = vsub.f32 1.0, %v3030_v26 }
0x2bc5   :  { %v3032_v25 = vmul.f32 %v3489_v21, %v3031_v27 }
0x2bc7   :  { %v3033_v20 = vadd.f32 %v3489_v21, %v3032_v25 }
0x2bc8   :  { %2443 = vrot.lane.b32.xlu0 %v2441_v48, %s3576_s10 }
0x2bc9   :  { %v3035_v24 = vsel %vm3034_vm1, %v3489_v21, %v3033_v20 }
0x2bcd   :  { %v1915_v59 = vpop.f32.mrf.mxu3 }
0x2bce   :  { %v1918_v63 = vmul.f32 %v1915_v59, %v1915_v59 }
0x2bd0   :  { %v1919_v6 = vadd.f32 %v1918_v63, %v1735_v39 }
0x2bd5   :  { %v2098_v51 = vpop.f32.mrf.mxu3 }
0x2bd6   :  { %v2101_v3 = vmul.f32 %v2098_v51, %v2098_v51 }
0x2bd8   :  { %v2102_v1 = vadd.f32 %v2101_v3, %v1919_v6 }
0x2bdd   :  { %v2281_v60 = vpop.f32.mrf.mxu3 }
0x2bde   :  { %v2284_v8 = vmul.f32 %v2281_v60, %v2281_v60 }
0x2c32   :  { %v2984_v54 = vpop.permute.xlu0 %2983 }
0x2c33   :  { %v2986_v55 = vmul.f32 %v2984_v54, %v2967_v5 }
0x2c35   :  { %v2988_v56 = vrot.slane %v2986_v55, 4 }
0x2c37   :  { %v2990_v2 = vsub.f32 %v2986_v55, %v2988_v56 }
0x2c39   :  { %2992 = vrot.lane.b32.xlu0 %v2990_v2, %s3576_s10  ;;  %s3095_s10 = sshll.u32 %s3583_s4, 4  ;;  %s3096_s10 = int_to_ptr.vmem [resolvable:$true] %s3095_s10 }
0x2c3a   :  { %v2444_v58 = vpop.permute.xlu0 %2443  ;;  %3100 = dma.vmem_to_hbm [thread:$0]  %s3096_s10, 16, %s3098_s1, [#allocation5]  }
0x2c3b   :  { %3188 = vmatmul.msk.f32.vlgmr.msra.gmra.mxu3 %vm114_vm0, %v2444_v58 }
0x2c3c   :  { %2828 = vmatpush.msra.mxu3 %v4327_v57 }
0x2c43   :  { %3193 = vmatmul.msk.f32.vlgmr.msrb.gmra.mxu3 %vm114_vm0, %v2627_v46 }
0x2c44   :  { %3011 = vmatpush.msrb.mxu3 %v4327_v57  ;;  %v2285_v57 = vadd.f32 %v2284_v8, %v2102_v1 }
0x2c4b   :  { %3198 = vmatmul.msk.f32.vlgmr.msra.gmra.mxu3 %vm114_vm0, %v2810_v28 }
0x2cab   :  { %v2993_v61 = vpop.permute.xlu0 %2992 }
0x2cac   :  { %3203 = vmatmul.msk.f32.vlgmr.msrb.gmra.mxu3 %vm114_vm0, %v2993_v61  ;;  %vm3018_vm0 = vcmask 60416  }
0x2cbe   :  { %v2464_v62 = vpop.f32.mrf.mxu3 }
0x2cbf   :  { %v2467_v0 = vmul.f32 %v2464_v62, %v2464_v62 }
0x2cc1   :  { %v2468_v41 = vadd.f32 %v2467_v0, %v2285_v57 }
0x2cc6   :  { %v2647_v4 = vpop.f32.mrf.mxu3 }
0x2cc7   :  { %v2650_v10 = vmul.f32 %v2647_v4, %v2647_v4 }
0x2cc9   :  { %v2651_v7 = vadd.f32 %v2650_v10, %v2468_v41 }
0x2cce   :  { %v2830_v9 = vpop.f32.mrf.mxu3 }
0x2ccf   :  { %v2833_v12 = vmul.f32 %v2830_v9, %v2830_v9 }
0x2cd1   :  { %v2834_v13 = vadd.f32 %v2833_v12, %v2651_v7 }
0x2d2f   :  { %v3013_v49 = vpop.f32.mrf.mxu3 }
0x2d30   :  { %v3016_v14 = vmul.f32 %v3013_v49, %v3013_v49 }
0x2d32   :  { %v3017_v15 = vadd.f32 %v3016_v14, %v2834_v13 }
0x2d34   :  { %v3019_v17 = vsel %vm3018_vm0, %v3017_v15, 0.0 }
0x2d35   :  { %3020 = vadd.xlane.f32.xlu1 %v3019_v17 }
0x2da8   :  { %v3021_v45 = vpop.xlane.xlu1 %3020 }
0x2da9   :  { %v3022_v5 = vsel %vm1411_vm10, %v3021_v45, 0.0 }
0x2daa   :  { %v3023_v22 = vrot.slane %v3022_v5, 4 }
0x2dac   :  { %v3024_v23 = vadd.f32 %v3023_v22, %v3022_v5 }
0x2dae   :  { %v3025_v19 = vrot.slane %v3024_v23, 2 }
0x2db0   :  { %v3026_v18 = vadd.f32 %v3025_v19, %v3024_v23 }
0x2db2   :  { %v3027_v28 = vrot.slane %v3026_v18, 1 }
0x2db4   :  { %v3028_v31 = vadd.f32 %v3027_v28, %v3026_v18 }
0x2db6   :  { %v3036_v33 = vmul.f32 %v3035_v24, %v3028_v31 }
0x2db8   :  { %v3058_v37 = vadd.f32 1e-20, %v3036_v33  ;;  %3078 = vst.msk [vmem:[#allocation6] sm:$0x1] %vm3075_vm11, %v3036_v33 }
0x2db9   :  { %3111 = dma.vmem_to_hbm [thread:$0]  %s3107_s15, 16, %s3109_s6, [#allocation5]  }
0x2dba   :  { %3490 = vrcp.f32 %v3058_v37  ;;  %v3070_v36 = vand.u32 2147483648, %v3058_v37  ;;  %v3068_v35 = vand.u32 2147483647, %v3058_v37  ;;  %vm3064_vm2 = vweird.f32 %v3058_v37 }
0x2dbc   :  { %v3071_v11 = vor.u32 1.1754944e-38, %v3070_v36  ;;  %vm3069_vm4 = vcmp.eq.f32.partialorder %v3068_v35, 8.507059e+37 }
0x2dc0   :  { %v3491_v38 = vpop.eup %3490 }
0x2dc1   :  { %v3060_v29 = vmul.f32 %v3491_v38, %v3058_v37  ;;  %vm3065_vm10 = vweird.f32 %v3491_v38 }
0x2dc2   :  { %vm3066_vm3 = vmor %vm3064_vm2, %vm3065_vm10 }
0x2dc3   :  { %v3061_v32 = vsub.f32 1.0, %v3060_v29 }
0x2dc5   :  { %v3062_v34 = vmul.f32 %v3491_v38, %v3061_v32 }
0x2dc7   :  { %v3063_v40 = vadd.f32 %v3491_v38, %v3062_v34 }
0x2dc9   :  { %v3067_v42 = vsel %vm3066_vm3, %v3491_v38, %v3063_v40 }
0x2dca   :  { %v3072_v47 = vsel %vm3069_vm4, %v3071_v11, %v3067_v42 }
0x2dcb   :  { %v3074_v43 = vadd.f32 %v3072_v47, %v4354_v50 }
0x2dcd   :  { %3076 = vst.msk [vmem:[#allocation2] sm:$0x1] %vm3075_vm11, %v3074_v43 }
0x2dce   :  { %3089 = dma.vmem_to_hbm [thread:$0]  %s3085_s21, 16, %s3087_s7, [#allocation3]  }
0x2dcf   :  { %3568 = dma.done.wait [#allocation3], 16  }
0x2dd0   :  { %3569 = vsyncadd [#allocation3], 4294967280 }
0x2dd1   :  { %3570 = dma.done.wait [#allocation5], 32  }
0x2dd2   :  { %3571 = vsyncadd [#allocation5], 4294967264 }
0x2dd3   :  { %3124 = vsyncpa [#allocation3], 1 }
0x2dd4   :  { %3125 = vsyncpa [#allocation5], 1 }

</bundles_post_ra>
